<compile_context>
chip_gen: v7x
topology: tpu7x:2x2x1
jax: 0.10.0
libtpu: 0.0.40
codegen_flags: <defaults>
</compile_context>

<pallas_src>
import functools

import jax
import jax.numpy as jnp
from jax import lax
from jax.experimental import pallas as pl
from jax.experimental.pallas import tpu as pltpu


# ---------------------------------------------------------------------------
# Shared helper: fused-tap patch matrix for `tH` image rows starting at `r0`.
# ---------------------------------------------------------------------------
def _build_patches(img_ref, r0, tH, W, C):
    """Return the [tH*W, 9*C] bf16 im2col tile, built from 9 halo slices."""
    cols = []
    for tap in range(9):
        dy, dx = divmod(tap, 3)
        # [tH, W, C] f32 slice of the VMEM-resident padded image block.
        cols.append(img_ref[0, pl.ds(r0 + dy, tH), pl.ds(dx, W), :])
    patch = jnp.concatenate(cols, axis=-1)              # [tH, W, 9C] f32
    # (tH, W) -> (tH*W) merge is a free relabel when W % 8 == 0.
    return patch.reshape(tH * W, 9 * C).astype(jnp.bfloat16)


# ---------------------------------------------------------------------------
# Pass 1: accumulate sum(q^2), sum(k^2) and unnormalized K^T V per batch.
# ---------------------------------------------------------------------------
def esam_stats_kernel(xp_ref, yp_ref, wq_ref, bq_ref, wkv_ref, bkv_ref,
                      ktv_ref, sq2_ref, sk2_ref, *, W, C, tH):
    t = pl.program_id(1)
    r0 = pl.multiple_of(t * tH, tH)

    @pl.when(t == 0)
    def _():
        ktv_ref[...] = jnp.zeros_like(ktv_ref)
        sq2_ref[...] = jnp.zeros_like(sq2_ref)
        sk2_ref[...] = jnp.zeros_like(sk2_ref)

    px = _build_patches(xp_ref, r0, tH, W, C)            # [Lt, 9C] bf16
    py = _build_patches(yp_ref, r0, tH, W, C)

    # Single fused-tap matmul per branch (K = 9C), f32 accumulation.
    q = jnp.dot(px, wq_ref[...], preferred_element_type=jnp.float32) + bq_ref[...]
    kv = jnp.dot(py, wkv_ref[...], preferred_element_type=jnp.float32) + bkv_ref[...]
    k = kv[:, :C]
    v = kv[:, C:]

    sq2_ref[0] += jnp.sum(q * q, axis=0, keepdims=True)  # [1, C]
    sk2_ref[0] += jnp.sum(k * k, axis=0, keepdims=True)
    # Unnormalized K^T V over this spatial tile.  [Lt, C] is small, so even if
    # Mosaic materializes a transposed copy for the dim-0 contraction it is cheap.
    ktv_ref[0] += lax.dot_general(
        k.astype(jnp.bfloat16), v.astype(jnp.bfloat16),
        (((0,), (0,)), ((), ())), preferred_element_type=jnp.float32)


# ---------------------------------------------------------------------------
# Pass 2: out = conv3x3(x; attention-folded weights) + x   (residual exact f32)
# ---------------------------------------------------------------------------
def esam_apply_kernel(xp_ref, w2_ref, b2_ref, out_ref, *, W, C, tH):
    t = pl.program_id(1)
    r0 = pl.multiple_of(t * tH, tH)

    px = _build_patches(xp_ref, r0, tH, W, C)             # [Lt, 9C] bf16
    o = jnp.dot(px, w2_ref[0], preferred_element_type=jnp.float32) + b2_ref[0]
    # Residual = center pixel of the padded block (exact f32, no widening matmul).
    xres = xp_ref[0, pl.ds(r0 + 1, tH), pl.ds(1, W), :]   # [tH, W, C] f32
    out_ref[0] = o.reshape(tH, W, C) + xres


# ---------------------------------------------------------------------------
# Small host-side helpers.
# ---------------------------------------------------------------------------
def _vmem_limit_bytes():
    # Generation-aware scoped-VMEM limit: ~half of physical capacity, capped.
    try:
        cap = int(pltpu.get_tpu_info().vmem_capacity_bytes)
        return max(16 * 1024 * 1024, min(cap // 2, 64 * 1024 * 1024))
    except Exception:
        return 32 * 1024 * 1024


def _pick_tile_rows(H, W):
    # Largest row-tile dividing H with roughly <= 4K spatial positions per tile.
    budget = max(1, 4096 // max(W, 1))
    best = 1
    for cand in range(1, H + 1):
        if H % cand == 0 and cand <= budget:
            best = cand
    return best


# ---------------------------------------------------------------------------
# Host wrapper.
# ---------------------------------------------------------------------------
@functools.partial(jax.jit, static_argnames=("tile_rows",))
def esam_forward(x_nchw, y_nchw, wq, bq, wk, bk, wv, bv, beta, *, tile_rows=None):
    """x/y: [B, C, H, W] f32.  Conv weights HWIO [3, 3, C, C]; biases [C]."""
    B, C, H, W = x_nchw.shape
    Hp, Wp = H + 2, W + 2

    tH = tile_rows if tile_rows is not None else _pick_tile_rows(H, W)
    if H % tH != 0:
        raise ValueError(f"tile_rows={tH} must divide H={H}")
    nT = H // tH

    def pad_nhwc(t_nchw):
        t = jnp.transpose(t_nchw, (0, 2, 3, 1))                 # NHWC
        # TODO(synk): accept NHWC inputs upstream; the pad fuses into this
        # transpose so it is the only remaining whole-tensor HBM round trip.
        return jnp.pad(t, ((0, 0), (1, 1), (1, 1), (0, 0)))     # [B, Hp, Wp, C]

    xpad = pad_nhwc(x_nchw)
    ypad = pad_nhwc(y_nchw)

    # Pre-pack conv weights for fused-tap matmuls: HWIO [3,3,Cin,Cout] -> [9C, Cout].
    wq9_f32 = wq.astype(jnp.float32).reshape(9 * C, C)
    wq9 = wq9_f32.astype(jnp.bfloat16)
    wkv9 = jnp.concatenate([wk.reshape(9 * C, C), wv.reshape(9 * C, C)],
                           axis=-1).astype(jnp.bfloat16)        # [9C, 2C]
    bq1 = bq.astype(jnp.float32).reshape(1, C)
    bkv1 = jnp.concatenate([bk, bv]).astype(jnp.float32).reshape(1, 2 * C)

    vmem_limit = _vmem_limit_bytes()
    img_spec = pl.BlockSpec((1, Hp, Wp, C), lambda b, t: (b, 0, 0, 0))

    # ---- Pass 1: q/k channel statistics and unnormalized K^T V ----
    ktv, sq2, sk2 = pl.pallas_call(
        functools.partial(esam_stats_kernel, W=W, C=C, tH=tH),
        out_shape=(jax.ShapeDtypeStruct((B, C, C), jnp.float32),
                   jax.ShapeDtypeStruct((B, 1, C), jnp.float32),
                   jax.ShapeDtypeStruct((B, 1, C), jnp.float32)),
        grid_spec=pltpu.PrefetchScalarGridSpec(
            num_scalar_prefetch=0,
            grid=(B, nT),
            in_specs=[
                img_spec,                                          # xpad
                img_spec,                                          # ypad
                pl.BlockSpec((9 * C, C), lambda b, t: (0, 0)),     # wq (packed)
                pl.BlockSpec((1, C), lambda b, t: (0, 0)),         # bq
                pl.BlockSpec((9 * C, 2 * C), lambda b, t: (0, 0)), # wkv (fused)
                pl.BlockSpec((1, 2 * C), lambda b, t: (0, 0)),     # bkv (fused)
            ],
            out_specs=[
                pl.BlockSpec((1, C, C), lambda b, t: (b, 0, 0)),   # K^T V accum
                pl.BlockSpec((1, 1, C), lambda b, t: (b, 0, 0)),   # sum q^2
                pl.BlockSpec((1, 1, C), lambda b, t: (b, 0, 0)),   # sum k^2
            ]),
        compiler_params=pltpu.CompilerParams(
            dimension_semantics=("parallel", "arbitrary"),
            vmem_limit_bytes=vmem_limit),
    )(xpad, ypad, wq9, bq1, wkv9, bkv1)

    # ---- Tiny [C, C] host math (exact f32): normalize, softmax, fold weights ----
    eps = 1e-12
    inv_q = 1.0 / jnp.maximum(jnp.sqrt(sq2), eps)            # [B, 1, C]
    inv_k = 1.0 / jnp.maximum(jnp.sqrt(sk2), eps)
    logits = ktv * jnp.transpose(inv_k, (0, 2, 1))           # row c scaled by 1/||k_c||
    attn = jax.nn.softmax(logits, axis=-1)                   # [B, C, C]
    attn = attn * jnp.transpose(inv_q, (0, 2, 1))            # fold q-normalization
    w2 = (beta * jnp.einsum("kc,bcd->bkd", wq9_f32, attn)).astype(jnp.bfloat16)
    b2 = (beta * jnp.einsum("c,bcd->bd", bq.astype(jnp.float32), attn))
    b2 = b2.reshape(B, 1, C).astype(jnp.float32)

    # ---- Pass 2: out = conv3x3(x; folded weights) + x ----
    out_nhwc = pl.pallas_call(
        functools.partial(esam_apply_kernel, W=W, C=C, tH=tH),
        out_shape=jax.ShapeDtypeStruct((B, H, W, C), jnp.float32),
        grid_spec=pltpu.PrefetchScalarGridSpec(
            num_scalar_prefetch=0,
            grid=(B, nT),
            in_specs=[
                img_spec,                                            # xpad (reused)
                pl.BlockSpec((1, 9 * C, C), lambda b, t: (b, 0, 0)), # folded W
                pl.BlockSpec((1, 1, C), lambda b, t: (b, 0, 0)),     # folded bias
            ],
            out_specs=pl.BlockSpec((1, tH, W, C), lambda b, t: (b, t, 0, 0))),
        compiler_params=pltpu.CompilerParams(
            dimension_semantics=("parallel", "parallel"),
            vmem_limit_bytes=vmem_limit),
    )(xpad, w2, b2)

    return jnp.transpose(out_nhwc, (0, 3, 1, 2))             # back to NCHW


# ---------------------------------------------------------------------------
# Pure-JAX f32 reference (mirrors the PyTorch forward) for correctness checking.
# ---------------------------------------------------------------------------
def esam_reference(x, y, wq, bq, wk, bk, wv, bv, beta):
    B, C, H, W = x.shape

    def conv(inp, w, b):
        out = lax.conv_general_dilated(
            inp, w, window_strides=(1, 1), padding="SAME",
            dimension_numbers=("NCHW", "HWIO", "NCHW"))
        return out + b.reshape(1, -1, 1, 1)

    def flat(t):  # b c h w -> b (h w) c
        return jnp.transpose(t, (0, 2, 3, 1)).reshape(B, H * W, C)

    q = flat(conv(x, wq, bq))
    k = flat(conv(y, wk, bk))
    v = flat(conv(y, wv, bv))
    q = q / jnp.maximum(jnp.linalg.norm(q, axis=1, keepdims=True), 1e-12)
    k = k / jnp.maximum(jnp.linalg.norm(k, axis=1, keepdims=True), 1e-12)
    attn = jax.nn.softmax(jnp.einsum("bnc,bnd->bcd", k, v), axis=-1)
    out = jnp.einsum("bnc,bcd->bnd", q, attn)
    out = jnp.transpose(out.reshape(B, H, W, C), (0, 3, 1, 2))
    return beta * out + x


if __name__ == "__main__":
    B, C, H, W = 2, 4, 16, 16

    key = jax.random.PRNGKey(0)
    kx, ky, kwq, kbq, kwk, kbk, kwv, kbv = jax.random.split(key, 8)

    x = jax.random.normal(kx, (B, C, H, W), dtype=jnp.float32)
    y = jax.random.normal(ky, (B, C, H, W), dtype=jnp.float32)

    # nn.Conv2d(dim, dim, 3, 1, 1) parameters, stored HWIO [3, 3, C_in, C_out].
    scale = 0.1
    wq = scale * jax.random.normal(kwq, (3, 3, C, C), dtype=jnp.float32)
    wk = scale * jax.random.normal(kwk, (3, 3, C, C), dtype=jnp.float32)
    wv = scale * jax.random.normal(kwv, (3, 3, C, C), dtype=jnp.float32)
    bq = scale * jax.random.normal(kbq, (C,), dtype=jnp.float32)
    bk = scale * jax.random.normal(kbk, (C,), dtype=jnp.float32)
    bv = scale * jax.random.normal(kbv, (C,), dtype=jnp.float32)
    beta = jnp.ones((1,), dtype=jnp.float32)  # nn.Parameter(torch.ones(1))

    # tile_rows=8 -> 2 row tiles per image, exercising the pass-1 accumulation.
    out = esam_forward(x, y, wq, bq, wk, bk, wv, bv, beta, tile_rows=8)
    out = jax.block_until_ready(out)

    ref = esam_reference(x, y, wq, bq, wk, bk, wv, bv, beta)
    assert out.shape == (B, C, H, W)
    # bf16 MXU operands (f32 accumulation) limit agreement to ~2-3 digits;
    # the residual path and the softmax/normalization math are exact f32.
    assert jnp.allclose(out, ref, atol=3e-2, rtol=3e-2), (
        f"max abs err {jnp.max(jnp.abs(out - ref))}")

    print("KERNEL_OK")
</pallas_src>

<mosaic_0001>
module attributes {stable_mosaic.version = 11 : i64} {
  func.func @esam_stats_kernel(%arg0: i32, %arg1: i32, %arg2: memref<1x18x18x4xf32, #tpu.memory_space<vmem>>, %arg3: memref<1x18x18x4xf32, #tpu.memory_space<vmem>>, %arg4: memref<36x4xbf16, #tpu.memory_space<vmem>>, %arg5: memref<1x4xf32, #tpu.memory_space<vmem>>, %arg6: memref<36x8xbf16, #tpu.memory_space<vmem>>, %arg7: memref<1x8xf32, #tpu.memory_space<vmem>>, %arg8: memref<1x4x4xf32, #tpu.memory_space<vmem>>, %arg9: memref<1x1x4xf32, #tpu.memory_space<vmem>>, %arg10: memref<1x1x4xf32, #tpu.memory_space<vmem>>) attributes {dimension_semantics = [#tpu.dimension_semantics<parallel>, #tpu.dimension_semantics<arbitrary>], iteration_bounds = array<i64: 2, 2>, scalar_prefetch = 0 : i64, scratch_operands = 0 : i64, tpu.core_type = #tpu.core_type<tc>, window_params = [{transform_indices = @transform_0, window_bounds = array<i64: 1, 18, 18, 4>}, {transform_indices = @transform_1, window_bounds = array<i64: 1, 18, 18, 4>}, {pipeline_mode = #tpu.pipeline_mode<synchronous>, transform_indices = @transform_2, window_bounds = array<i64: 36, 4>}, {pipeline_mode = #tpu.pipeline_mode<synchronous>, transform_indices = @transform_3, window_bounds = array<i64: 1, 4>}, {pipeline_mode = #tpu.pipeline_mode<synchronous>, transform_indices = @transform_4, window_bounds = array<i64: 36, 8>}, {pipeline_mode = #tpu.pipeline_mode<synchronous>, transform_indices = @transform_5, window_bounds = array<i64: 1, 8>}, {transform_indices = @transform_6, window_bounds = array<i64: 1, 4, 4>}, {transform_indices = @transform_7, window_bounds = array<i64: 1, 1, 4>}, {transform_indices = @transform_8, window_bounds = array<i64: 1, 1, 4>}]} {
    %c8_i32 = arith.constant 8 : i32
    %0 = arith.muli %arg1, %c8_i32 : i32
    %1 = tpu.assume_multiple %0, 8 : i32
    %c0_i32 = arith.constant 0 : i32
    %2 = arith.cmpi eq, %arg1, %c0_i32 : i32
    %3 = arith.extui %2 : i1 to i32
    %c0_i32_0 = arith.constant 0 : i32
    %4 = arith.cmpi ne, %3, %c0_i32_0 : i32
    scf.if %4 {
      %cst_98 = arith.constant 0.000000e+00 : f32
      %122 = vector.broadcast %cst_98 : f32 to vector<1x4x4xf32>
      %c0_99 = arith.constant 0 : index
      %c0_100 = arith.constant 0 : index
      %c0_101 = arith.constant 0 : index
      %123 = vector.load %arg8[%c0_99, %c0_100, %c0_101] : memref<1x4x4xf32, #tpu.memory_space<vmem>>, vector<1x4x4xf32>
      tpu.vector_store %arg8[%c0_99, %c0_100, %c0_101], %122 {strides = array<i32>} : memref<1x4x4xf32, #tpu.memory_space<vmem>>, vector<1x4x4xf32>,
      %cst_102 = arith.constant 0.000000e+00 : f32
      %124 = vector.broadcast %cst_102 : f32 to vector<1x1x4xf32>
      %c0_103 = arith.constant 0 : index
      %c0_104 = arith.constant 0 : index
      %c0_105 = arith.constant 0 : index
      %125 = vector.load %arg9[%c0_103, %c0_104, %c0_105] : memref<1x1x4xf32, #tpu.memory_space<vmem>>, vector<1x1x4xf32>
      tpu.vector_store %arg9[%c0_103, %c0_104, %c0_105], %124 {strides = array<i32>} : memref<1x1x4xf32, #tpu.memory_space<vmem>>, vector<1x1x4xf32>,
      %cst_106 = arith.constant 0.000000e+00 : f32
      %126 = vector.broadcast %cst_106 : f32 to vector<1x1x4xf32>
      %c0_107 = arith.constant 0 : index
      %c0_108 = arith.constant 0 : index
      %c0_109 = arith.constant 0 : index
      %127 = vector.load %arg10[%c0_107, %c0_108, %c0_109] : memref<1x1x4xf32, #tpu.memory_space<vmem>>, vector<1x1x4xf32>
      tpu.vector_store %arg10[%c0_107, %c0_108, %c0_109], %126 {strides = array<i32>} : memref<1x1x4xf32, #tpu.memory_space<vmem>>, vector<1x1x4xf32>,
    } else {
    }
    %c0_i32_1 = arith.constant 0 : i32
    %5 = arith.addi %1, %c0_i32_1 : i32
    %c0 = arith.constant 0 : index
    %6 = arith.index_cast %5 : i32 to index
    %c0_2 = arith.constant 0 : index
    %c0_3 = arith.constant 0 : index
    %7 = vector.load %arg2[%c0, %6, %c0_2, %c0_3] : memref<1x18x18x4xf32, #tpu.memory_space<vmem>>, vector<1x8x16x4xf32>
    %8 = vector.shape_cast %7 : vector<1x8x16x4xf32> to vector<8x16x4xf32>
    %c0_i32_4 = arith.constant 0 : i32
    %9 = arith.addi %1, %c0_i32_4 : i32
    %c0_5 = arith.constant 0 : index
    %10 = arith.index_cast %9 : i32 to index
    %c1 = arith.constant 1 : index
    %c0_6 = arith.constant 0 : index
    %11 = vector.load %arg2[%c0_5, %10, %c1, %c0_6] : memref<1x18x18x4xf32, #tpu.memory_space<vmem>>, vector<1x8x16x4xf32>
    %12 = vector.shape_cast %11 : vector<1x8x16x4xf32> to vector<8x16x4xf32>
    %c0_i32_7 = arith.constant 0 : i32
    %13 = arith.addi %1, %c0_i32_7 : i32
    %c0_8 = arith.constant 0 : index
    %14 = arith.index_cast %13 : i32 to index
    %c2 = arith.constant 2 : index
    %c0_9 = arith.constant 0 : index
    %15 = vector.load %arg2[%c0_8, %14, %c2, %c0_9] : memref<1x18x18x4xf32, #tpu.memory_space<vmem>>, vector<1x8x16x4xf32>
    %16 = vector.shape_cast %15 : vector<1x8x16x4xf32> to vector<8x16x4xf32>
    %c1_i32 = arith.constant 1 : i32
    %17 = arith.addi %1, %c1_i32 : i32
    %c0_10 = arith.constant 0 : index
    %18 = arith.index_cast %17 : i32 to index
    %c0_11 = arith.constant 0 : index
    %c0_12 = arith.constant 0 : index
    %19 = vector.load %arg2[%c0_10, %18, %c0_11, %c0_12] : memref<1x18x18x4xf32, #tpu.memory_space<vmem>>, vector<1x8x16x4xf32>
    %20 = vector.shape_cast %19 : vector<1x8x16x4xf32> to vector<8x16x4xf32>
    %c1_i32_13 = arith.constant 1 : i32
    %21 = arith.addi %1, %c1_i32_13 : i32
    %c0_14 = arith.constant 0 : index
    %22 = arith.index_cast %21 : i32 to index
    %c1_15 = arith.constant 1 : index
    %c0_16 = arith.constant 0 : index
    %23 = vector.load %arg2[%c0_14, %22, %c1_15, %c0_16] : memref<1x18x18x4xf32, #tpu.memory_space<vmem>>, vector<1x8x16x4xf32>
    %24 = vector.shape_cast %23 : vector<1x8x16x4xf32> to vector<8x16x4xf32>
    %c1_i32_17 = arith.constant 1 : i32
    %25 = arith.addi %1, %c1_i32_17 : i32
    %c0_18 = arith.constant 0 : index
    %26 = arith.index_cast %25 : i32 to index
    %c2_19 = arith.constant 2 : index
    %c0_20 = arith.constant 0 : index
    %27 = vector.load %arg2[%c0_18, %26, %c2_19, %c0_20] : memref<1x18x18x4xf32, #tpu.memory_space<vmem>>, vector<1x8x16x4xf32>
    %28 = vector.shape_cast %27 : vector<1x8x16x4xf32> to vector<8x16x4xf32>
    %c2_i32 = arith.constant 2 : i32
    %29 = arith.addi %1, %c2_i32 : i32
    %c0_21 = arith.constant 0 : index
    %30 = arith.index_cast %29 : i32 to index
    %c0_22 = arith.constant 0 : index
    %c0_23 = arith.constant 0 : index
    %31 = vector.load %arg2[%c0_21, %30, %c0_22, %c0_23] : memref<1x18x18x4xf32, #tpu.memory_space<vmem>>, vector<1x8x16x4xf32>
    %32 = vector.shape_cast %31 : vector<1x8x16x4xf32> to vector<8x16x4xf32>
    %c2_i32_24 = arith.constant 2 : i32
    %33 = arith.addi %1, %c2_i32_24 : i32
    %c0_25 = arith.constant 0 : index
    %34 = arith.index_cast %33 : i32 to index
    %c1_26 = arith.constant 1 : index
    %c0_27 = arith.constant 0 : index
    %35 = vector.load %arg2[%c0_25, %34, %c1_26, %c0_27] : memref<1x18x18x4xf32, #tpu.memory_space<vmem>>, vector<1x8x16x4xf32>
    %36 = vector.shape_cast %35 : vector<1x8x16x4xf32> to vector<8x16x4xf32>
    %c2_i32_28 = arith.constant 2 : i32
    %37 = arith.addi %1, %c2_i32_28 : i32
    %c0_29 = arith.constant 0 : index
    %38 = arith.index_cast %37 : i32 to index
    %c2_30 = arith.constant 2 : index
    %c0_31 = arith.constant 0 : index
    %39 = vector.load %arg2[%c0_29, %38, %c2_30, %c0_31] : memref<1x18x18x4xf32, #tpu.memory_space<vmem>>, vector<1x8x16x4xf32>
    %40 = vector.shape_cast %39 : vector<1x8x16x4xf32> to vector<8x16x4xf32>
    %41 = tpu.concatenate %8, %12, %16, %20, %24, %28, %32, %36, %40 in 2 : vector<8x16x4xf32>, vector<8x16x4xf32>, vector<8x16x4xf32>, vector<8x16x4xf32>, vector<8x16x4xf32>, vector<8x16x4xf32>, vector<8x16x4xf32>, vector<8x16x4xf32>, vector<8x16x4xf32> -> vector<8x16x36xf32>
    %42 = vector.shape_cast %41 : vector<8x16x36xf32> to vector<128x36xf32>
    %43 = arith.truncf %42 : vector<128x36xf32> to vector<128x36xbf16>
    %c0_i32_32 = arith.constant 0 : i32
    %44 = arith.addi %1, %c0_i32_32 : i32
    %c0_33 = arith.constant 0 : index
    %45 = arith.index_cast %44 : i32 to index
    %c0_34 = arith.constant 0 : index
    %c0_35 = arith.constant 0 : index
    %46 = vector.load %arg3[%c0_33, %45, %c0_34, %c0_35] : memref<1x18x18x4xf32, #tpu.memory_space<vmem>>, vector<1x8x16x4xf32>
    %47 = vector.shape_cast %46 : vector<1x8x16x4xf32> to vector<8x16x4xf32>
    %c0_i32_36 = arith.constant 0 : i32
    %48 = arith.addi %1, %c0_i32_36 : i32
    %c0_37 = arith.constant 0 : index
    %49 = arith.index_cast %48 : i32 to index
    %c1_38 = arith.constant 1 : index
    %c0_39 = arith.constant 0 : index
    %50 = vector.load %arg3[%c0_37, %49, %c1_38, %c0_39] : memref<1x18x18x4xf32, #tpu.memory_space<vmem>>, vector<1x8x16x4xf32>
    %51 = vector.shape_cast %50 : vector<1x8x16x4xf32> to vector<8x16x4xf32>
    %c0_i32_40 = arith.constant 0 : i32
    %52 = arith.addi %1, %c0_i32_40 : i32
    %c0_41 = arith.constant 0 : index
    %53 = arith.index_cast %52 : i32 to index
    %c2_42 = arith.constant 2 : index
    %c0_43 = arith.constant 0 : index
    %54 = vector.load %arg3[%c0_41, %53, %c2_42, %c0_43] : memref<1x18x18x4xf32, #tpu.memory_space<vmem>>, vector<1x8x16x4xf32>
    %55 = vector.shape_cast %54 : vector<1x8x16x4xf32> to vector<8x16x4xf32>
    %c1_i32_44 = arith.constant 1 : i32
    %56 = arith.addi %1, %c1_i32_44 : i32
    %c0_45 = arith.constant 0 : index
    %57 = arith.index_cast %56 : i32 to index
    %c0_46 = arith.constant 0 : index
    %c0_47 = arith.constant 0 : index
    %58 = vector.load %arg3[%c0_45, %57, %c0_46, %c0_47] : memref<1x18x18x4xf32, #tpu.memory_space<vmem>>, vector<1x8x16x4xf32>
    %59 = vector.shape_cast %58 : vector<1x8x16x4xf32> to vector<8x16x4xf32>
    %c1_i32_48 = arith.constant 1 : i32
    %60 = arith.addi %1, %c1_i32_48 : i32
    %c0_49 = arith.constant 0 : index
    %61 = arith.index_cast %60 : i32 to index
    %c1_50 = arith.constant 1 : index
    %c0_51 = arith.constant 0 : index
    %62 = vector.load %arg3[%c0_49, %61, %c1_50, %c0_51] : memref<1x18x18x4xf32, #tpu.memory_space<vmem>>, vector<1x8x16x4xf32>
    %63 = vector.shape_cast %62 : vector<1x8x16x4xf32> to vector<8x16x4xf32>
    %c1_i32_52 = arith.constant 1 : i32
    %64 = arith.addi %1, %c1_i32_52 : i32
    %c0_53 = arith.constant 0 : index
    %65 = arith.index_cast %64 : i32 to index
    %c2_54 = arith.constant 2 : index
    %c0_55 = arith.constant 0 : index
    %66 = vector.load %arg3[%c0_53, %65, %c2_54, %c0_55] : memref<1x18x18x4xf32, #tpu.memory_space<vmem>>, vector<1x8x16x4xf32>
    %67 = vector.shape_cast %66 : vector<1x8x16x4xf32> to vector<8x16x4xf32>
    %c2_i32_56 = arith.constant 2 : i32
    %68 = arith.addi %1, %c2_i32_56 : i32
    %c0_57 = arith.constant 0 : index
    %69 = arith.index_cast %68 : i32 to index
    %c0_58 = arith.constant 0 : index
    %c0_59 = arith.constant 0 : index
    %70 = vector.load %arg3[%c0_57, %69, %c0_58, %c0_59] : memref<1x18x18x4xf32, #tpu.memory_space<vmem>>, vector<1x8x16x4xf32>
    %71 = vector.shape_cast %70 : vector<1x8x16x4xf32> to vector<8x16x4xf32>
    %c2_i32_60 = arith.constant 2 : i32
    %72 = arith.addi %1, %c2_i32_60 : i32
    %c0_61 = arith.constant 0 : index
    %73 = arith.index_cast %72 : i32 to index
    %c1_62 = arith.constant 1 : index
    %c0_63 = arith.constant 0 : index
    %74 = vector.load %arg3[%c0_61, %73, %c1_62, %c0_63] : memref<1x18x18x4xf32, #tpu.memory_space<vmem>>, vector<1x8x16x4xf32>
    %75 = vector.shape_cast %74 : vector<1x8x16x4xf32> to vector<8x16x4xf32>
    %c2_i32_64 = arith.constant 2 : i32
    %76 = arith.addi %1, %c2_i32_64 : i32
    %c0_65 = arith.constant 0 : index
    %77 = arith.index_cast %76 : i32 to index
    %c2_66 = arith.constant 2 : index
    %c0_67 = arith.constant 0 : index
    %78 = vector.load %arg3[%c0_65, %77, %c2_66, %c0_67] : memref<1x18x18x4xf32, #tpu.memory_space<vmem>>, vector<1x8x16x4xf32>
    %79 = vector.shape_cast %78 : vector<1x8x16x4xf32> to vector<8x16x4xf32>
    %80 = tpu.concatenate %47, %51, %55, %59, %63, %67, %71, %75, %79 in 2 : vector<8x16x4xf32>, vector<8x16x4xf32>, vector<8x16x4xf32>, vector<8x16x4xf32>, vector<8x16x4xf32>, vector<8x16x4xf32>, vector<8x16x4xf32>, vector<8x16x4xf32>, vector<8x16x4xf32> -> vector<8x16x36xf32>
    %81 = vector.shape_cast %80 : vector<8x16x36xf32> to vector<128x36xf32>
    %82 = arith.truncf %81 : vector<128x36xf32> to vector<128x36xbf16>
    %c0_68 = arith.constant 0 : index
    %c0_69 = arith.constant 0 : index
    %83 = vector.load %arg4[%c0_68, %c0_69] : memref<36x4xbf16, #tpu.memory_space<vmem>>, vector<36x4xbf16>
    %cst = arith.constant dense<0.000000e+00> : vector<128x4xf32>
    %84 = tpu.matmul %43, %83, %cst {dimension_numbers = #tpu.dot_dimension_numbers<[1], [0], [0], [1], [0, 0, 1, 1], [], []>} : vector<128x36xbf16>, vector<36x4xbf16>, vector<128x4xf32> -> vector<128x4xf32>
    %c0_70 = arith.constant 0 : index
    %c0_71 = arith.constant 0 : index
    %85 = vector.load %arg5[%c0_70, %c0_71] : memref<1x4xf32, #tpu.memory_space<vmem>>, vector<1x4xf32>
    %86 = vector.broadcast %85 : vector<1x4xf32> to vector<128x4xf32>
    %87 = arith.addf %84, %86 : vector<128x4xf32>
    %c0_72 = arith.constant 0 : index
    %c0_73 = arith.constant 0 : index
    %88 = vector.load %arg6[%c0_72, %c0_73] : memref<36x8xbf16, #tpu.memory_space<vmem>>, vector<36x8xbf16>
    %cst_74 = arith.constant dense<0.000000e+00> : vector<128x8xf32>
    %89 = tpu.matmul %82, %88, %cst_74 {dimension_numbers = #tpu.dot_dimension_numbers<[1], [0], [0], [1], [0, 0, 1, 1], [], []>} : vector<128x36xbf16>, vector<36x8xbf16>, vector<128x8xf32> -> vector<128x8xf32>
    %c0_75 = arith.constant 0 : index
    %c0_76 = arith.constant 0 : index
    %90 = vector.load %arg7[%c0_75, %c0_76] : memref<1x8xf32, #tpu.memory_space<vmem>>, vector<1x8xf32>
    %91 = vector.broadcast %90 : vector<1x8xf32> to vector<128x8xf32>
    %92 = arith.addf %89, %91 : vector<128x8xf32>
    %93 = vector.extract_strided_slice %92 {offsets = [0, 0], sizes = [128, 4], strides = [1, 1]} : vector<128x8xf32> to vector<128x4xf32>
    %94 = vector.extract_strided_slice %92 {offsets = [0, 4], sizes = [128, 4], strides = [1, 1]} : vector<128x8xf32> to vector<128x4xf32>
    %c0_77 = arith.constant 0 : index
    %c0_78 = arith.constant 0 : index
    %c0_79 = arith.constant 0 : index
    %95 = vector.load %arg9[%c0_77, %c0_78, %c0_79] : memref<1x1x4xf32, #tpu.memory_space<vmem>>, vector<1x1x4xf32>
    %96 = vector.shape_cast %95 : vector<1x1x4xf32> to vector<1x4xf32>
    %97 = arith.mulf %87, %87 : vector<128x4xf32>
    %cst_80 = arith.constant dense<0.000000e+00> : vector<4xf32>
    %98 = vector.multi_reduction <add>, %97, %cst_80 [0] : vector<128x4xf32> to vector<4xf32>
    %99 = vector.shape_cast %98 : vector<4xf32> to vector<1x4xf32>
    %100 = arith.addf %96, %99 : vector<1x4xf32>
    %c0_81 = arith.constant 0 : index
    %c0_82 = arith.constant 0 : index
    %c0_83 = arith.constant 0 : index
    %101 = vector.load %arg9[%c0_81, %c0_82, %c0_83] : memref<1x1x4xf32, #tpu.memory_space<vmem>>, vector<1x1x4xf32>
    %102 = vector.shape_cast %101 : vector<1x1x4xf32> to vector<1x4xf32>
    %103 = vector.shape_cast %100 : vector<1x4xf32> to vector<1x1x4xf32>
    tpu.vector_store %arg9[%c0_81, %c0_82, %c0_83], %103 {strides = array<i32>} : memref<1x1x4xf32, #tpu.memory_space<vmem>>, vector<1x1x4xf32>,
    %c0_84 = arith.constant 0 : index
    %c0_85 = arith.constant 0 : index
    %c0_86 = arith.constant 0 : index
    %104 = vector.load %arg10[%c0_84, %c0_85, %c0_86] : memref<1x1x4xf32, #tpu.memory_space<vmem>>, vector<1x1x4xf32>
    %105 = vector.shape_cast %104 : vector<1x1x4xf32> to vector<1x4xf32>
    %106 = arith.mulf %93, %93 : vector<128x4xf32>
    %cst_87 = arith.constant dense<0.000000e+00> : vector<4xf32>
    %107 = vector.multi_reduction <add>, %106, %cst_87 [0] : vector<128x4xf32> to vector<4xf32>
    %108 = vector.shape_cast %107 : vector<4xf32> to vector<1x4xf32>
    %109 = arith.addf %105, %108 : vector<1x4xf32>
    %c0_88 = arith.constant 0 : index
    %c0_89 = arith.constant 0 : index
    %c0_90 = arith.constant 0 : index
    %110 = vector.load %arg10[%c0_88, %c0_89, %c0_90] : memref<1x1x4xf32, #tpu.memory_space<vmem>>, vector<1x1x4xf32>
    %111 = vector.shape_cast %110 : vector<1x1x4xf32> to vector<1x4xf32>
    %112 = vector.shape_cast %109 : vector<1x4xf32> to vector<1x1x4xf32>
    tpu.vector_store %arg10[%c0_88, %c0_89, %c0_90], %112 {strides = array<i32>} : memref<1x1x4xf32, #tpu.memory_space<vmem>>, vector<1x1x4xf32>,
    %c0_91 = arith.constant 0 : index
    %c0_92 = arith.constant 0 : index
    %c0_93 = arith.constant 0 : index
    %113 = vector.load %arg8[%c0_91, %c0_92, %c0_93] : memref<1x4x4xf32, #tpu.memory_space<vmem>>, vector<1x4x4xf32>
    %114 = vector.shape_cast %113 : vector<1x4x4xf32> to vector<4x4xf32>
    %115 = arith.truncf %93 : vector<128x4xf32> to vector<128x4xbf16>
    %116 = arith.truncf %94 : vector<128x4xf32> to vector<128x4xbf16>
    %cst_94 = arith.constant dense<0.000000e+00> : vector<4x4xf32>
    %117 = tpu.matmul %115, %116, %cst_94 {dimension_numbers = #tpu.dot_dimension_numbers<[0], [0], [1], [1], [0, 1, 1, 1], [], []>} : vector<128x4xbf16>, vector<128x4xbf16>, vector<4x4xf32> -> vector<4x4xf32>
    %118 = arith.addf %114, %117 : vector<4x4xf32>
    %c0_95 = arith.constant 0 : index
    %c0_96 = arith.constant 0 : index
    %c0_97 = arith.constant 0 : index
    %119 = vector.load %arg8[%c0_95, %c0_96, %c0_97] : memref<1x4x4xf32, #tpu.memory_space<vmem>>, vector<1x4x4xf32>
    %120 = vector.shape_cast %119 : vector<1x4x4xf32> to vector<4x4xf32>
    %121 = vector.shape_cast %118 : vector<4x4xf32> to vector<1x4x4xf32>
    tpu.vector_store %arg8[%c0_95, %c0_96, %c0_97], %121 {strides = array<i32>} : memref<1x4x4xf32, #tpu.memory_space<vmem>>, vector<1x4x4xf32>,
    return
  }
  func.func @transform_0(%arg0: i32, %arg1: i32) -> (i32, i32, i32, i32) {
    %c0_i32 = arith.constant 0 : i32
    %c0_i32_0 = arith.constant 0 : i32
    %c0_i32_1 = arith.constant 0 : i32
    %c0_i32_2 = arith.constant 0 : i32
    return %arg0, %c0_i32, %c0_i32_0, %c0_i32_1 : i32, i32, i32, i32
  }
  func.func @transform_1(%arg0: i32, %arg1: i32) -> (i32, i32, i32, i32) {
    %c0_i32 = arith.constant 0 : i32
    %c0_i32_0 = arith.constant 0 : i32
    %c0_i32_1 = arith.constant 0 : i32
    %c0_i32_2 = arith.constant 0 : i32
    return %arg0, %c0_i32, %c0_i32_0, %c0_i32_1 : i32, i32, i32, i32
  }
  func.func @transform_2(%arg0: i32, %arg1: i32) -> (i32, i32) {
    %c0_i32 = arith.constant 0 : i32
    %c0_i32_0 = arith.constant 0 : i32
    %c0_i32_1 = arith.constant 0 : i32
    return %c0_i32, %c0_i32_0 : i32, i32
  }
  func.func @transform_3(%arg0: i32, %arg1: i32) -> (i32, i32) {
    %c0_i32 = arith.constant 0 : i32
    %c0_i32_0 = arith.constant 0 : i32
    %c0_i32_1 = arith.constant 0 : i32
    return %c0_i32, %c0_i32_0 : i32, i32
  }
  func.func @transform_4(%arg0: i32, %arg1: i32) -> (i32, i32) {
    %c0_i32 = arith.constant 0 : i32
    %c0_i32_0 = arith.constant 0 : i32
    %c0_i32_1 = arith.constant 0 : i32
    return %c0_i32, %c0_i32_0 : i32, i32
  }
  func.func @transform_5(%arg0: i32, %arg1: i32) -> (i32, i32) {
    %c0_i32 = arith.constant 0 : i32
    %c0_i32_0 = arith.constant 0 : i32
    %c0_i32_1 = arith.constant 0 : i32
    return %c0_i32, %c0_i32_0 : i32, i32
  }
  func.func @transform_6(%arg0: i32, %arg1: i32) -> (i32, i32, i32) {
    %c0_i32 = arith.constant 0 : i32
    %c0_i32_0 = arith.constant 0 : i32
    %c0_i32_1 = arith.constant 0 : i32
    return %arg0, %c0_i32, %c0_i32_0 : i32, i32, i32
  }
  func.func @transform_7(%arg0: i32, %arg1: i32) -> (i32, i32, i32) {
    %c0_i32 = arith.constant 0 : i32
    %c0_i32_0 = arith.constant 0 : i32
    %c0_i32_1 = arith.constant 0 : i32
    return %arg0, %c0_i32, %c0_i32_0 : i32, i32, i32
  }
  func.func @transform_8(%arg0: i32, %arg1: i32) -> (i32, i32, i32) {
    %c0_i32 = arith.constant 0 : i32
    %c0_i32_0 = arith.constant 0 : i32
    %c0_i32_1 = arith.constant 0 : i32
    return %arg0, %c0_i32, %c0_i32_0 : i32, i32, i32
  }
}

module attributes {stable_mosaic.version = 11 : i64} {
  func.func @esam_apply_kernel(%arg0: i32, %arg1: i32, %arg2: memref<1x18x18x4xf32, #tpu.memory_space<vmem>>, %arg3: memref<1x36x4xbf16, #tpu.memory_space<vmem>>, %arg4: memref<1x1x4xf32, #tpu.memory_space<vmem>>, %arg5: memref<1x8x16x4xf32, #tpu.memory_space<vmem>>) attributes {dimension_semantics = [#tpu.dimension_semantics<parallel>, #tpu.dimension_semantics<parallel>], iteration_bounds = array<i64: 2, 2>, scalar_prefetch = 0 : i64, scratch_operands = 0 : i64, tpu.core_type = #tpu.core_type<tc>, window_params = [{transform_indices = @transform_0, window_bounds = array<i64: 1, 18, 18, 4>}, {transform_indices = @transform_1, window_bounds = array<i64: 1, 36, 4>}, {transform_indices = @transform_2, window_bounds = array<i64: 1, 1, 4>}, {transform_indices = @transform_3, window_bounds = array<i64: 1, 8, 16, 4>}]} {
    %c8_i32 = arith.constant 8 : i32
    %0 = arith.muli %arg1, %c8_i32 : i32
    %1 = tpu.assume_multiple %0, 8 : i32
    %c0_i32 = arith.constant 0 : i32
    %2 = arith.addi %1, %c0_i32 : i32
    %c0 = arith.constant 0 : index
    %3 = arith.index_cast %2 : i32 to index
    %c0_0 = arith.constant 0 : index
    %c0_1 = arith.constant 0 : index
    %4 = vector.load %arg2[%c0, %3, %c0_0, %c0_1] : memref<1x18x18x4xf32, #tpu.memory_space<vmem>>, vector<1x8x16x4xf32>
    %5 = vector.shape_cast %4 : vector<1x8x16x4xf32> to vector<8x16x4xf32>
    %c0_i32_2 = arith.constant 0 : i32
    %6 = arith.addi %1, %c0_i32_2 : i32
    %c0_3 = arith.constant 0 : index
    %7 = arith.index_cast %6 : i32 to index
    %c1 = arith.constant 1 : index
    %c0_4 = arith.constant 0 : index
    %8 = vector.load %arg2[%c0_3, %7, %c1, %c0_4] : memref<1x18x18x4xf32, #tpu.memory_space<vmem>>, vector<1x8x16x4xf32>
    %9 = vector.shape_cast %8 : vector<1x8x16x4xf32> to vector<8x16x4xf32>
    %c0_i32_5 = arith.constant 0 : i32
    %10 = arith.addi %1, %c0_i32_5 : i32
    %c0_6 = arith.constant 0 : index
    %11 = arith.index_cast %10 : i32 to index
    %c2 = arith.constant 2 : index
    %c0_7 = arith.constant 0 : index
    %12 = vector.load %arg2[%c0_6, %11, %c2, %c0_7] : memref<1x18x18x4xf32, #tpu.memory_space<vmem>>, vector<1x8x16x4xf32>
    %13 = vector.shape_cast %12 : vector<1x8x16x4xf32> to vector<8x16x4xf32>
    %c1_i32 = arith.constant 1 : i32
    %14 = arith.addi %1, %c1_i32 : i32
    %c0_8 = arith.constant 0 : index
    %15 = arith.index_cast %14 : i32 to index
    %c0_9 = arith.constant 0 : index
    %c0_10 = arith.constant 0 : index
    %16 = vector.load %arg2[%c0_8, %15, %c0_9, %c0_10] : memref<1x18x18x4xf32, #tpu.memory_space<vmem>>, vector<1x8x16x4xf32>
    %17 = vector.shape_cast %16 : vector<1x8x16x4xf32> to vector<8x16x4xf32>
    %c1_i32_11 = arith.constant 1 : i32
    %18 = arith.addi %1, %c1_i32_11 : i32
    %c0_12 = arith.constant 0 : index
    %19 = arith.index_cast %18 : i32 to index
    %c1_13 = arith.constant 1 : index
    %c0_14 = arith.constant 0 : index
    %20 = vector.load %arg2[%c0_12, %19, %c1_13, %c0_14] : memref<1x18x18x4xf32, #tpu.memory_space<vmem>>, vector<1x8x16x4xf32>
    %21 = vector.shape_cast %20 : vector<1x8x16x4xf32> to vector<8x16x4xf32>
    %c1_i32_15 = arith.constant 1 : i32
    %22 = arith.addi %1, %c1_i32_15 : i32
    %c0_16 = arith.constant 0 : index
    %23 = arith.index_cast %22 : i32 to index
    %c2_17 = arith.constant 2 : index
    %c0_18 = arith.constant 0 : index
    %24 = vector.load %arg2[%c0_16, %23, %c2_17, %c0_18] : memref<1x18x18x4xf32, #tpu.memory_space<vmem>>, vector<1x8x16x4xf32>
    %25 = vector.shape_cast %24 : vector<1x8x16x4xf32> to vector<8x16x4xf32>
    %c2_i32 = arith.constant 2 : i32
    %26 = arith.addi %1, %c2_i32 : i32
    %c0_19 = arith.constant 0 : index
    %27 = arith.index_cast %26 : i32 to index
    %c0_20 = arith.constant 0 : index
    %c0_21 = arith.constant 0 : index
    %28 = vector.load %arg2[%c0_19, %27, %c0_20, %c0_21] : memref<1x18x18x4xf32, #tpu.memory_space<vmem>>, vector<1x8x16x4xf32>
    %29 = vector.shape_cast %28 : vector<1x8x16x4xf32> to vector<8x16x4xf32>
    %c2_i32_22 = arith.constant 2 : i32
    %30 = arith.addi %1, %c2_i32_22 : i32
    %c0_23 = arith.constant 0 : index
    %31 = arith.index_cast %30 : i32 to index
    %c1_24 = arith.constant 1 : index
    %c0_25 = arith.constant 0 : index
    %32 = vector.load %arg2[%c0_23, %31, %c1_24, %c0_25] : memref<1x18x18x4xf32, #tpu.memory_space<vmem>>, vector<1x8x16x4xf32>
    %33 = vector.shape_cast %32 : vector<1x8x16x4xf32> to vector<8x16x4xf32>
    %c2_i32_26 = arith.constant 2 : i32
    %34 = arith.addi %1, %c2_i32_26 : i32
    %c0_27 = arith.constant 0 : index
    %35 = arith.index_cast %34 : i32 to index
    %c2_28 = arith.constant 2 : index
    %c0_29 = arith.constant 0 : index
    %36 = vector.load %arg2[%c0_27, %35, %c2_28, %c0_29] : memref<1x18x18x4xf32, #tpu.memory_space<vmem>>, vector<1x8x16x4xf32>
    %37 = vector.shape_cast %36 : vector<1x8x16x4xf32> to vector<8x16x4xf32>
    %38 = tpu.concatenate %5, %9, %13, %17, %21, %25, %29, %33, %37 in 2 : vector<8x16x4xf32>, vector<8x16x4xf32>, vector<8x16x4xf32>, vector<8x16x4xf32>, vector<8x16x4xf32>, vector<8x16x4xf32>, vector<8x16x4xf32>, vector<8x16x4xf32>, vector<8x16x4xf32> -> vector<8x16x36xf32>
    %39 = vector.shape_cast %38 : vector<8x16x36xf32> to vector<128x36xf32>
    %40 = arith.truncf %39 : vector<128x36xf32> to vector<128x36xbf16>
    %c0_30 = arith.constant 0 : index
    %c0_31 = arith.constant 0 : index
    %c0_32 = arith.constant 0 : index
    %41 = vector.load %arg3[%c0_30, %c0_31, %c0_32] : memref<1x36x4xbf16, #tpu.memory_space<vmem>>, vector<1x36x4xbf16>
    %42 = vector.shape_cast %41 : vector<1x36x4xbf16> to vector<36x4xbf16>
    %cst = arith.constant dense<0.000000e+00> : vector<128x4xf32>
    %43 = tpu.matmul %40, %42, %cst {dimension_numbers = #tpu.dot_dimension_numbers<[1], [0], [0], [1], [0, 0, 1, 1], [], []>} : vector<128x36xbf16>, vector<36x4xbf16>, vector<128x4xf32> -> vector<128x4xf32>
    %c0_33 = arith.constant 0 : index
    %c0_34 = arith.constant 0 : index
    %c0_35 = arith.constant 0 : index
    %44 = vector.load %arg4[%c0_33, %c0_34, %c0_35] : memref<1x1x4xf32, #tpu.memory_space<vmem>>, vector<1x1x4xf32>
    %45 = vector.shape_cast %44 : vector<1x1x4xf32> to vector<1x4xf32>
    %46 = vector.broadcast %45 : vector<1x4xf32> to vector<128x4xf32>
    %47 = arith.addf %43, %46 : vector<128x4xf32>
    %c1_i32_36 = arith.constant 1 : i32
    %48 = arith.addi %1, %c1_i32_36 : i32
    %c0_37 = arith.constant 0 : index
    %49 = arith.index_cast %48 : i32 to index
    %c1_38 = arith.constant 1 : index
    %c0_39 = arith.constant 0 : index
    %50 = vector.load %arg2[%c0_37, %49, %c1_38, %c0_39] : memref<1x18x18x4xf32, #tpu.memory_space<vmem>>, vector<1x8x16x4xf32>
    %51 = vector.shape_cast %50 : vector<1x8x16x4xf32> to vector<8x16x4xf32>
    %52 = vector.shape_cast %47 : vector<128x4xf32> to vector<8x16x4xf32>
    %53 = arith.addf %52, %51 : vector<8x16x4xf32>
    %c0_40 = arith.constant 0 : index
    %c0_41 = arith.constant 0 : index
    %c0_42 = arith.constant 0 : index
    %c0_43 = arith.constant 0 : index
    %54 = vector.load %arg5[%c0_40, %c0_41, %c0_42, %c0_43] : memref<1x8x16x4xf32, #tpu.memory_space<vmem>>, vector<1x8x16x4xf32>
    %55 = vector.shape_cast %54 : vector<1x8x16x4xf32> to vector<8x16x4xf32>
    %56 = vector.shape_cast %53 : vector<8x16x4xf32> to vector<1x8x16x4xf32>
    tpu.vector_store %arg5[%c0_40, %c0_41, %c0_42, %c0_43], %56 {strides = array<i32>} : memref<1x8x16x4xf32, #tpu.memory_space<vmem>>, vector<1x8x16x4xf32>,
    return
  }
  func.func @transform_0(%arg0: i32, %arg1: i32) -> (i32, i32, i32, i32) {
    %c0_i32 = arith.constant 0 : i32
    %c0_i32_0 = arith.constant 0 : i32
    %c0_i32_1 = arith.constant 0 : i32
    %c0_i32_2 = arith.constant 0 : i32
    return %arg0, %c0_i32, %c0_i32_0, %c0_i32_1 : i32, i32, i32, i32
  }
  func.func @transform_1(%arg0: i32, %arg1: i32) -> (i32, i32, i32) {
    %c0_i32 = arith.constant 0 : i32
    %c0_i32_0 = arith.constant 0 : i32
    %c0_i32_1 = arith.constant 0 : i32
    return %arg0, %c0_i32, %c0_i32_0 : i32, i32, i32
  }
  func.func @transform_2(%arg0: i32, %arg1: i32) -> (i32, i32, i32) {
    %c0_i32 = arith.constant 0 : i32
    %c0_i32_0 = arith.constant 0 : i32
    %c0_i32_1 = arith.constant 0 : i32
    return %arg0, %c0_i32, %c0_i32_0 : i32, i32, i32
  }
  func.func @transform_3(%arg0: i32, %arg1: i32) -> (i32, i32, i32, i32) {
    %c0_i32 = arith.constant 0 : i32
    %c0_i32_0 = arith.constant 0 : i32
    %c0_i32_1 = arith.constant 0 : i32
    return %arg0, %arg1, %c0_i32, %c0_i32_0 : i32, i32, i32, i32
  }
}

</mosaic_0001>

<bundles_post_ra>
// kernel: esam_forward.3
= control target key start
LH: loop header
LB: loop body
LE: loop exit
PB: predicated region body
PF: predicated region fallthrough
CT: control target
= control target key end

     0   :  { %s1961_s12 = smov 0   ;;  %s1963_s13 = smov 0   ;;  %s2595_s0 = inlined_call_operand.vmem [shape: f32[2,18,18,4], index: 0, kind: input, shape index: {}]   ;;  %s2596_s1 = inlined_call_operand.vmem [shape: bf16[2,36,4], index: 1, kind: input, shape index: {}]   ;;  %s2597_s2 = inlined_call_operand.vmem [shape: f32[2,1,4], index: 2, kind: input, shape index: {}]   ;;  %s2598_s3 = inlined_call_operand.vmem [shape: f32[2,16,16,4], index: 3, kind: output, shape index: {}]  }
   0x1   :  { %s1965_s14 = smov 0   ;;  %s1967_s15 = smov 0  }
   0x2   :  { %s1969_s16 = smov 0  }
   0x3 LB: > { %s22_s17 = sadd.s32 1, %s1923_s14  ;;  %s25_s18 = sadd.s32 1, %s1927_s15  ;;  %s1931_s16 = sphi %s1969_s16, %s13_s16   ;;  %s1927_s15 = sphi %s1967_s15, %s2602_s15   ;;  %s1923_s14 = sphi %s1965_s14, %s2601_s14   ;;  %s1919_s13 = sphi %s1963_s13, %s2600_s13   ;;  %s1915_s12 = sphi %s1961_s12, %s2599_s12  }
   0x4   : > { %p23_p0 = scmp.ge.s32.totalorder %s22_s17, 2  ;;  %p1350_p1 = scmp.ge.s32.totalorder %s1931_s16, 1 }
   0x5   : > { %p169_p2 = scmp.lt.s32.totalorder %s1931_s16, 5 }
   0x6   : > { %s2604_s17 = smov (%p23_p0, %s22_s17), 0  ;;  %s2606_s18 = smov (!%p23_p0, %s25_s18), %s1927_s15 }
   0x7   : > { %p170_p3 = pnand %p1350_p1, %p169_p2  ;;  %p27_p4 = scmp.ge.s32.totalorder %s2606_s18, 2 }
   0x8   : > { %p206_p5 = scmp.lt.s32.totalorder (!%p170_p3), %s1919_s13, 1  ;;  %s1358_s19 = smul.u32 (!%p170_p3), 192, %s1915_s12  ;;  %vm1092_vm0 = vcmask (!%p170_p3), 1041408   ;;  %vm896_vm1 = vcmask (!%p170_p3), 31744   ;;  %vm913_vm2 = vcmask (!%p170_p3), 64512   ;;  %vm930_vm3 = vcmask (!%p170_p3), 97280  }
   0x9   : > { %s2608_s18 = smov (%p27_p4, %s2606_s18), 0  ;;  %173 = sbr.rel (%p170_p3) target bundleno = 489 (0x1e9), region = 32 }
   0xa   : > { %s1933_s25 = smov (!%p170_p3), 4   ;;  %s1934_s26 = smov (!%p170_p3), 8   ;;  %vm947_vm4 = vcmask (!%p170_p3), 130048   ;;  %vm964_vm5 = vcmask (!%p170_p3), 162816   ;;  %vm981_vm6 = vcmask (!%p170_p3), 195584   ;;  %vm998_vm7 = vcmask (!%p170_p3), 228352  }
   0xb   : > { %s1935_s27 = smov (!%p170_p3), 12   ;;  %s1936_s28 = smov (!%p170_p3), 16   ;;  %vm1015_vm8 = vcmask (!%p170_p3), 261120   ;;  %vm1067_vm9 = vcmask (!%p170_p3), 293888  }
   0xc   : > { %s1937_s29 = smov (!%p170_p3), 20   ;;  %s1938_s30 = smov (!%p170_p3), 24  }
   0xd   : > { %s1939_s8 = smov (!%p170_p3), 28   ;;  %s1940_s9 = smov (!%p170_p3), 32  }
   0xe   : > { %s1353_s10 = sshll.u32 (!%p170_p3), %s1915_s12, 3 }
   0xf   : > { %p222_p6 = scmp.lt.s32.totalorder (!%p170_p3), %s1353_s10, 15 }
  0x10   : > { %s2610_s13 = smov (!%p206_p5, %s1919_s13), 1 }
  0x11   : > { %s1514_s20 = smul.u32 432, %s2610_s13  ;;  %s2612_s10 = smov (!%p222_p6, %s1353_s10), 15 }
  0x12   : > { %s1515_s4 = smul.u32 20, %s2610_s13  ;;  %s1354_s11 = sshll.u32 %s2612_s10, 1 }
  0x13   : > { %s210_s23 = scalar_lea.vmem %s2595_s0, %s1514_s20  ;;  %s218_s22 = scalar_lea.vmem %s2597_s2, %s2610_s13 }
  0x14   : > { %s2000_s24 = scalar_lea.vmem %s210_s23, %s1358_s19  ;;  %s215_s7 = scalar_lea.vmem %s2596_s1, %s1515_s4 }
  0x15   : > { %v252_v0 = vld [vmem:[%s2000_s24 + $0x19] sm:$0xff]  ;;  %v253_v1 = vld [vmem:[%s2000_s24 + $0x21] sm:$0xff]  ;;  %v251_v4 = vld [vmem:[%s2000_s24 + $0x9] sm:$0xff]  ;;  %s1355_s19 = sshll.u32 %s2610_s13, 5 }
  0x16   : > { %v250_v2 = vld [vmem:[%s2000_s24 + $0x1] sm:$0xff]  ;;  %v1574_v3 = vpack.i.bf16 %v253_v1, %v252_v0  ;;  %v260_v5 = vld [vmem:[%s2000_s24 + $0x79] sm:$0xff]  ;;  %v259_v9 = vld [vmem:[%s2000_s24 + $0x69] sm:$0xff]  ;;  %s226_s23 = sadd.s32 %s1355_s19, %s1354_s11 }
  0x17   : > { %v261_v6 = vld [vmem:[%s2000_s24 + $0x81] sm:$0xff]  ;;  %v1564_v7 = vpack.i.bf16 %v251_v4, %v250_v2  ;;  %v275_v13 = vld [vmem:[%s2000_s24 + $0x6a] sm:$0xff]  ;;  %v2036_v24 = vld [vmem:[%s2000_s24 + $0x78] sm:$0xff] }
  0x18   : > { %v258_v8 = vld [vmem:[%s2000_s24 + $0x61] sm:$0xff]  ;;  %1575 = vrot.lane.b32.xlu1 %v1574_v3, %s1933_s25  ;;  %v2011_v10 = vpack.i.bf16 %v261_v6, %v260_v5  ;;  %v267_v15 = vld [vmem:[%s2000_s24 + $0xa] sm:$0xff]  ;;  %v2042_v26 = vld [vmem:[%s2000_s24 + $0x18] sm:$0xff] }
  0x19   : > { %1565 = vrot.lane.b32.xlu0 %v1564_v7, %s1933_s25  ;;  %v2014_v11 = vpack.i.bf16 %v259_v9, %v258_v8  ;;  %v274_v12 = vld [vmem:[%s2000_s24 + $0x62] sm:$0xff]  ;;  %v276_v18 = vld [vmem:[%s2000_s24 + $0x7a] sm:$0xff]  ;;  %v2057_v30 = vld [vmem:[%s2000_s24 + $0x90] sm:$0xff] }
  0x1a   : > { %v266_v14 = vld [vmem:[%s2000_s24 + $0x2] sm:$0xff]  ;;  %v2022_v16 = vpack.i.bf16 %v275_v13, %v274_v12  ;;  %v268_v20 = vld [vmem:[%s2000_s24 + $0x1a] sm:$0xff]  ;;  %v2063_v32 = vld [vmem:[%s2000_s24 + $0x30] sm:$0xff] }
  0x1b   : > { %v1584_v17 = vpack.i.bf16 %v267_v15, %v266_v14  ;;  %v277_v19 = vld [vmem:[%s2000_s24 + $0x82] sm:$0xff]  ;;  %v2060_v31 = vld [vmem:[%s2000_s24 + $0x98] sm:$0xff]  ;;  %v2117_v49 = vld [vmem:[%s2000_s24 + $0xb0] sm:$0xff] }
  0x1c   : > { %1580 = vrot.lane.b32.xlu1 %v2011_v10, %s1933_s25  ;;  %v269_v21 = vld [vmem:[%s2000_s24 + $0x22] sm:$0xff]  ;;  %v2032_v22 = vpack.i.bf16 %v277_v19, %v276_v18  ;;  %v2066_v33 = vld [vmem:[%s2000_s24 + $0x38] sm:$0xff]  ;;  %v1619_v34 = vpack.i.bf16 %v2060_v31, %v2057_v30  ;;  %v2123_v51 = vld [vmem:[%s2000_s24 + $0x50] sm:$0xff] }
  0x1d   : > { %1570 = vrot.lane.b32.xlu0 %v2014_v11, %s1933_s25  ;;  %v1594_v23 = vpack.i.bf16 %v269_v21, %v268_v20  ;;  %v2039_v25 = vld [vmem:[%s2000_s24 + $0x80] sm:$0xff]  ;;  %v1614_v35 = vpack.i.bf16 %v2066_v33, %v2063_v32  ;;  %v2078_v36 = vld [vmem:[%s2000_s24 + $0x91] sm:$0xff]  ;;  %v2114_v48 = vld [vmem:[%s2000_s24 + $0xa8] sm:$0xff] }
  0x1e   : > { %v2045_v27 = vld [vmem:[%s2000_s24 + $0x20] sm:$0xff]  ;;  %v2051_v28 = vpack.i.bf16 %v2039_v25, %v2036_v24  ;;  %v2084_v38 = vld [vmem:[%s2000_s24 + $0x31] sm:$0xff]  ;;  %v2120_v50 = vld [vmem:[%s2000_s24 + $0x48] sm:$0xff]  ;;  %v1679_v52 = vpack.i.bf16 %v2117_v49, %v2114_v48 }
  0x1f   : > { %v1604_v29 = vpack.i.bf16 %v2045_v27, %v2042_v26  ;;  %v2081_v37 = vld [vmem:[%s2000_s24 + $0x99] sm:$0xff]  ;;  %v1674_v53 = vpack.i.bf16 %v2123_v51, %v2120_v50  ;;  %v2138_v55 = vld [vmem:[%s2000_s24 + $0xa9] sm:$0xff]  ;;  %v2141_v56 = vld [vmem:[%s2000_s24 + $0xb1] sm:$0xff] }
  0x20   : > { %1590 = vrot.lane.b32.xlu1 %v2022_v16, %s1934_s26  ;;  %v2087_v39 = vld [vmem:[%s2000_s24 + $0x39] sm:$0xff]  ;;  %v2093_v40 = vpack.i.bf16 %v2081_v37, %v2078_v36  ;;  %v2144_v57 = vld [vmem:[%s2000_s24 + $0x49] sm:$0xff]  ;;  %v2147_v58 = vld [vmem:[%s2000_s24 + $0x51] sm:$0xff]  ;;  %v1699_v60 = vpack.i.bf16 %v2141_v56, %v2138_v55 }
  0x21   : > { %1585 = vrot.lane.b32.xlu0 %v1584_v17, %s1934_s26  ;;  %v2098_v41 = vpack.i.bf16 %v2087_v39, %v2084_v38  ;;  %v1403_v42 = vld [vmem:[%s2000_s24 + $0x92] sm:$0xff]  ;;  %v1404_v43 = vld [vmem:[%s2000_s24 + $0x9a] sm:$0xff]  ;;  %v1885_v59 = vld [vmem:[%s215_s7 + $0x8] sm:$0xff]   ;;  %v1694_v61 = vpack.i.bf16 %v2147_v58, %v2144_v57 }
  0x22   : > { %v1395_v44 = vld [vmem:[%s2000_s24 + $0x32] sm:$0xff]  ;;  %v1396_v45 = vld [vmem:[%s2000_s24 + $0x3a] sm:$0xff]  ;;  %v1659_v46 = vpack.i.bf16 %v1404_v43, %v1403_v42  ;;  %v1886_v62 = vld [vmem:[%s215_s7 + $0x10] ss:$0 sps:$4 sm:$0x33]  }
  0x23   : > { %v1654_v47 = vpack.i.bf16 %v1396_v45, %v1395_v44  ;;  %v1884_v54 = vld [vmem:[%s215_s7] sm:$0xff]   ;;  %v1094_v63 = vsel %vm1092_vm0, %v1886_v62, 0  ;;  %v1453_v0 = vld [vmem:[%s2000_s24 + $0xaa] sm:$0xff]  ;;  %v1454_v1 = vld [vmem:[%s2000_s24 + $0xb2] sm:$0xff] }
  0x24   : > { %1600 = vrot.lane.b32.xlu1 %v2032_v22, %s1934_s26  ;;  %1484 = vmatprep.subr.bf16.mxu0 %v1884_v54  ;;  %v1445_v2 = vld [vmem:[%s2000_s24 + $0x4a] sm:$0xff]  ;;  %v1729_v4 = vpack.i.bf16 %v1454_v1, %v1453_v0  ;;  %v1375_v6 = vld [vmem:[%s2000_s24 + $0xc0] sm:$0xff]  ;;  %v1425_v21 = vld [vmem:[%s2000_s24 + $0xd8] sm:$0xff] }
  0x25   : > { %1595 = vrot.lane.b32.xlu0 %v1594_v23, %s1934_s26  ;;  %1506 = vmatprep.subr.bf16.mxu1 %v1884_v54  ;;  %v1376_v7 = vld [vmem:[%s2000_s24 + $0xc8] sm:$0xff]  ;;  %v2180_v8 = vld [vmem:[%s2000_s24 + $0x60] sm:$0xff] }
  0x26   : > { %1485 = vmatpush3.bf16.msra.mxu0 %v1884_v54  ;;  %1509 = vmatpush3.bf16.msra.mxu1 %v1884_v54  ;;  %v2183_v9 = vld [vmem:[%s2000_s24 + $0x68] sm:$0xff]  ;;  %v1779_v12 = vpack.i.bf16 %v1376_v7, %v1375_v6  ;;  %v1457_v43 = vld [vmem:[%s2000_s24 + $0xda] sm:$0xff] }
  0x27   : > { %1486 = vmatprep.subr.bf16.mxu0 %v1885_v59  ;;  %1507 = vmatprep.subr.bf16.mxu1 %v1885_v59  ;;  %v1774_v13 = vpack.i.bf16 %v2183_v9, %v2180_v8  ;;  %v2192_v14 = vld [vmem:[%s2000_s24 + $0xc1] sm:$0xff]  ;;  %v2195_v15 = vld [vmem:[%s2000_s24 + $0xc9] sm:$0xff] }
  0x28   : > { %1610 = vrot.lane.b32.xlu1 %v2051_v28, %s1935_s27  ;;  %v1799_v17 = vpack.i.bf16 %v2195_v15, %v2192_v14  ;;  %v1407_v18 = vld [vmem:[%s2000_s24 + $0xc2] sm:$0xff]  ;;  %v1408_v19 = vld [vmem:[%s2000_s24 + $0xca] sm:$0xff] }
  0x29   : > { %1605 = vrot.lane.b32.xlu0 %v1604_v29, %s1935_s27  ;;  %v1819_v20 = vpack.i.bf16 %v1408_v19, %v1407_v18  ;;  %v1458_v44 = vld [vmem:[%s2000_s24 + $0xe2] sm:$0xff] }
  0x2a   : > { %1487 = vmatpush3.bf16.msra.mxu0 %v1885_v59  ;;  %1510 = vmatpush3.bf16.msra.mxu1 %v1885_v59  ;;  %v235_v6 = vld [vmem:[%s2000_s24 + $0x8] sm:$0xff] }
  0x2b   : > { %1512 = vmatprep.subr.msk.bf16.mxu0 %vm1092_vm0, %v1886_v62  ;;  %1513 = vmatprep.subr.msk.bf16.mxu1 %vm1092_vm0, %v1886_v62 }
  0x2c   : > { %1620 = vrot.lane.b32.xlu1 %v1619_v34, %s1935_s27 }
  0x2d   : > { %1615 = vrot.lane.b32.xlu0 %v1614_v35, %s1935_s27 }
  0x2e   : > { %1489 = vmatpush3.bf16.msra.mxu0 %v1094_v63  ;;  %1511 = vmatpush3.bf16.msra.mxu1 %v1094_v63 }
  0x30   : > { %1630 = vrot.lane.b32.xlu1 %v2011_v10, %s1936_s28 }
  0x31   : > { %1625 = vrot.lane.b32.xlu0 %v1574_v3, %s1936_s28  ;;  %v1446_v3 = vld [vmem:[%s2000_s24 + $0x52] sm:$0xff] }
  0x32   : > { %v1724_v5 = vpack.i.bf16 %v1446_v3, %v1445_v2 }
  0x34   : > { %1640 = vrot.lane.b32.xlu1 %v2093_v40, %s1936_s28 }
  0x35   : > { %1635 = vrot.lane.b32.xlu0 %v2098_v41, %s1936_s28 }
  0x38   : > { %1650 = vrot.lane.b32.xlu1 %v2032_v22, %s1937_s29 }
  0x39   : > { %1645 = vrot.lane.b32.xlu0 %v1594_v23, %s1937_s29  ;;  %v1426_v23 = vld [vmem:[%s2000_s24 + $0xe0] sm:$0xff] }
  0x3a   : > { %v1839_v29 = vpack.i.bf16 %v1426_v23, %v1425_v21 }
  0x3c   : > { %1660 = vrot.lane.b32.xlu1 %v1659_v46, %s1937_s29 }
  0x3d   : > { %1655 = vrot.lane.b32.xlu0 %v1654_v47, %s1937_s29 }
  0x40   : > { %1670 = vrot.lane.b32.xlu1 %v1619_v34, %s1938_s30  ;;  %v1441_v34 = vld [vmem:[%s2000_s24 + $0xd9] sm:$0xff] }
  0x41   : > { %1665 = vrot.lane.b32.xlu0 %v1614_v35, %s1938_s30  ;;  %v1442_v35 = vld [vmem:[%s2000_s24 + $0xe1] sm:$0xff] }
  0x44   : > { %1680 = vrot.lane.b32.xlu1 %v1679_v52, %s1938_s30 }
  0x45   : > { %1675 = vrot.lane.b32.xlu0 %v1674_v53, %s1938_s30 }
  0x48   : > { %1690 = vrot.lane.b32.xlu1 %v2093_v40, %s1939_s8 }
  0x49   : > { %1685 = vrot.lane.b32.xlu0 %v2098_v41, %s1939_s8 }
  0x4c   : > { %1700 = vrot.lane.b32.xlu1 %v1699_v60, %s1939_s8 }
  0x4d   : > { %1695 = vrot.lane.b32.xlu0 %v1694_v61, %s1939_s8 }
  0x50   : > { %1710 = vrot.lane.b32.xlu1 %v1659_v46, %s1940_s9 }
  0x51   : > { %1705 = vrot.lane.b32.xlu0 %v1654_v47, %s1940_s9 }
  0x54   : > { %1720 = vrot.lane.b32.xlu1 %v2093_v40, %s1933_s25  ;;  %v1859_v40 = vpack.i.bf16 %v1442_v35, %v1441_v34 }
  0x55   : > { %1715 = vrot.lane.b32.xlu0 %v2098_v41, %s1933_s25 }
  0x58   : > { %1730 = vrot.lane.b32.xlu1 %v1729_v4, %s1940_s9 }
  0x59   : > { %1725 = vrot.lane.b32.xlu0 %v1724_v5, %s1940_s9 }
  0x5c   : > { %1740 = vrot.lane.b32.xlu1 %v1699_v60, %s1933_s25 }
  0x5d   : > { %1735 = vrot.lane.b32.xlu0 %v1694_v61, %s1933_s25  ;;  %s1356_s25 = sshll.u32 %s226_s23, 3 }
  0x5e   : > { %s2530_s12 = scalar_lea.vmem %s2598_s3, %s1356_s25 }
  0x60   : > { %1750 = vrot.lane.b32.xlu1 %v1659_v46, %s1934_s26 }
  0x61   : > { %1745 = vrot.lane.b32.xlu0 %v1654_v47, %s1934_s26 }
  0x64   : > { %1760 = vrot.lane.b32.xlu1 %v1729_v4, %s1934_s26 }
  0x65   : > { %1755 = vrot.lane.b32.xlu0 %v1724_v5, %s1934_s26 }
  0x68   : > { %1770 = vrot.lane.b32.xlu1 %v1679_v52, %s1935_s27 }
  0x69   : > { %1765 = vrot.lane.b32.xlu0 %v1674_v53, %s1935_s27 }
  0x6c   : > { %1780 = vrot.lane.b32.xlu1 %v1779_v12, %s1935_s27 }
  0x6d   : > { %1775 = vrot.lane.b32.xlu0 %v1774_v13, %s1935_s27 }
  0x70   : > { %1790 = vrot.lane.b32.xlu1 %v1699_v60, %s1936_s28 }
  0x71   : > { %1785 = vrot.lane.b32.xlu0 %v1694_v61, %s1936_s28 }
  0x74   : > { %1800 = vrot.lane.b32.xlu1 %v1799_v17, %s1936_s28 }
  0x75   : > { %1795 = vrot.lane.b32.xlu0 %v2014_v11, %s1936_s28 }
  0x78   : > { %1810 = vrot.lane.b32.xlu1 %v1729_v4, %s1937_s29 }
  0x79   : > { %1805 = vrot.lane.b32.xlu0 %v1724_v5, %s1937_s29  ;;  %v234_v5 = vld [vmem:[%s2000_s24] sm:$0xff] }
  0x7c   : > { %1820 = vrot.lane.b32.xlu1 %v1819_v20, %s1937_s29 }
  0x7d   : > { %1815 = vrot.lane.b32.xlu0 %v2022_v16, %s1937_s29 }
  0x80   : > { %1830 = vrot.lane.b32.xlu1 %v1779_v12, %s1938_s30 }
  0x81   : > { %1825 = vrot.lane.b32.xlu0 %v1774_v13, %s1938_s30 }
  0x84   : > { %1840 = vrot.lane.b32.xlu1 %v1839_v29, %s1938_s30 }
  0x85   : > { %1835 = vrot.lane.b32.xlu0 %v2051_v28, %s1938_s30  ;;  %v1879_v28 = vpack.i.bf16 %v1458_v44, %v1457_v43 }
  0x88   : > { %1850 = vrot.lane.b32.xlu1 %v1799_v17, %s1939_s8 }
  0x89   : > { %1845 = vrot.lane.b32.xlu0 %v2014_v11, %s1939_s8 }
  0x8a   : > { %v1576_v41 = vpop.permute.xlu1 %1575 }
  0x8b   : > { %v1566_v42 = vpop.permute.xlu0 %1565  ;;  %v1577_v1 = vunpack.i.l.bf16 %v1576_v41  ;;  %v1578_v2 = vunpack.i.h.bf16 %v1576_v41 }
  0x8c   : > { %1860 = vrot.lane.b32.xlu1 %v1859_v40, %s1939_s8  ;;  %v1568_v3 = vunpack.i.h.bf16 %v1566_v42  ;;  %v1567_v4 = vunpack.i.l.bf16 %v1566_v42 }
  0x8d   : > { %1855 = vrot.lane.b32.xlu0 %v2011_v10, %s1939_s8  ;;  %v900_v34 = vsel %vm896_vm1, %v2045_v27, %v1578_v2 }
  0x8e   : > { %v1581_v45 = vpop.permute.xlu1 %1580  ;;  %v897_v35 = vsel %vm896_vm1, %v234_v5, %v1567_v4  ;;  %v898_v40 = vsel %vm896_vm1, %v235_v6, %v1568_v3 }
  0x8f   : > { %v1571_v46 = vpop.permute.xlu0 %1570  ;;  %v1583_v7 = vunpack.i.h.bf16 %v1581_v45  ;;  %v1582_v12 = vunpack.i.l.bf16 %v1581_v45 }
  0x90   : > { %1870 = vrot.lane.b32.xlu1 %v1819_v20, %s1940_s9  ;;  %v1572_v13 = vunpack.i.l.bf16 %v1571_v46  ;;  %v1573_v18 = vunpack.i.h.bf16 %v1571_v46  ;;  %v899_v20 = vsel %vm896_vm1, %v2042_v26, %v1577_v1 }
  0x91   : > { %1865 = vrot.lane.b32.xlu0 %v2022_v16, %s1940_s9  ;;  %v907_v42 = vsel %vm896_vm1, %v2036_v24, %v1582_v12  ;;  %v908_v43 = vsel %vm896_vm1, %v2039_v25, %v1583_v7 }
  0x92   : > { %v1591_v47 = vpop.permute.xlu1 %1590  ;;  %v905_v26 = vsel %vm896_vm1, %v2180_v8, %v1572_v13  ;;  %v906_v27 = vsel %vm896_vm1, %v2183_v9, %v1573_v18 }
  0x93   : > { %v1586_v52 = vpop.permute.xlu0 %1585  ;;  %v1593_v21 = vunpack.i.h.bf16 %v1591_v47  ;;  %v1592_v23 = vunpack.i.l.bf16 %v1591_v47 }
  0x94   : > { %1880 = vrot.lane.b32.xlu1 %v1879_v28, %s1940_s9  ;;  %v1587_v29 = vunpack.i.l.bf16 %v1586_v52  ;;  %v1588_v41 = vunpack.i.h.bf16 %v1586_v52 }
  0x95   : > { %1875 = vrot.lane.b32.xlu0 %v2032_v22, %s1940_s9  ;;  %v922_v24 = vsel %vm913_vm2, %v905_v26, %v1592_v23  ;;  %v923_v25 = vsel %vm913_vm2, %v906_v27, %v1593_v21 }
  0x96   : > { %v1601_v11 = vpop.permute.xlu1 %1600  ;;  %v914_v1 = vsel %vm913_vm2, %v897_v35, %v1587_v29  ;;  %v915_v2 = vsel %vm913_vm2, %v898_v40, %v1588_v41 }
  0x97   : > { %v2234_v53 = vpop.permute.xlu0 %1595  ;;  %v1602_v44 = vunpack.i.l.bf16 %v1601_v11  ;;  %v1603_v46 = vunpack.i.h.bf16 %v1601_v11 }
  0x98   : > { %v1598_v28 = vunpack.i.h.bf16 %v2234_v53  ;;  %v1597_v47 = vunpack.i.l.bf16 %v2234_v53 }
  0x99   : > { %v924_v53 = vsel %vm913_vm2, %v907_v42, %v1602_v44  ;;  %v925_v12 = vsel %vm913_vm2, %v908_v43, %v1603_v46 }
  0x9a   : > { %v2236_v10 = vpop.permute.xlu1 %1610  ;;  %v916_v13 = vsel %vm913_vm2, %v899_v20, %v1597_v47 }
  0x9b   : > { %v2238_v54 = vpop.permute.xlu0 %1605  ;;  %v1612_v8 = vunpack.i.l.bf16 %v2236_v10  ;;  %v1613_v9 = vunpack.i.h.bf16 %v2236_v10  ;;  %v917_v10 = vsel %vm913_vm2, %v900_v34, %v1598_v28 }
  0x9c   : > { %v1608_v11 = vunpack.i.h.bf16 %v2238_v54  ;;  %v1607_v3 = vunpack.i.l.bf16 %v2238_v54 }
  0x9d   : > { %v939_v21 = vsel %vm930_vm3, %v922_v24, %v1612_v8  ;;  %v940_v35 = vsel %vm930_vm3, %v923_v25, %v1613_v9 }
  0x9e   : > { %v2240_v59 = vpop.permute.xlu1 %1620  ;;  %v931_v40 = vsel %vm930_vm3, %v914_v1, %v1607_v3  ;;  %v932_v20 = vsel %vm930_vm3, %v915_v2, %v1608_v11 }
  0x9f   : > { %v2242_v60 = vpop.permute.xlu0 %1615  ;;  %v1623_v4 = vunpack.i.h.bf16 %v2240_v59  ;;  %v1622_v5 = vunpack.i.l.bf16 %v2240_v59 }
  0xa0   : > { %v1617_v6 = vunpack.i.l.bf16 %v2242_v60  ;;  %v1618_v18 = vunpack.i.h.bf16 %v2242_v60 }
  0xa1   : > { %v941_v60 = vsel %vm930_vm3, %v924_v53, %v1622_v5  ;;  %v942_v41 = vsel %vm930_vm3, %v925_v12, %v1623_v4 }
  0xa2   : > { %v2244_v16 = vpop.permute.xlu1 %1630  ;;  %v2313_v42 = vsel %vm930_vm3, %v916_v13, %v1617_v6  ;;  %v934_v26 = vsel %vm930_vm3, %v917_v10, %v1618_v18 }
  0xa3   : > { %v2246_v61 = vpop.permute.xlu0 %1625  ;;  %v1633_v23 = vunpack.i.h.bf16 %v2244_v16  ;;  %v1632_v59 = vunpack.i.l.bf16 %v2244_v16 }
  0xa4   : > { %v1627_v29 = vunpack.i.l.bf16 %v2246_v61  ;;  %v1628_v34 = vunpack.i.h.bf16 %v2246_v61 }
  0xa5   : > { %v956_v28 = vsel %vm947_vm4, %v939_v21, %v1632_v59  ;;  %v957_v47 = vsel %vm947_vm4, %v940_v35, %v1633_v23 }
  0xa6   : > { %v2248_v62 = vpop.permute.xlu1 %1640  ;;  %v948_v24 = vsel %vm947_vm4, %v931_v40, %v1627_v29  ;;  %v949_v1 = vsel %vm947_vm4, %v932_v20, %v1628_v34 }
  0xa7   : > { %v2250_v22 = vpop.permute.xlu0 %1635  ;;  %v1642_v16 = vunpack.i.l.bf16 %v2248_v62  ;;  %v1643_v8 = vunpack.i.h.bf16 %v2248_v62 }
  0xa8   : > { %v1638_v2 = vunpack.i.h.bf16 %v2250_v22  ;;  %v1637_v9 = vunpack.i.l.bf16 %v2250_v22 }
  0xaa   : > { %v2252_v63 = vpop.permute.xlu1 %1650 }
  0xab   : > { %v2254_v0 = vpop.permute.xlu0 %1645  ;;  %v1653_v44 = vunpack.i.h.bf16 %v2252_v63  ;;  %v1652_v27 = vunpack.i.l.bf16 %v2252_v63  ;;  %v958_v63 = vsel %vm947_vm4, %v941_v60, %v1642_v16 }
  0xac   : > { %v1647_v61 = vunpack.i.l.bf16 %v2254_v0  ;;  %v1648_v25 = vunpack.i.h.bf16 %v2254_v0 }
  0xad   : > { %v973_v0 = vsel %vm964_vm5, %v956_v28, %v1652_v27  ;;  %v974_v5 = vsel %vm964_vm5, %v957_v47, %v1653_v44 }
  0xae   : > { %v2258_v17 = vpop.permute.xlu1 %1660  ;;  %v965_v62 = vsel %vm964_vm5, %v948_v24, %v1647_v61  ;;  %v966_v12 = vsel %vm964_vm5, %v949_v1, %v1648_v25 }
  0xaf   : > { %v2260_v19 = vpop.permute.xlu0 %1655  ;;  %v1663_v13 = vunpack.i.h.bf16 %v2258_v17  ;;  %v1662_v18 = vunpack.i.l.bf16 %v2258_v17 }
  0xb0   : > { %v1658_v21 = vunpack.i.h.bf16 %v2260_v19  ;;  %v1657_v29 = vunpack.i.l.bf16 %v2260_v19 }
  0xb2   : > { %v2274_v45 = vpop.permute.xlu1 %1670 }
  0xb3   : > { %v2280_v52 = vpop.permute.xlu0 %1665  ;;  %v1673_v11 = vunpack.i.h.bf16 %v2274_v45  ;;  %v1672_v3 = vunpack.i.l.bf16 %v2274_v45 }
  0xb4   : > { %v1667_v53 = vunpack.i.l.bf16 %v2280_v52  ;;  %v1668_v6 = vunpack.i.h.bf16 %v2280_v52 }
  0xb5   : > { %v990_v35 = vsel %vm981_vm6, %v973_v0, %v1672_v3  ;;  %v991_v52 = vsel %vm981_vm6, %v974_v5, %v1673_v11  ;;  %v959_v0 = vsel %vm947_vm4, %v942_v41, %v1643_v8  ;;  %v975_v41 = vsel %vm964_vm5, %v958_v63, %v1662_v18 }
  0xb6   : > { %v2294_v7 = vpop.permute.xlu1 %1680  ;;  %v982_v40 = vsel %vm981_vm6, %v965_v62, %v1667_v53  ;;  %v983_v34 = vsel %vm981_vm6, %v966_v12, %v1668_v6  ;;  %v976_v8 = vsel %vm964_vm5, %v959_v0, %v1663_v13 }
  0xb7   : > { %v2300_v54 = vpop.permute.xlu0 %1675  ;;  %v1683_v60 = vunpack.i.h.bf16 %v2294_v7  ;;  %v1682_v25 = vunpack.i.l.bf16 %v2294_v7  ;;  %v951_v7 = vsel %vm947_vm4, %v934_v26, %v1638_v2 }
  0xb8   : > { %v1678_v5 = vunpack.i.h.bf16 %v2300_v54  ;;  %v1677_v62 = vunpack.i.l.bf16 %v2300_v54  ;;  %v968_v26 = vsel %vm964_vm5, %v951_v7, %v1658_v21 }
  0xb9   : > { %v992_v2 = vsel %vm981_vm6, %v975_v41, %v1682_v25 }
  0xba   : > { %v1691_v43 = vpop.permute.xlu1 %1690  ;;  %v985_v63 = vsel %vm981_vm6, %v968_v26, %v1678_v5 }
  0xbb   : > { %v1686_v46 = vpop.permute.xlu0 %1685  ;;  %v1693_v10 = vunpack.i.h.bf16 %v1691_v43  ;;  %v1692_v45 = vunpack.i.l.bf16 %v1691_v43 }
  0xbc   : > { %v1688_v23 = vunpack.i.h.bf16 %v1686_v46  ;;  %v1687_v59 = vunpack.i.l.bf16 %v1686_v46 }
  0xbd   : > { %v1007_v61 = vsel %vm998_vm7, %v990_v35, %v1692_v45  ;;  %v1008_v19 = vsel %vm998_vm7, %v991_v52, %v1693_v10  ;;  %v950_v10 = vsel %vm947_vm4, %v2313_v42, %v1637_v9  ;;  %v993_v9 = vsel %vm981_vm6, %v976_v8, %v1683_v60 }
  0xbe   : > { %v2332_v4 = vpop.permute.xlu1 %1700  ;;  %v999_v46 = vsel %vm998_vm7, %v982_v40, %v1687_v59  ;;  %v1000_v28 = vsel %vm998_vm7, %v983_v34, %v1688_v23  ;;  %v967_v42 = vsel %vm964_vm5, %v950_v10, %v1657_v29 }
  0xbf   : > { %v2338_v22 = vpop.permute.xlu0 %1695  ;;  %v1703_v45 = vunpack.i.h.bf16 %v2332_v4  ;;  %v1702_v23 = vunpack.i.l.bf16 %v2332_v4  ;;  %v984_v35 = vsel %vm981_vm6, %v967_v42, %v1677_v62 }
  0xc0   : > { %v1698_v54 = vunpack.i.h.bf16 %v2338_v22  ;;  %v1697_v59 = vunpack.i.l.bf16 %v2338_v22 }
  0xc1   : > { %v1009_v22 = vsel %vm998_vm7, %v992_v2, %v1702_v23  ;;  %v1010_v40 = vsel %vm998_vm7, %v993_v9, %v1703_v45 }
  0xc2   : > { %v1711_v20 = vpop.permute.xlu1 %1710  ;;  %v1001_v21 = vsel %vm998_vm7, %v984_v35, %v1697_v59  ;;  %v1002_v34 = vsel %vm998_vm7, %v985_v63, %v1698_v54 }
  0xc3   : > { %v1713_v16 = vunpack.i.h.bf16 %v1711_v20  ;;  %v1712_v43 = vunpack.i.l.bf16 %v1711_v20  ;;  %v1706_v17 = vpop.permute.xlu0 %1705 }
  0xc4   : > { %v1708_v44 = vunpack.i.h.bf16 %v1706_v17  ;;  %v1707_v27 = vunpack.i.l.bf16 %v1706_v17 }
  0xc5   : > { %v1024_v47 = vsel %vm1015_vm8, %v1007_v61, %v1712_v43  ;;  %v1025_v24 = vsel %vm1015_vm8, %v1008_v19, %v1713_v16 }
  0xc6   : > { %v2357_v1 = vpop.permute.xlu1 %1720  ;;  %v1016_v11 = vsel %vm1015_vm8, %v999_v46, %v1707_v27  ;;  %v1017_v3 = vsel %vm1015_vm8, %v1000_v28, %v1708_v44  ;;  %v1036_v53 = vpack.c.bf16 %v1025_v24, %v1024_v47 }
  0xc7   : > { %v2364_v6 = vpop.permute.xlu0 %1715  ;;  %v1032_v12 = vpack.c.bf16 %v1017_v3, %v1016_v11  ;;  %v1722_v10 = vunpack.i.l.bf16 %v2357_v1 }
  0xc8   : > { %1498 = vmatprep.mubr.msk.bf16.mxu1 %vm1067_vm9, %v1036_v53  ;;  %v1718_v45 = vunpack.i.h.bf16 %v2364_v6  ;;  %v1717_v23 = vunpack.i.l.bf16 %v2364_v6 }
  0xc9   : > { %1490 = vmatprep.mubr.msk.bf16.mxu0 %vm1067_vm9, %v1032_v12  ;;  %v1723_v12 = vunpack.i.h.bf16 %v2357_v1  ;;  %v909_v8 = vsel %vm896_vm1, %v2057_v30, %v1722_v10 }
  0xca   : > { %v1731_v4 = vpop.permute.xlu1 %1730  ;;  %v901_v35 = vsel %vm896_vm1, %v2063_v32, %v1717_v23  ;;  %v902_v6 = vsel %vm896_vm1, %v2066_v33, %v1718_v45 }
  0xcb   : > { %v1733_v13 = vunpack.i.h.bf16 %v1731_v4  ;;  %v1732_v18 = vunpack.i.l.bf16 %v1731_v4  ;;  %v1726_v52 = vpop.permute.xlu0 %1725  ;;  %v910_v54 = vsel %vm896_vm1, %v2060_v31, %v1723_v12 }
  0xcc   : > { %v1728_v20 = vunpack.i.h.bf16 %v1726_v52  ;;  %v1727_v29 = vunpack.i.l.bf16 %v1726_v52 }
  0xcd   : > { %v1026_v60 = vsel %vm1015_vm8, %v1009_v22, %v1732_v18  ;;  %v1027_v16 = vsel %vm1015_vm8, %v1010_v40, %v1733_v13 }
  0xce   : > { %v1037_v43 = vpack.c.bf16 %v1027_v16, %v1026_v60  ;;  %v1018_v17 = vsel %vm1015_vm8, %v1001_v21, %v1727_v29  ;;  %v1019_v44 = vsel %vm1015_vm8, %v1002_v34, %v1728_v20  ;;  %v1741_v27 = vpop.permute.xlu1 %1740 }
  0xcf   : > { %v1033_v61 = vpack.c.bf16 %v1019_v44, %v1018_v17  ;;  %v1736_v19 = vpop.permute.xlu0 %1735  ;;  %v1743_v59 = vunpack.i.h.bf16 %v1741_v27  ;;  %v1742_v42 = vunpack.i.l.bf16 %v1741_v27 }
  0xd0   : > { %1499 = vmatmul.mubr.msk.bf16.vlgmr.msra.gmra.mrb[0].mxu1 %vm1067_vm9, %v1037_v43  ;;  %v1738_v2 = vunpack.i.h.bf16 %v1736_v19  ;;  %v1737_v1 = vunpack.i.l.bf16 %v1736_v19 }
  0xd1   : > { %1491 = vmatmul.mubr.msk.bf16.vlgmr.msra.gmra.mrb[0].mxu0 %vm1067_vm9, %v1033_v61  ;;  %v911_v40 = vsel %vm896_vm1, %v2114_v48, %v1742_v42  ;;  %v912_v20 = vsel %vm896_vm1, %v2117_v49, %v1743_v59 }
  0xd2   : > { %v1751_v46 = vpop.permute.xlu1 %1750  ;;  %v903_v33 = vsel %vm896_vm1, %v2120_v50, %v1737_v1  ;;  %v904_v34 = vsel %vm896_vm1, %v2123_v51, %v1738_v2 }
  0xd3   : > { %v1746_v28 = vpop.permute.xlu0 %1745  ;;  %v1753_v9 = vunpack.i.h.bf16 %v1751_v46  ;;  %v1752_v4 = vunpack.i.l.bf16 %v1751_v46 }
  0xd4   : > { %v1748_v63 = vunpack.i.h.bf16 %v1746_v28  ;;  %v1747_v13 = vunpack.i.l.bf16 %v1746_v28 }
  0xd5   : > { %v926_v60 = vsel %vm913_vm2, %v909_v8, %v1752_v4  ;;  %v927_v16 = vsel %vm913_vm2, %v910_v54, %v1753_v9 }
  0xd6   : > { %v1761_v47 = vpop.permute.xlu1 %1760  ;;  %v918_v43 = vsel %vm913_vm2, %v901_v35, %v1747_v13  ;;  %v919_v48 = vsel %vm913_vm2, %v902_v6, %v1748_v63 }
  0xd7   : > { %v1756_v24 = vpop.permute.xlu0 %1755  ;;  %v1763_v30 = vunpack.i.h.bf16 %v1761_v47  ;;  %v1762_v18 = vunpack.i.l.bf16 %v1761_v47 }
  0xd8   : > { %v1758_v52 = vunpack.i.h.bf16 %v1756_v24  ;;  %v1757_v31 = vunpack.i.l.bf16 %v1756_v24 }
  0xd9   : > { %v928_v44 = vsel %vm913_vm2, %v911_v40, %v1762_v18  ;;  %v929_v27 = vsel %vm913_vm2, %v912_v20, %v1763_v30 }
  0xda   : > { %v1771_v25 = vpop.permute.xlu1 %1770  ;;  %v920_v61 = vsel %vm913_vm2, %v903_v33, %v1757_v31  ;;  %v921_v50 = vsel %vm913_vm2, %v904_v34, %v1758_v52 }
  0xdb   : > { %v1766_v11 = vpop.permute.xlu0 %1765  ;;  %v1773_v29 = vunpack.i.h.bf16 %v1771_v25  ;;  %v1772_v21 = vunpack.i.l.bf16 %v1771_v25 }
  0xdc   : > { %v1768_v17 = vunpack.i.h.bf16 %v1766_v11  ;;  %v1767_v49 = vunpack.i.l.bf16 %v1766_v11 }
  0xdd   : > { %v943_v51 = vsel %vm930_vm3, %v926_v60, %v1772_v21  ;;  %v944_v46 = vsel %vm930_vm3, %v927_v16, %v1773_v29 }
  0xde   : > { %v2393_v3 = vpop.permute.xlu1 %1780  ;;  %v935_v45 = vsel %vm930_vm3, %v918_v43, %v1767_v49  ;;  %v936_v23 = vsel %vm930_vm3, %v919_v48, %v1768_v17 }
  0xdf   : > { %v2395_v53 = vpop.permute.xlu0 %1775  ;;  %v1783_v28 = vunpack.i.h.bf16 %v2393_v3  ;;  %v1782_v47 = vunpack.i.l.bf16 %v2393_v3 }
  0xe0   : > { %v1778_v25 = vunpack.i.h.bf16 %v2395_v53  ;;  %v1777_v11 = vunpack.i.l.bf16 %v2395_v53 }
  0xe1   : > { %v945_v1 = vsel %vm930_vm3, %v928_v44, %v1782_v47 }
  0xe2   : > { %v2397_v0 = vpop.permute.xlu1 %1790  ;;  %v938_v6 = vsel %vm930_vm3, %v921_v50, %v1778_v25 }
  0xe3   : > { %v2399_v5 = vpop.permute.xlu0 %1785  ;;  %v1793_v12 = vunpack.i.h.bf16 %v2397_v0  ;;  %v1792_v10 = vunpack.i.l.bf16 %v2397_v0  ;;  %v946_v0 = vsel %vm930_vm3, %v929_v27, %v1783_v28 }
  0xe4   : > { %v1788_v8 = vunpack.i.h.bf16 %v2399_v5  ;;  %v1787_v54 = vunpack.i.l.bf16 %v2399_v5  ;;  %v937_v5 = vsel %vm930_vm3, %v920_v61, %v1777_v11 }
  0xe5   : > { %v961_v63 = vsel %vm947_vm4, %v944_v46, %v1793_v12 }
  0xe6   : > { %v2401_v62 = vpop.permute.xlu1 %1800  ;;  %v953_v13 = vsel %vm947_vm4, %v936_v23, %v1788_v8 }
  0xe7   : > { %v2405_v7 = vpop.permute.xlu0 %1795  ;;  %v1803_v59 = vunpack.i.h.bf16 %v2401_v62  ;;  %v1802_v3 = vunpack.i.l.bf16 %v2401_v62  ;;  %v960_v62 = vsel %vm947_vm4, %v943_v51, %v1792_v10 }
  0xe8   : > { %v1798_v42 = vunpack.i.h.bf16 %v2405_v7  ;;  %v1797_v53 = vunpack.i.l.bf16 %v2405_v7  ;;  %v952_v7 = vsel %vm947_vm4, %v935_v45, %v1787_v54 }
  0xe9   : > { %v963_v52 = vsel %vm947_vm4, %v946_v0, %v1803_v59 }
  0xea   : > { %v2409_v41 = vpop.permute.xlu1 %1810  ;;  %v954_v31 = vsel %vm947_vm4, %v937_v5, %v1797_v53  ;;  %v955_v40 = vsel %vm947_vm4, %v938_v6, %v1798_v42 }
  0xeb   : > { %v2415_v26 = vpop.permute.xlu0 %1805  ;;  %v1813_v9 = vunpack.i.h.bf16 %v2409_v41  ;;  %v1812_v4 = vunpack.i.l.bf16 %v2409_v41  ;;  %v962_v41 = vsel %vm947_vm4, %v945_v1, %v1802_v3 }
  0xec   : > { %v1808_v30 = vunpack.i.h.bf16 %v2415_v26  ;;  %v1807_v18 = vunpack.i.l.bf16 %v2415_v26 }
  0xed   : > { %v977_v29 = vsel %vm964_vm5, %v960_v62, %v1812_v4  ;;  %v978_v21 = vsel %vm964_vm5, %v961_v63, %v1813_v9 }
  0xee   : > { %v2421_v22 = vpop.permute.xlu1 %1820  ;;  %v969_v17 = vsel %vm964_vm5, %v952_v7, %v1807_v18  ;;  %v970_v49 = vsel %vm964_vm5, %v953_v13, %v1808_v30 }
  0xef   : > { %v2427_v32 = vpop.permute.xlu0 %1815  ;;  %v1823_v33 = vunpack.i.h.bf16 %v2421_v22  ;;  %v1822_v34 = vunpack.i.l.bf16 %v2421_v22 }
  0xf0   : > { %v1818_v26 = vunpack.i.h.bf16 %v2427_v32  ;;  %v1817_v16 = vunpack.i.l.bf16 %v2427_v32 }
  0xf1   : > { %v979_v28 = vsel %vm964_vm5, %v962_v41, %v1822_v34  ;;  %v980_v47 = vsel %vm964_vm5, %v963_v52, %v1823_v33 }
  0xf2   : > { %v2441_v19 = vpop.permute.xlu1 %1830  ;;  %v972_v12 = vsel %vm964_vm5, %v955_v40, %v1818_v26 }
  0xf3   : > { %v1826_v24 = vpop.permute.xlu0 %1825  ;;  %v1833_v43 = vunpack.i.h.bf16 %v2441_v19  ;;  %v1832_v48 = vunpack.i.l.bf16 %v2441_v19  ;;  %v971_v19 = vsel %vm964_vm5, %v954_v31, %v1817_v16 }
  0xf4   : > { %v1828_v44 = vunpack.i.h.bf16 %v1826_v24  ;;  %v1827_v27 = vunpack.i.l.bf16 %v1826_v24 }
  0xf5   : > { %v994_v10 = vsel %vm981_vm6, %v977_v29, %v1832_v48  ;;  %v995_v24 = vsel %vm981_vm6, %v978_v21, %v1833_v43 }
  0xf6   : > { %v1841_v2 = vpop.permute.xlu1 %1840  ;;  %v986_v45 = vsel %vm981_vm6, %v969_v17, %v1827_v27  ;;  %v987_v23 = vsel %vm981_vm6, %v970_v49, %v1828_v44 }
  0xf7   : > { %v2463_v35 = vpop.permute.xlu0 %1835  ;;  %v1843_v61 = vunpack.i.h.bf16 %v1841_v2  ;;  %v1842_v50 = vunpack.i.l.bf16 %v1841_v2 }
  0xf8   : > { %v1838_v8 = vunpack.i.h.bf16 %v2463_v35  ;;  %v1837_v54 = vunpack.i.l.bf16 %v2463_v35 }
  0xf9   : > { %v996_v59 = vsel %vm981_vm6, %v979_v28, %v1842_v50  ;;  %v997_v3 = vsel %vm981_vm6, %v980_v47, %v1843_v61 }
  0xfa   : > { %v1851_v20 = vpop.permute.xlu1 %1850  ;;  %v988_v41 = vsel %vm981_vm6, %v971_v19, %v1837_v54  ;;  %v989_v29 = vsel %vm981_vm6, %v972_v12, %v1838_v8 }
  0xfb   : > { %v1846_v60 = vpop.permute.xlu0 %1845  ;;  %v1853_v51 = vunpack.i.h.bf16 %v1851_v20  ;;  %v1852_v46 = vunpack.i.l.bf16 %v1851_v20 }
  0xfc   : > { %v1848_v32 = vunpack.i.h.bf16 %v1846_v60  ;;  %v1847_v25 = vunpack.i.l.bf16 %v1846_v60 }
  0xfd   : > { %v1011_v42 = vsel %vm998_vm7, %v994_v10, %v1852_v46  ;;  %v1012_v53 = vsel %vm998_vm7, %v995_v24, %v1853_v51 }
  0xfe   : > { %v1861_v22 = vpop.permute.xlu1 %1860  ;;  %v1003_v1 = vsel %vm998_vm7, %v986_v45, %v1847_v25  ;;  %v1004_v0 = vsel %vm998_vm7, %v987_v23, %v1848_v32 }
  0xff   : > { %v1856_v11 = vpop.permute.xlu0 %1855  ;;  %v1863_v6 = vunpack.i.h.bf16 %v1861_v22  ;;  %v1862_v62 = vunpack.i.l.bf16 %v1861_v22  ;;  %v1459_v22 = vld [vmem:[%s218_s22] ss:$0 sm:$0xff] }
 0x100   : > { %v1858_v7 = vunpack.i.h.bf16 %v1856_v11  ;;  %v1857_v13 = vunpack.i.l.bf16 %v1856_v11 }
 0x101   : > { %v1013_v26 = vsel %vm998_vm7, %v996_v59, %v1862_v62  ;;  %v1014_v16 = vsel %vm998_vm7, %v997_v3, %v1863_v6  ;;  %v1887_v3 = vld [vmem:[%s2000_s24 + $0x79] sm:$0xff]  ;;  %v1890_v62 = vld [vmem:[%s2000_s24 + $0x21] sm:$0xff] }
 0x102   : > { %v1871_v2 = vpop.permute.xlu1 %1870  ;;  %v1005_v17 = vsel %vm998_vm7, %v988_v41, %v1857_v13  ;;  %v1006_v49 = vsel %vm998_vm7, %v989_v29, %v1858_v7 }
 0x103   : > { %v1873_v9 = vunpack.i.h.bf16 %v1871_v2  ;;  %v1872_v4 = vunpack.i.l.bf16 %v1871_v2  ;;  %v1866_v5 = vpop.permute.xlu0 %1865 }
 0x104   : > { %v1868_v63 = vunpack.i.h.bf16 %v1866_v5  ;;  %v1867_v35 = vunpack.i.l.bf16 %v1866_v5  ;;  %v1889_v5 = vld [vmem:[%s2000_s24 + $0x81] sm:$0xff] }
 0x105   : > { %v1028_v30 = vsel %vm1015_vm8, %v1011_v42, %v1872_v4  ;;  %v1029_v18 = vsel %vm1015_vm8, %v1012_v53, %v1873_v9 }
 0x106   : > { %v1038_v52 = vpack.c.bf16 %v1029_v18, %v1028_v30  ;;  %v1020_v31 = vsel %vm1015_vm8, %v1003_v1, %v1867_v35  ;;  %v1021_v40 = vsel %vm1015_vm8, %v1004_v0, %v1868_v63  ;;  %v1881_v20 = vpop.permute.xlu1 %1880 }
 0x107   : > { %v1034_v21 = vpack.c.bf16 %v1021_v40, %v1020_v31  ;;  %v1883_v33 = vunpack.i.h.bf16 %v1881_v20  ;;  %v1882_v34 = vunpack.i.l.bf16 %v1881_v20  ;;  %v1876_v60 = vpop.permute.xlu0 %1875 }
 0x108   : > { %v1878_v43 = vunpack.i.h.bf16 %v1876_v60  ;;  %v1877_v48 = vunpack.i.l.bf16 %v1876_v60  ;;  %1502 = vmatprep.mubr.msk.bf16.mxu1 %vm1067_vm9, %v1038_v52 }
 0x109   : > { %v1030_v44 = vsel %vm1015_vm8, %v1013_v26, %v1882_v34  ;;  %v1031_v27 = vsel %vm1015_vm8, %v1014_v16, %v1883_v33  ;;  %1494 = vmatprep.mubr.msk.bf16.mxu0 %vm1067_vm9, %v1034_v21  ;;  %v1891_v21 = vld [vmem:[%s2000_s24 + $0x61] sm:$0xff] }
 0x10a   : > { %v1039_v61 = vpack.c.bf16 %v1031_v27, %v1030_v44  ;;  %v1022_v50 = vsel %vm1015_vm8, %v1005_v17, %v1877_v48  ;;  %v1023_v51 = vsel %vm1015_vm8, %v1006_v49, %v1878_v43  ;;  %v1892_v17 = vld [vmem:[%s2000_s24 + $0x69] sm:$0xff] }
 0x10b   : > { %v1035_v46 = vpack.c.bf16 %v1023_v51, %v1022_v50 }
 0x10c   : > { %1503 = vmatmul.mubr.msk.bf16.gmra.mrb[4].mxu1 %vm1067_vm9, %v1039_v61 }
 0x10d   : > { %1495 = vmatmul.mubr.msk.bf16.gmra.mrb[4].mxu0 %vm1067_vm9, %v1035_v46 }
 0x1a3   : > { %v1500_v28 = vpop.f32.mrb[0].mxu1 }
 0x1a4   : > { %v1492_v47 = vpop.f32.mrb[0].mxu0  ;;  %v1171_v32 = vadd.f32 %v1500_v28, %v1459_v22  ;;  %v1162_v25 = vpop.f32.mrb[1].mxu1 }
 0x1a5   : > { %v1139_v11 = vadd.f32 %v1492_v47, %v1459_v22  ;;  %v1130_v19 = vpop.f32.mrb[1].mxu0  ;;  %v1163_v12 = vadd.f32 %v1459_v22, %v1162_v25  ;;  %v1501_v10 = vpop.f32.mrb[2].mxu1 }
 0x1a6   : > { %v1203_v24 = vadd.f32 %v2078_v36, %v1171_v32  ;;  %v1131_v45 = vadd.f32 %v1459_v22, %v1130_v19  ;;  %v1493_v23 = vpop.f32.mrb[2].mxu0  ;;  %v1174_v8 = vadd.f32 %v1501_v10, %v1459_v22  ;;  %v1165_v54 = vpop.f32.mrb[3].mxu1  ;;  %v1888_v36 = vld [vmem:[%s2000_s24 + $0x19] sm:$0xff] }
 0x1a7   : > { %v1195_v59 = vadd.f32 %v2084_v38, %v1139_v11  ;;  %v1201_v42 = vadd.f32 %v1887_v3, %v1163_v12  ;;  %v1142_v53 = vadd.f32 %v1493_v23, %v1459_v22  ;;  %v1133_v2 = vpop.f32.mrb[3].mxu0  ;;  %v1166_v1 = vadd.f32 %v1459_v22, %v1165_v54 }
 0x1a8   : > { %1219 = vst.msk [vmem:[%s2530_s12 + $0x50] sm:$0xff] %vm896_vm1, %v1203_v24  ;;  %v1193_v0 = vadd.f32 %v1888_v36, %v1131_v45  ;;  %v1204_v9 = vadd.f32 %v2081_v37, %v1174_v8  ;;  %v1134_v4 = vadd.f32 %v1459_v22, %v1133_v2 }
 0x1a9   : > { %1211 = vst.msk [vmem:[%s2530_s12 + $0x10] sm:$0xff] %vm896_vm1, %v1195_v59  ;;  %1217 = vst.msk [vmem:[%s2530_s12 + $0x40] sm:$0xff] %vm896_vm1, %v1201_v42  ;;  %v1196_v38 = vadd.f32 %v2087_v39, %v1142_v53  ;;  %v1202_v6 = vadd.f32 %v1889_v5, %v1166_v1 }
 0x1aa   : > { %1209 = vst.msk [vmem:[%s2530_s12] sm:$0xff] %vm896_vm1, %v1193_v0  ;;  %1220 = vst.msk [vmem:[%s2530_s12 + $0x58] sm:$0xff] %vm896_vm1, %v1204_v9  ;;  %v1194_v63 = vadd.f32 %v1890_v62, %v1134_v4 }
 0x1ab   : > { %1212 = vst.msk [vmem:[%s2530_s12 + $0x18] sm:$0xff] %vm896_vm1, %v1196_v38  ;;  %1218 = vst.msk [vmem:[%s2530_s12 + $0x48] sm:$0xff] %vm896_vm1, %v1202_v6 }
 0x1ac   : > { %1210 = vst.msk [vmem:[%s2530_s12 + $0x8] sm:$0xff] %vm896_vm1, %v1194_v63 }
 0x1df   : > { %v1504_v37 = vpop.f32.mrb[4].mxu1 }
 0x1e0   : > { %v1496_v35 = vpop.f32.mrb[4].mxu0  ;;  %v1187_v7 = vadd.f32 %v1504_v37, %v1459_v22  ;;  %v1178_v13 = vpop.f32.mrb[5].mxu1 }
 0x1e1   : > { %v1155_v39 = vadd.f32 %v1496_v35, %v1459_v22  ;;  %v1146_v30 = vpop.f32.mrb[5].mxu0  ;;  %v1179_v18 = vadd.f32 %v1459_v22, %v1178_v13  ;;  %v1505_v41 = vpop.f32.mrb[6].mxu1 }
 0x1e2   : > { %v1207_v52 = vadd.f32 %v2192_v14, %v1187_v7  ;;  %v1147_v31 = vadd.f32 %v1459_v22, %v1146_v30  ;;  %v1497_v40 = vpop.f32.mrb[6].mxu0  ;;  %v1190_v20 = vadd.f32 %v1505_v41, %v1459_v22  ;;  %v1181_v29 = vpop.f32.mrb[7].mxu1 }
 0x1e3   : > { %v1199_v33 = vadd.f32 %v1891_v21, %v1155_v39  ;;  %v1205_v34 = vadd.f32 %v2138_v55, %v1179_v18  ;;  %v1158_v60 = vadd.f32 %v1497_v40, %v1459_v22  ;;  %v1149_v26 = vpop.f32.mrb[7].mxu0  ;;  %v1182_v16 = vadd.f32 %v1459_v22, %v1181_v29 }
 0x1e4   : > { %1223 = vst.msk [vmem:[%s2530_s12 + $0x70] sm:$0xff] %vm896_vm1, %v1207_v52  ;;  %v1197_v14 = vadd.f32 %v2144_v57, %v1147_v31  ;;  %v1208_v43 = vadd.f32 %v2195_v15, %v1190_v20  ;;  %v1150_v48 = vadd.f32 %v1459_v22, %v1149_v26 }
 0x1e5   : > { %1215 = vst.msk [vmem:[%s2530_s12 + $0x30] sm:$0xff] %vm896_vm1, %v1199_v33  ;;  %1221 = vst.msk [vmem:[%s2530_s12 + $0x60] sm:$0xff] %vm896_vm1, %v1205_v34  ;;  %v1200_v49 = vadd.f32 %v1892_v17, %v1158_v60  ;;  %v1206_v55 = vadd.f32 %v2141_v56, %v1182_v16 }
 0x1e6   : > { %1213 = vst.msk [vmem:[%s2530_s12 + $0x20] sm:$0xff] %vm896_vm1, %v1197_v14  ;;  %1224 = vst.msk [vmem:[%s2530_s12 + $0x78] sm:$0xff] %vm896_vm1, %v1208_v43  ;;  %v1198_v44 = vadd.f32 %v2147_v58, %v1150_v48 }
 0x1e7   : > { %1216 = vst.msk [vmem:[%s2530_s12 + $0x38] sm:$0xff] %vm896_vm1, %v1200_v49  ;;  %1222 = vst.msk [vmem:[%s2530_s12 + $0x68] sm:$0xff] %vm896_vm1, %v1206_v55 }
 0x1e8   : > { %1214 = vst.msk [vmem:[%s2530_s12 + $0x28] sm:$0xff] %vm896_vm1, %v1198_v44 }
 0x1e9 PF: > { %s13_s16 = sadd.s32 1, %s1931_s16   ;;  %s2599_s12 = smov %s1923_s14 }
 0x1ea   : > { %p10_p7 = scmp.ge.s32.totalorder %s13_s16, 6   ;;  %s2600_s13 = smov %s1927_s15 }
 0x1eb   : > { %s2601_s14 = smov %s2604_s17  ;;  %s2602_s15 = smov %s2608_s18 }
 0x1ec   :  { %12 = sbr.rel (!%p10_p7) target bundleno = 3 (0x3), region = 71 }

// kernel: esam_forward.2
= control target key start
LH: loop header
LB: loop body
LE: loop exit
PB: predicated region body
PF: predicated region fallthrough
CT: control target
= control target key end

     0   :  { %s3768_s27 = smov 0   ;;  %s3770_s28 = smov 0   ;;  %s4890_s0 = inlined_call_operand.vmem [shape: f32[2,18,18,4], index: 0, kind: input, shape index: {}]   ;;  %s4891_s1 = inlined_call_operand.vmem [shape: f32[2,18,18,4], index: 1, kind: input, shape index: {}]   ;;  %s4892_s2 = inlined_call_operand.vmem [shape: bf16[36,4], index: 2, kind: input, shape index: {}]   ;;  %s4893_s3 = inlined_call_operand.vmem [shape: f32[1,4], index: 3, kind: input, shape index: {}]   ;;  %s4894_s4 = inlined_call_operand.vmem [shape: bf16[36,8], index: 4, kind: input, shape index: {}]   ;;  %s4895_s5 = inlined_call_operand.vmem [shape: f32[1,8], index: 5, kind: input, shape index: {}]   ;;  %s4896_s6 = inlined_call_operand.vmem [shape: f32[2,4,4], index: 6, kind: output, shape index: {0}]   ;;  %s4897_s7 = inlined_call_operand.vmem [shape: f32[2,1,4], index: 7, kind: output, shape index: {1}]   ;;  %s4898_s8 = inlined_call_operand.vmem [shape: f32[2,1,4], index: 8, kind: output, shape index: {2}]  }
   0x1   :  { %s3772_s29 = smov 0   ;;  %s3774_s30 = smov 0  }
   0x2   :  { %s3776_s9 = smov 0  }
   0x3 LB: > { %s28_s10 = sadd.s32 1, %s3701_s29  ;;  %s31_s11 = sadd.s32 1, %s3705_s30  ;;  %s3709_s9 = sphi %s3776_s9, %s19_s9   ;;  %s3705_s30 = sphi %s3774_s30, %s4906_s30   ;;  %s3701_s29 = sphi %s3772_s29, %s4905_s29   ;;  %s3697_s28 = sphi %s3770_s28, %s4904_s28   ;;  %s3693_s27 = sphi %s3768_s27, %s4903_s27  }
   0x4   : > { %p29_p0 = scmp.ge.s32.totalorder %s28_s10, 2  ;;  %p2634_p1 = scmp.ge.s32.totalorder %s3709_s9, 1 }
   0x5   : > { %p289_p2 = scmp.lt.s32.totalorder %s3709_s9, 5 }
   0x6   : > { %s4908_s10 = smov (%p29_p0, %s28_s10), 0  ;;  %s4910_s11 = smov (!%p29_p0, %s31_s11), %s3705_s30 }
   0x7   : > { %p290_p3 = pnand %p2634_p1, %p289_p2  ;;  %p33_p4 = scmp.ge.s32.totalorder %s4910_s11, 2 }
   0x8   : > { %p333_p5 = scmp.lt.s32.totalorder (!%p290_p3), %s3697_s28, 1  ;;  %p2639_p6 = scmp.ne.s32.totalorder (!%p290_p3), %s3693_s27, 0 }
   0x9   : > { %s4912_s11 = smov (%p33_p4, %s4910_s11), 0  ;;  %293 = sbr.rel (%p290_p3) target bundleno = 842 (0x34a), region = 44 }
   0xa   : > { %4900 = sst [smem:[#allocation2_spill]] %s4912_s11 }
  0x10   : > { %s4914_s28 = smov (!%p333_p5, %s3697_s28), 1  ;;  %358 = sbr.rel (%p2639_p6) target bundleno = 23 (0x17), region = 48 }
  0x11   : > { %s2964_s12 = smul.u32 432, %s4914_s28  ;;  %s2637_s13 = sshll.u32 %s4914_s28, 2  ;;  %vm359_vm0 = vcmask (!%p2639_p6), 27648   ;;  %vm361_vm1 = vcmask (!%p2639_p6), 24576   ;;  %v3711_v0 = vmov (!%p2639_p6), 0.0  }
  0x12   : > { %s3803_s16 = scalar_lea.vmem %s4896_s6, %s2637_s13  ;;  %s3808_s19 = scalar_lea.vmem %s4897_s7, %s4914_s28 }
  0x13   : > { %s3813_s22 = scalar_lea.vmem %s4890_s0, %s2964_s12  ;;  %s342_s25 = scalar_lea.vmem %s4891_s1, %s2964_s12  ;;  %360 = vst.msk [vmem:[%s3803_s16] sm:$0xf] (!%p2639_p6), %vm359_vm0, %v3711_v0 }
  0x14   : > { %s3821_s14 = scalar_lea.vmem %s4898_s8, %s4914_s28  ;;  %362 = vst.msk [vmem:[%s3808_s19] sm:$0x1] (!%p2639_p6), %vm361_vm1, %v3711_v0 }
  0x15   : > { %363 = vst.msk [vmem:[%s3821_s14] sm:$0x1] (!%p2639_p6), %vm361_vm1, %v3711_v0 }
  0x17 PF: > { %s4899_s12 = smul.u32 192, %s3693_s27  ;;  %s3712_s28 = smov 8   ;;  %v3657_v30 = vld [vmem:[%s4894_s4] sm:$0xff]   ;;  %v3658_v31 = vld [vmem:[%s4894_s4 + $0x8] sm:$0xff]   ;;  %vm2019_vm2 = vcmask 1041408   ;;  %vm1028_vm3 = vcmask 31744  }
  0x18   : > { %s3713_s13 = smov 4   ;;  %s3714_s15 = smov 12   ;;  %2920 = vmatprep.subr.bf16.mxu1 %v3657_v30  ;;  %v3659_v33 = vld [vmem:[%s4894_s4 + $0x10] ss:$0 sps:$4 sm:$0x33]   ;;  %vm1045_vm4 = vcmask 64512  }
  0x19   : > { %s3830_s11 = scalar_lea.vmem %s342_s25, %s4899_s12  ;;  %s3715_s17 = smov 16   ;;  %2921 = vmatpush3.bf16.msra.mxu1 %v3657_v30  ;;  %v2172_v34 = vsel %vm2019_vm2, %v3659_v33, 0  ;;  %vm1062_vm5 = vcmask 97280   ;;  %vm1079_vm6 = vcmask 130048   ;;  %vm1096_vm7 = vcmask 162816  }
  0x1a   : > { %v1205_v1 = vld [vmem:[%s3830_s11 + $0x2] sm:$0xff]  ;;  %v1206_v2 = vld [vmem:[%s3830_s11 + $0xa] sm:$0xff]  ;;  %v1207_v6 = vld [vmem:[%s3830_s11 + $0x1a] sm:$0xff]  ;;  %s3716_s18 = smov 20   ;;  %s3717_s25 = smov 24   ;;  %2922 = vmatprep.subr.bf16.mxu1 %v3658_v31  ;;  %vm1113_vm8 = vcmask 195584  }
  0x1b   : > { %v1189_v3 = vld [vmem:[%s3830_s11 + $0x1] sm:$0xff]  ;;  %v3027_v4 = vpack.i.bf16 %v1206_v2, %v1205_v1  ;;  %v1190_v5 = vld [vmem:[%s3830_s11 + $0x9] sm:$0xff]  ;;  %v1191_v9 = vld [vmem:[%s3830_s11 + $0x19] sm:$0xff]  ;;  %s3718_s20 = smov 28   ;;  %s3719_s12 = smov 32   ;;  %vm1130_vm9 = vcmask 228352  }
  0x1c   : > { %v1208_v7 = vld [vmem:[%s3830_s11 + $0x22] sm:$0xff]  ;;  %v3017_v8 = vpack.i.bf16 %v1190_v5, %v1189_v3  ;;  %v3843_v13 = vld [vmem:[%s3830_s11 + $0x30] sm:$0xff]  ;;  %v3846_v14 = vld [vmem:[%s3830_s11 + $0x38] sm:$0xff]  ;;  %s4901_s21 = smul.u32 192, %s3693_s27  ;;  %vm1147_vm10 = vcmask 261120   ;;  %vm1994_vm11 = vcmask 293888  }
  0x1d   : > { %v1192_v10 = vld [vmem:[%s3830_s11 + $0x21] sm:$0xff]  ;;  %3028 = vrot.lane.b32.xlu1 %v3027_v4, %s3712_s28  ;;  %v3032_v11 = vpack.i.bf16 %v1208_v7, %v1207_v6  ;;  %v3849_v15 = vld [vmem:[%s3830_s11 + $0x18] sm:$0xff]  ;;  %v3042_v17 = vpack.i.bf16 %v3846_v14, %v3843_v13  ;;  %v3872_v26 = vld [vmem:[%s3830_s11 + $0x50] sm:$0xff]  ;;  %2923 = vmatpush3.bf16.msra.mxu1 %v3658_v31  ;;  %s3721_s24 = smov 124   ;;  %vm3722_vm12 = vmmov 0   ;;  %vm2326_vm13 = vcmask 24576  }
  0x1e   : > { %3018 = vrot.lane.b32.xlu0 %v3017_v8, %s3713_s13  ;;  %v3022_v12 = vpack.i.bf16 %v1192_v10, %v1191_v9  ;;  %v3852_v16 = vld [vmem:[%s3830_s11 + $0x20] sm:$0xff]  ;;  %v2761_v19 = vld [vmem:[%s3830_s11 + $0x31] sm:$0xff]  ;;  %v3869_v25 = vld [vmem:[%s3830_s11 + $0x48] sm:$0xff]  ;;  %2963 = vmatprep.subr.msk.bf16.mxu1 %vm2019_vm2, %v3659_v33  ;;  %s4012_s23 = scalar_lea.vmem %s3813_s22, %s4901_s21  ;;  %vm2482_vm14 = vcmask 27648  }
  0x1f   : > { %v3037_v18 = vpack.i.bf16 %v3852_v16, %v3849_v15  ;;  %v2762_v20 = vld [vmem:[%s3830_s11 + $0x39] sm:$0xff]  ;;  %v3072_v27 = vpack.i.bf16 %v3872_v26, %v3869_v25  ;;  %v2811_v28 = vld [vmem:[%s3830_s11 + $0x49] sm:$0xff]  ;;  %v2812_v29 = vld [vmem:[%s3830_s11 + $0x51] sm:$0xff] }
  0x20   : > { %v3052_v21 = vpack.i.bf16 %v2762_v20, %v2761_v19  ;;  %v2777_v22 = vld [vmem:[%s3830_s11 + $0x32] sm:$0xff]  ;;  %v2778_v23 = vld [vmem:[%s3830_s11 + $0x3a] sm:$0xff]  ;;  %v3082_v32 = vpack.i.bf16 %v2812_v29, %v2811_v28  ;;  %v2827_v35 = vld [vmem:[%s3830_s11 + $0x4a] sm:$0xff] }
  0x21   : > { %3033 = vrot.lane.b32.xlu1 %v3032_v11, %s3712_s28  ;;  %v3062_v24 = vpack.i.bf16 %v2778_v23, %v2777_v22  ;;  %v2828_v36 = vld [vmem:[%s3830_s11 + $0x52] sm:$0xff]  ;;  %2925 = vmatpush3.bf16.msra.mxu1 %v2172_v34  ;;  %v3902_v38 = vld [vmem:[%s3830_s11 + $0x60] sm:$0xff]  ;;  %v3905_v39 = vld [vmem:[%s3830_s11 + $0x68] sm:$0xff] }
  0x22   : > { %3023 = vrot.lane.b32.xlu0 %v3022_v12, %s3713_s13  ;;  %v3097_v37 = vpack.i.bf16 %v2828_v36, %v2827_v35  ;;  %v3122_v40 = vpack.i.bf16 %v3905_v39, %v3902_v38  ;;  %v2765_v41 = vld [vmem:[%s3830_s11 + $0x61] sm:$0xff]  ;;  %v2766_v42 = vld [vmem:[%s3830_s11 + $0x69] sm:$0xff]  ;;  %v3920_v47 = vld [vmem:[%s3830_s11 + $0x78] sm:$0xff] }
  0x23   : > { %v3132_v43 = vpack.i.bf16 %v2766_v42, %v2765_v41  ;;  %v2781_v44 = vld [vmem:[%s3830_s11 + $0x62] sm:$0xff]  ;;  %v2782_v45 = vld [vmem:[%s3830_s11 + $0x6a] sm:$0xff]  ;;  %v2815_v50 = vld [vmem:[%s3830_s11 + $0x79] sm:$0xff] }
  0x24   : > { %v3142_v46 = vpack.i.bf16 %v2782_v45, %v2781_v44  ;;  %v3923_v48 = vld [vmem:[%s3830_s11 + $0x80] sm:$0xff]  ;;  %v3942_v56 = vld [vmem:[%s3830_s11 + $0x90] sm:$0xff]  ;;  %v3945_v57 = vld [vmem:[%s3830_s11 + $0x98] sm:$0xff] }
  0x25   : > { %3043 = vrot.lane.b32.xlu1 %v3042_v17, %s3714_s15  ;;  %v3152_v49 = vpack.i.bf16 %v3923_v48, %v3920_v47  ;;  %v2816_v51 = vld [vmem:[%s3830_s11 + $0x81] sm:$0xff]  ;;  %v3202_v58 = vpack.i.bf16 %v3945_v57, %v3942_v56  ;;  %v2769_v59 = vld [vmem:[%s3830_s11 + $0x91] sm:$0xff]  ;;  %v2770_v60 = vld [vmem:[%s3830_s11 + $0x99] sm:$0xff] }
  0x26   : > { %3038 = vrot.lane.b32.xlu0 %v3037_v18, %s3714_s15  ;;  %v3162_v52 = vpack.i.bf16 %v2816_v51, %v2815_v50  ;;  %v2831_v53 = vld [vmem:[%s3830_s11 + $0x7a] sm:$0xff]  ;;  %v2832_v54 = vld [vmem:[%s3830_s11 + $0x82] sm:$0xff]  ;;  %v3212_v61 = vpack.i.bf16 %v2770_v60, %v2769_v59  ;;  %v2785_v62 = vld [vmem:[%s3830_s11 + $0x92] sm:$0xff] }
  0x27   : > { %v3177_v55 = vpack.i.bf16 %v2832_v54, %v2831_v53  ;;  %v2786_v63 = vld [vmem:[%s3830_s11 + $0x9a] sm:$0xff]  ;;  %v3960_v1 = vld [vmem:[%s3830_s11 + $0xa8] sm:$0xff]  ;;  %v3963_v2 = vld [vmem:[%s3830_s11 + $0xb0] sm:$0xff] }
  0x28   : > { %v3222_v0 = vpack.i.bf16 %v2786_v63, %v2785_v62  ;;  %v3232_v3 = vpack.i.bf16 %v3963_v2, %v3960_v1  ;;  %v2819_v4 = vld [vmem:[%s3830_s11 + $0xa9] sm:$0xff]  ;;  %v2820_v5 = vld [vmem:[%s3830_s11 + $0xb1] sm:$0xff]  ;;  %v2757_v10 = vld [vmem:[%s3830_s11 + $0xc0] sm:$0xff] }
  0x29   : > { %3053 = vrot.lane.b32.xlu1 %v3052_v21, %s3715_s17  ;;  %v3242_v6 = vpack.i.bf16 %v2820_v5, %v2819_v4  ;;  %v2835_v7 = vld [vmem:[%s3830_s11 + $0xaa] sm:$0xff]  ;;  %v2836_v8 = vld [vmem:[%s3830_s11 + $0xb2] sm:$0xff]  ;;  %v2789_v20 = vld [vmem:[%s3830_s11 + $0xc2] sm:$0xff] }
  0x2a   : > { %3048 = vrot.lane.b32.xlu0 %v3022_v12, %s3715_s17  ;;  %v3257_v9 = vpack.i.bf16 %v2836_v8, %v2835_v7  ;;  %v2774_v18 = vld [vmem:[%s3830_s11 + $0xc9] sm:$0xff]  ;;  %v2807_v23 = vld [vmem:[%s3830_s11 + $0xd8] sm:$0xff]  ;;  %v2824_v29 = vld [vmem:[%s3830_s11 + $0xe1] sm:$0xff] }
  0x2b   : > { %v2823_v28 = vld [vmem:[%s3830_s11 + $0xd9] sm:$0xff]  ;;  %v2840_v34 = vld [vmem:[%s3830_s11 + $0xe2] sm:$0xff]  ;;  %v399_v54 = vld [vmem:[%s4012_s23 + $0xa] sm:$0xff] }
  0x2c   : > { %v2839_v33 = vld [vmem:[%s3830_s11 + $0xda] sm:$0xff]  ;;  %v383_v44 = vld [vmem:[%s4012_s23 + $0x9] sm:$0xff] }
  0x2d   : > { %3063 = vrot.lane.b32.xlu1 %v3062_v24, %s3716_s18  ;;  %v385_v41 = vld [vmem:[%s4012_s23 + $0x21] sm:$0xff]  ;;  %v2645_v60 = vld [vmem:[%s4012_s23 + $0x30] sm:$0xff] }
  0x2e   : > { %3058 = vrot.lane.b32.xlu0 %v3032_v11, %s3716_s18  ;;  %v2758_v11 = vld [vmem:[%s3830_s11 + $0xc8] sm:$0xff]  ;;  %v400_v50 = vld [vmem:[%s4012_s23 + $0x1a] sm:$0xff] }
  0x2f   : > { %v3282_v12 = vpack.i.bf16 %v2758_v11, %v2757_v10  ;;  %v401_v51 = vld [vmem:[%s4012_s23 + $0x22] sm:$0xff] }
  0x30   : > { %v398_v53 = vld [vmem:[%s4012_s23 + $0x2] sm:$0xff] }
  0x31   : > { %3073 = vrot.lane.b32.xlu1 %v3072_v27, %s3717_s25  ;;  %v3347_v59 = vpack.i.bf16 %v399_v54, %v398_v53  ;;  %v4049_v4 = vld [vmem:[%s4012_s23 + $0x20] sm:$0xff] }
  0x32   : > { %3068 = vrot.lane.b32.xlu0 %v3042_v17, %s3717_s25  ;;  %v2773_v17 = vld [vmem:[%s3830_s11 + $0xc1] sm:$0xff] }
  0x33   : > { %v3292_v19 = vpack.i.bf16 %v2774_v18, %v2773_v17  ;;  %v1173_v5 = vld [vmem:[%s3830_s11] sm:$0xff]  ;;  %v2661_v18 = vld [vmem:[%s4012_s23 + $0x31] sm:$0xff] }
  0x35   : > { %3083 = vrot.lane.b32.xlu1 %v3082_v32, %s3718_s20 }
  0x36   : > { %3078 = vrot.lane.b32.xlu0 %v3052_v21, %s3718_s20 }
  0x39   : > { %3093 = vrot.lane.b32.xlu1 %v3052_v21, %s3713_s13  ;;  %v2790_v21 = vld [vmem:[%s3830_s11 + $0xca] sm:$0xff] }
  0x3a   : > { %3088 = vrot.lane.b32.xlu0 %v3062_v24, %s3719_s12  ;;  %v3302_v22 = vpack.i.bf16 %v2790_v21, %v2789_v20  ;;  %v2677_v20 = vld [vmem:[%s4012_s23 + $0x32] sm:$0xff] }
  0x3d   : > { %3103 = vrot.lane.b32.xlu1 %v3082_v32, %s3713_s13 }
  0x3e   : > { %3098 = vrot.lane.b32.xlu0 %v3097_v37, %s3719_s12 }
  0x41   : > { %3113 = vrot.lane.b32.xlu1 %v3097_v37, %s3712_s28 }
  0x42   : > { %3108 = vrot.lane.b32.xlu0 %v3062_v24, %s3712_s28  ;;  %v2808_v24 = vld [vmem:[%s3830_s11 + $0xe0] sm:$0xff] }
  0x45   : > { %3123 = vrot.lane.b32.xlu1 %v3122_v40, %s3714_s15 }
  0x46   : > { %3118 = vrot.lane.b32.xlu0 %v3072_v27, %s3714_s15  ;;  %v3312_v27 = vpack.i.bf16 %v2808_v24, %v2807_v23 }
  0x49   : > { %3133 = vrot.lane.b32.xlu1 %v3132_v43, %s3715_s17 }
  0x4a   : > { %3128 = vrot.lane.b32.xlu0 %v3082_v32, %s3715_s17  ;;  %v3322_v32 = vpack.i.bf16 %v2824_v29, %v2823_v28  ;;  %v2678_v28 = vld [vmem:[%s4012_s23 + $0x3a] sm:$0xff]  ;;  %v2695_v29 = vld [vmem:[%s4012_s23 + $0x48] sm:$0xff] }
  0x4d   : > { %3143 = vrot.lane.b32.xlu1 %v3142_v46, %s3716_s18 }
  0x4e   : > { %3138 = vrot.lane.b32.xlu0 %v3097_v37, %s3716_s18  ;;  %v3332_v37 = vpack.i.bf16 %v2840_v34, %v2839_v33 }
  0x51   : > { %3153 = vrot.lane.b32.xlu1 %v3152_v49, %s3717_s25 }
  0x52   : > { %3148 = vrot.lane.b32.xlu0 %v3122_v40, %s3717_s25  ;;  %v384_v40 = vld [vmem:[%s4012_s23 + $0x19] sm:$0xff] }
  0x55   : > { %3163 = vrot.lane.b32.xlu1 %v3162_v52, %s3718_s20 }
  0x56   : > { %3158 = vrot.lane.b32.xlu0 %v3132_v43, %s3718_s20 }
  0x59   : > { %3173 = vrot.lane.b32.xlu1 %v3132_v43, %s3713_s13  ;;  %v382_v43 = vld [vmem:[%s4012_s23 + $0x1] sm:$0xff] }
  0x5a   : > { %3168 = vrot.lane.b32.xlu0 %v3142_v46, %s3719_s12 }
  0x5d   : > { %3183 = vrot.lane.b32.xlu1 %v3162_v52, %s3713_s13 }
  0x5e   : > { %3178 = vrot.lane.b32.xlu0 %v3177_v55, %s3719_s12 }
  0x61   : > { %3193 = vrot.lane.b32.xlu1 %v3177_v55, %s3712_s28 }
  0x62   : > { %3188 = vrot.lane.b32.xlu0 %v3142_v46, %s3712_s28  ;;  %v4025_v46 = vpack.i.bf16 %v385_v41, %v384_v40 }
  0x65   : > { %3203 = vrot.lane.b32.xlu1 %v3202_v58, %s3714_s15 }
  0x66   : > { %3198 = vrot.lane.b32.xlu0 %v3152_v49, %s3714_s15  ;;  %v3337_v49 = vpack.i.bf16 %v383_v44, %v382_v43 }
  0x69   : > { %3213 = vrot.lane.b32.xlu1 %v3212_v61, %s3715_s17 }
  0x6a   : > { %3208 = vrot.lane.b32.xlu0 %v3162_v52, %s3715_s17 }
  0x6d   : > { %3223 = vrot.lane.b32.xlu1 %v3222_v0, %s3716_s18 }
  0x6e   : > { %3218 = vrot.lane.b32.xlu0 %v3177_v55, %s3716_s18 }
  0x71   : > { %3233 = vrot.lane.b32.xlu1 %v3232_v3, %s3717_s25 }
  0x72   : > { %3228 = vrot.lane.b32.xlu0 %v3202_v58, %s3717_s25  ;;  %v4038_v58 = vpack.i.bf16 %v401_v51, %v400_v50 }
  0x75   : > { %3243 = vrot.lane.b32.xlu1 %v3242_v6, %s3718_s20 }
  0x76   : > { %3238 = vrot.lane.b32.xlu0 %v3212_v61, %s3718_s20 }
  0x79   : > { %3253 = vrot.lane.b32.xlu1 %v3212_v61, %s3713_s13  ;;  %v2646_v61 = vld [vmem:[%s4012_s23 + $0x38] sm:$0xff] }
  0x7a   : > { %3248 = vrot.lane.b32.xlu0 %v3222_v0, %s3719_s12  ;;  %v4059_v10 = vpack.i.bf16 %v2646_v61, %v2645_v60 }
  0x7d   : > { %3263 = vrot.lane.b32.xlu1 %v3242_v6, %s3713_s13 }
  0x7e   : > { %3258 = vrot.lane.b32.xlu0 %v3257_v9, %s3719_s12 }
  0x81   : > { %3273 = vrot.lane.b32.xlu1 %v3257_v9, %s3712_s28 }
  0x82   : > { %3268 = vrot.lane.b32.xlu0 %v3222_v0, %s3712_s28 }
  0x85   : > { %3283 = vrot.lane.b32.xlu1 %v3282_v12, %s3714_s15 }
  0x86   : > { %3278 = vrot.lane.b32.xlu0 %v3232_v3, %s3714_s15  ;;  %v4046_v3 = vld [vmem:[%s4012_s23 + $0x18] sm:$0xff] }
  0x87   : > { %v3357_v17 = vpack.i.bf16 %v4049_v4, %v4046_v3 }
  0x89   : > { %3293 = vrot.lane.b32.xlu1 %v3292_v19, %s3715_s17 }
  0x8a   : > { %3288 = vrot.lane.b32.xlu0 %v3242_v6, %s3715_s17  ;;  %v1174_v6 = vld [vmem:[%s3830_s11 + $0x8] sm:$0xff] }
  0x8d   : > { %3303 = vrot.lane.b32.xlu1 %v3302_v22, %s3716_s18 }
  0x8e   : > { %3298 = vrot.lane.b32.xlu0 %v3257_v9, %s3716_s18 }
  0x8f   : > { %v3999_v30 = vpop.permute.xlu1 %3028 }
  0x90   : > { %v3019_v31 = vpop.permute.xlu0 %3018  ;;  %v3031_v11 = vunpack.i.h.bf16 %v3999_v30 }
  0x91   : > { %3313 = vrot.lane.b32.xlu1 %v3312_v27, %s3717_s25  ;;  %v3021_v62 = vunpack.i.h.bf16 %v3019_v31  ;;  %v3020_v63 = vunpack.i.l.bf16 %v3019_v31 }
  0x92   : > { %3308 = vrot.lane.b32.xlu0 %v3282_v12, %s3717_s25  ;;  %v3030_v12 = vunpack.i.l.bf16 %v3999_v30  ;;  %v2696_v30 = vld [vmem:[%s4012_s23 + $0x50] sm:$0xff] }
  0x93   : > { %v4005_v35 = vpop.permute.xlu1 %3033  ;;  %v1831_v21 = vsel %vm1028_vm3, %v1173_v5, %v3020_v63 }
  0x94   : > { %v4007_v36 = vpop.permute.xlu0 %3023  ;;  %v3036_v23 = vunpack.i.h.bf16 %v4005_v35  ;;  %v3035_v24 = vunpack.i.l.bf16 %v4005_v35 }
  0x95   : > { %3323 = vrot.lane.b32.xlu1 %v3322_v32, %s3718_s20  ;;  %v3026_v7 = vunpack.i.h.bf16 %v4007_v36  ;;  %v3025_v8 = vunpack.i.l.bf16 %v4007_v36 }
  0x96   : > { %3318 = vrot.lane.b32.xlu0 %v3292_v19, %s3718_s20  ;;  %v2662_v19 = vld [vmem:[%s4012_s23 + $0x39] sm:$0xff] }
  0x97   : > { %v4018_v42 = vpop.permute.xlu1 %3043  ;;  %v1833_v31 = vsel %vm1028_vm3, %v3849_v15, %v3025_v8  ;;  %v1834_v32 = vsel %vm1028_vm3, %v3852_v16, %v3026_v7  ;;  %v4088_v40 = vpack.i.bf16 %v2662_v19, %v2661_v18  ;;  %v1847_v15 = vsel %vm1045_vm4, %v1831_v21, %v3030_v12 }
  0x98   : > { %v4022_v45 = vpop.permute.xlu0 %3038  ;;  %v3046_v33 = vunpack.i.h.bf16 %v4018_v42  ;;  %v3045_v34 = vunpack.i.l.bf16 %v4018_v42  ;;  %v4093_v16 = vpack.i.bf16 %v2678_v28, %v2677_v20  ;;  %v4095_v42 = vpack.i.bf16 %v2696_v30, %v2695_v29  ;;  %v2712_v29 = vld [vmem:[%s4012_s23 + $0x51] sm:$0xff] }
  0x99   : > { %3333 = vrot.lane.b32.xlu1 %v3332_v37, %s3719_s12  ;;  %v3041_v37 = vunpack.i.h.bf16 %v4022_v45  ;;  %v3040_v35 = vunpack.i.l.bf16 %v4022_v45  ;;  %v1849_v43 = vsel %vm1045_vm4, %v1833_v31, %v3035_v24  ;;  %v1850_v44 = vsel %vm1045_vm4, %v1834_v32, %v3036_v23 }
  0x9a   : > { %3328 = vrot.lane.b32.xlu0 %v3302_v22, %s3719_s12  ;;  %v1832_v22 = vsel %vm1028_vm3, %v1174_v6, %v3021_v62  ;;  %v1865_v51 = vsel %vm1062_vm5, %v1849_v43, %v3045_v34  ;;  %v1866_v53 = vsel %vm1062_vm5, %v1850_v44, %v3046_v33 }
  0x9b   : > { %v4030_v52 = vpop.permute.xlu1 %3053  ;;  %v1848_v41 = vsel %vm1045_vm4, %v1832_v22, %v3031_v11  ;;  %v1863_v61 = vsel %vm1062_vm5, %v1847_v15, %v3040_v35 }
  0x9c   : > { %v4034_v55 = vpop.permute.xlu0 %3048  ;;  %v1864_v62 = vsel %vm1062_vm5, %v1848_v41, %v3041_v37  ;;  %v3055_v6 = vunpack.i.l.bf16 %v4030_v52 }
  0x9d   : > { %3343 = vrot.lane.b32.xlu1 %v4025_v46, %s3713_s13  ;;  %v3051_v45 = vunpack.i.h.bf16 %v4034_v55 }
  0x9e   : > { %3338 = vrot.lane.b32.xlu0 %v3337_v49, %s3713_s13  ;;  %v3050_v49 = vunpack.i.l.bf16 %v4034_v55  ;;  %v3056_v55 = vunpack.i.h.bf16 %v4030_v52 }
  0x9f   : > { %v4043_v0 = vpop.permute.xlu1 %3063  ;;  %v1880_v11 = vsel %vm1079_vm6, %v1864_v62, %v3051_v45 }
  0xa0   : > { %v4055_v9 = vpop.permute.xlu0 %3058  ;;  %v3066_v12 = vunpack.i.h.bf16 %v4043_v0  ;;  %v1882_v34 = vsel %vm1079_vm6, %v1866_v53, %v3056_v55  ;;  %v2728_v55 = vld [vmem:[%s4012_s23 + $0x52] sm:$0xff] }
  0xa1   : > { %3353 = vrot.lane.b32.xlu1 %v4038_v58, %s3712_s28  ;;  %v3061_v54 = vunpack.i.h.bf16 %v4055_v9 }
  0xa2   : > { %3348 = vrot.lane.b32.xlu0 %v3347_v59, %s3712_s28  ;;  %v3060_v59 = vunpack.i.l.bf16 %v4055_v9  ;;  %v1879_v9 = vsel %vm1079_vm6, %v1863_v61, %v3050_v49  ;;  %v1898_v41 = vsel %vm1096_vm7, %v1882_v34, %v3066_v12 }
  0xa3   : > { %v4073_v27 = vpop.permute.xlu1 %3073  ;;  %v1896_v52 = vsel %vm1096_vm7, %v1880_v11, %v3061_v54  ;;  %v2649_v11 = vld [vmem:[%s4012_s23 + $0x60] sm:$0xff] }
  0xa4   : > { %v3069_v36 = vpop.permute.xlu0 %3068  ;;  %v1895_v19 = vsel %vm1096_vm7, %v1879_v9, %v3060_v59  ;;  %v3076_v20 = vunpack.i.h.bf16 %v4073_v27 }
  0xa5   : > { %3363 = vrot.lane.b32.xlu1 %v4059_v10, %s3714_s15  ;;  %v3071_v63 = vunpack.i.h.bf16 %v3069_v36  ;;  %v3070_v5 = vunpack.i.l.bf16 %v3069_v36 }
  0xa6   : > { %3358 = vrot.lane.b32.xlu0 %v3357_v17, %s3714_s15  ;;  %v3065_v17 = vunpack.i.l.bf16 %v4043_v0  ;;  %v2711_v0 = vld [vmem:[%s4012_s23 + $0x49] sm:$0xff]  ;;  %v1914_v49 = vsel %vm1113_vm8, %v1898_v41, %v3076_v20 }
  0xa7   : > { %v3084_v50 = vpop.permute.xlu1 %3083  ;;  %v1911_v24 = vsel %vm1113_vm8, %v1895_v19, %v3070_v5  ;;  %v1912_v28 = vsel %vm1113_vm8, %v1896_v52, %v3071_v63  ;;  %v4141_v45 = vpack.i.bf16 %v2712_v29, %v2711_v0  ;;  %v2665_v19 = vld [vmem:[%s4012_s23 + $0x61] sm:$0xff]  ;;  %v2666_v52 = vld [vmem:[%s4012_s23 + $0x69] sm:$0xff] }
  0xa8   : > { %v3079_v60 = vpop.permute.xlu0 %3078  ;;  %v3086_v30 = vunpack.i.h.bf16 %v3084_v50  ;;  %v3085_v31 = vunpack.i.l.bf16 %v3084_v50  ;;  %v2681_v20 = vld [vmem:[%s4012_s23 + $0x62] sm:$0xff]  ;;  %v4199_v34 = vpack.i.bf16 %v2666_v52, %v2665_v19 }
  0xa9   : > { %3373 = vrot.lane.b32.xlu1 %v4088_v40, %s3715_s17  ;;  %v3081_v7 = vunpack.i.h.bf16 %v3079_v60  ;;  %v3080_v8 = vunpack.i.l.bf16 %v3079_v60 }
  0xaa   : > { %3368 = vrot.lane.b32.xlu0 %v4025_v46, %s3715_s17  ;;  %v3075_v46 = vunpack.i.l.bf16 %v4073_v27  ;;  %v1881_v27 = vsel %vm1079_vm6, %v1865_v51, %v3055_v6  ;;  %v1930_v54 = vsel %vm1130_vm9, %v1914_v49, %v3086_v30 }
  0xab   : > { %v4117_v18 = vpop.permute.xlu1 %3093  ;;  %v1927_v32 = vsel %vm1130_vm9, %v1911_v24, %v3080_v8  ;;  %v1928_v33 = vsel %vm1130_vm9, %v1912_v28, %v3081_v7  ;;  %v1897_v15 = vsel %vm1096_vm7, %v1881_v27, %v3065_v17  ;;  %v2699_v24 = vld [vmem:[%s4012_s23 + $0x78] sm:$0xff]  ;;  %v2700_v28 = vld [vmem:[%s4012_s23 + $0x80] sm:$0xff] }
  0xac   : > { %v3089_v21 = vpop.permute.xlu0 %3088  ;;  %v3096_v0 = vunpack.i.h.bf16 %v4117_v18  ;;  %v3095_v29 = vunpack.i.l.bf16 %v4117_v18  ;;  %v4203_v41 = vpack.i.bf16 %v2700_v28, %v2699_v24 }
  0xad   : > { %v3091_v22 = vunpack.i.h.bf16 %v3089_v21  ;;  %v3090_v23 = vunpack.i.l.bf16 %v3089_v21  ;;  %3383 = vrot.lane.b32.xlu1 %v4093_v16, %s3716_s18 }
  0xae   : > { %3378 = vrot.lane.b32.xlu0 %v4038_v58, %s3716_s18  ;;  %v1913_v58 = vsel %vm1113_vm8, %v1897_v15, %v3075_v46  ;;  %v1836_v49 = vsel %vm1028_vm3, %v3846_v14, %v3096_v0 }
  0xaf   : > { %v4135_v36 = vpop.permute.xlu1 %3103  ;;  %v1943_v37 = vsel %vm1147_vm10, %v1927_v32, %v3090_v23  ;;  %v1944_v35 = vsel %vm1147_vm10, %v1928_v33, %v3091_v22  ;;  %v1929_v53 = vsel %vm1130_vm9, %v1913_v58, %v3085_v31  ;;  %v2682_v23 = vld [vmem:[%s4012_s23 + $0x6a] sm:$0xff]  ;;  %v1835_v58 = vsel %vm1028_vm3, %v3843_v13, %v3095_v29 }
  0xb0   : > { %v3099_v43 = vpop.permute.xlu0 %3098  ;;  %v1959_v44 = vpack.c.bf16 %v1944_v35, %v1943_v37  ;;  %v3106_v46 = vunpack.i.h.bf16 %v4135_v36  ;;  %v3105_v21 = vunpack.i.l.bf16 %v4135_v36  ;;  %v4201_v15 = vpack.i.bf16 %v2682_v23, %v2681_v20 }
  0xb1   : > { %v3101_v50 = vunpack.i.h.bf16 %v3099_v43  ;;  %v3100_v51 = vunpack.i.l.bf16 %v3099_v43  ;;  %3393 = vrot.lane.b32.xlu1 %v4095_v42, %s3717_s25 }
  0xb2   : > { %2926 = vmatprep.mubr.msk.bf16.mxu1 %vm1994_vm11, %v1959_v44  ;;  %3388 = vrot.lane.b32.xlu0 %v4059_v10, %s3717_s25  ;;  %v2727_v10 = vld [vmem:[%s4012_s23 + $0x4a] sm:$0xff]  ;;  %v1837_v18 = vsel %vm1028_vm3, %v3869_v25, %v3105_v21  ;;  %v1838_v43 = vsel %vm1028_vm3, %v3872_v26, %v3106_v46 }
  0xb3   : > { %v1945_v59 = vsel %vm1147_vm10, %v1929_v53, %v3100_v51  ;;  %v1946_v60 = vsel %vm1147_vm10, %v1930_v54, %v3101_v50  ;;  %v3114_v61 = vpop.permute.xlu1 %3113  ;;  %v4165_v7 = vpack.i.bf16 %v2728_v55, %v2727_v10 }
  0xb4   : > { %v3109_v62 = vpop.permute.xlu0 %3108  ;;  %v1960_v63 = vpack.c.bf16 %v1946_v60, %v1945_v59  ;;  %v3116_v30 = vunpack.i.h.bf16 %v3114_v61  ;;  %v3115_v31 = vunpack.i.l.bf16 %v3114_v61 }
  0xb5   : > { %3403 = vrot.lane.b32.xlu1 %v4141_v45, %s3718_s20  ;;  %v3111_v32 = vunpack.i.h.bf16 %v3109_v62  ;;  %v3110_v33 = vunpack.i.l.bf16 %v3109_v62 }
  0xb6   : > { %2927 = vmatmul.mubr.msk.bf16.vlgmr.msra.gmra.mrb[0].mxu1 %vm1994_vm11, %v1960_v63  ;;  %3398 = vrot.lane.b32.xlu0 %v4088_v40, %s3718_s20  ;;  %v1853_v50 = vsel %vm1045_vm4, %v1837_v18, %v3115_v31  ;;  %v1854_v51 = vsel %vm1045_vm4, %v1838_v43, %v3116_v30  ;;  %v2716_v30 = vld [vmem:[%s4012_s23 + $0x81] sm:$0xff] }
  0xb7   : > { %v3124_v5 = vpop.permute.xlu1 %3123  ;;  %v1851_v25 = vsel %vm1045_vm4, %v1835_v58, %v3110_v33  ;;  %v1852_v26 = vsel %vm1045_vm4, %v1836_v49, %v3111_v32 }
  0xb8   : > { %v3119_v6 = vpop.permute.xlu0 %3118  ;;  %v3126_v36 = vunpack.i.h.bf16 %v3124_v5  ;;  %v3125_v37 = vunpack.i.l.bf16 %v3124_v5 }
  0xb9   : > { %3413 = vrot.lane.b32.xlu1 %v4088_v40, %s3713_s13  ;;  %v2650_v40 = vld [vmem:[%s4012_s23 + $0x68] sm:$0xff]  ;;  %v3120_v44 = vunpack.i.l.bf16 %v3119_v6 }
  0xba   : > { %3408 = vrot.lane.b32.xlu0 %v4093_v16, %s3719_s12  ;;  %v4188_v22 = vpack.i.bf16 %v2650_v40, %v2649_v11  ;;  %v1869_v13 = vsel %vm1062_vm5, %v1853_v50, %v3125_v37  ;;  %v1870_v14 = vsel %vm1062_vm5, %v1854_v51, %v3126_v36 }
  0xbb   : > { %v4167_v8 = vpop.permute.xlu1 %3133 }
  0xbc   : > { %v4169_v9 = vpop.permute.xlu0 %3128  ;;  %v3136_v55 = vunpack.i.h.bf16 %v4167_v8 }
  0xbd   : > { %3423 = vrot.lane.b32.xlu1 %v4141_v45, %s3713_s13  ;;  %v3131_v53 = vunpack.i.h.bf16 %v4169_v9  ;;  %v3130_v54 = vunpack.i.l.bf16 %v4169_v9 }
  0xbe   : > { %3418 = vrot.lane.b32.xlu0 %v4165_v7, %s3719_s12  ;;  %v1886_v37 = vsel %vm1079_vm6, %v1870_v14, %v3136_v55 }
  0xbf   : > { %v4177_v12 = vpop.permute.xlu1 %3143 }
  0xc0   : > { %v4179_v17 = vpop.permute.xlu0 %3138  ;;  %v3146_v19 = vunpack.i.h.bf16 %v4177_v12  ;;  %v3145_v52 = vunpack.i.l.bf16 %v4177_v12  ;;  %v2715_v12 = vld [vmem:[%s4012_s23 + $0x79] sm:$0xff] }
  0xc1   : > { %3433 = vrot.lane.b32.xlu1 %v4165_v7, %s3712_s28  ;;  %v3141_v60 = vunpack.i.h.bf16 %v4179_v17  ;;  %v3140_v61 = vunpack.i.l.bf16 %v4179_v17  ;;  %v4263_v50 = vpack.i.bf16 %v2716_v30, %v2715_v12 }
  0xc2   : > { %3428 = vrot.lane.b32.xlu0 %v4093_v16, %s3712_s28  ;;  %v3121_v16 = vunpack.i.h.bf16 %v3119_v6  ;;  %v3135_v6 = vunpack.i.l.bf16 %v4167_v8 }
  0xc3   : > { %v4197_v27 = vpop.permute.xlu1 %3153 }
  0xc4   : > { %v3149_v35 = vpop.permute.xlu0 %3148  ;;  %v1868_v63 = vsel %vm1062_vm5, %v1852_v26, %v3121_v16  ;;  %v3156_v21 = vunpack.i.h.bf16 %v4197_v27 }
  0xc5   : > { %3443 = vrot.lane.b32.xlu1 %v4188_v22, %s3714_s15  ;;  %v3151_v5 = vunpack.i.h.bf16 %v3149_v35  ;;  %v3150_v10 = vunpack.i.l.bf16 %v3149_v35  ;;  %v1884_v17 = vsel %vm1079_vm6, %v1868_v63, %v3131_v53 }
  0xc6   : > { %3438 = vrot.lane.b32.xlu0 %v4095_v42, %s3714_s15  ;;  %v1867_v42 = vsel %vm1062_vm5, %v1851_v25, %v3120_v44  ;;  %v1900_v8 = vsel %vm1096_vm7, %v1884_v17, %v3141_v60  ;;  %v1902_v44 = vsel %vm1096_vm7, %v1886_v37, %v3146_v19  ;;  %v2670_v17 = vld [vmem:[%s4012_s23 + $0x99] sm:$0xff] }
  0xc7   : > { %v3164_v59 = vpop.permute.xlu1 %3163  ;;  %v1883_v40 = vsel %vm1079_vm6, %v1867_v42, %v3130_v54  ;;  %v1916_v28 = vsel %vm1113_vm8, %v1900_v8, %v3151_v5  ;;  %v1918_v51 = vsel %vm1113_vm8, %v1902_v44, %v3156_v21  ;;  %v2732_v42 = vld [vmem:[%s4012_s23 + $0x82] sm:$0xff]  ;;  %v2685_v19 = vld [vmem:[%s4012_s23 + $0x92] sm:$0xff]  ;;  %v2686_v21 = vld [vmem:[%s4012_s23 + $0x9a] sm:$0xff] }
  0xc8   : > { %v3159_v62 = vpop.permute.xlu0 %3158  ;;  %v1899_v46 = vsel %vm1096_vm7, %v1883_v40, %v3140_v61  ;;  %v3166_v31 = vunpack.i.h.bf16 %v3164_v59  ;;  %v3165_v32 = vunpack.i.l.bf16 %v3164_v59  ;;  %v2669_v40 = vld [vmem:[%s4012_s23 + $0x91] sm:$0xff]  ;;  %v4333_v37 = vpack.i.bf16 %v2686_v21, %v2685_v19 }
  0xc9   : > { %3453 = vrot.lane.b32.xlu1 %v4199_v34, %s3715_s17  ;;  %v3161_v9 = vunpack.i.h.bf16 %v3159_v62  ;;  %v3160_v11 = vunpack.i.l.bf16 %v3159_v62  ;;  %v1915_v24 = vsel %vm1113_vm8, %v1899_v46, %v3150_v10 }
  0xca   : > { %3448 = vrot.lane.b32.xlu0 %v4141_v45, %s3715_s17  ;;  %v3155_v45 = vunpack.i.l.bf16 %v4197_v27  ;;  %v1885_v27 = vsel %vm1079_vm6, %v1869_v13, %v3135_v6  ;;  %v1934_v54 = vsel %vm1130_vm9, %v1918_v51, %v3166_v31  ;;  %v4298_v6 = vld [vmem:[%s4012_s23 + $0x90] sm:$0xff] }
  0xcb   : > { %v4239_v20 = vpop.permute.xlu1 %3173  ;;  %v1931_v33 = vsel %vm1130_vm9, %v1915_v24, %v3160_v11  ;;  %v1932_v36 = vsel %vm1130_vm9, %v1916_v28, %v3161_v9  ;;  %v1901_v16 = vsel %vm1096_vm7, %v1885_v27, %v3145_v52 }
  0xcc   : > { %v3169_v23 = vpop.permute.xlu0 %3168  ;;  %v3176_v24 = vunpack.i.h.bf16 %v4239_v20  ;;  %v3175_v28 = vunpack.i.l.bf16 %v4239_v20 }
  0xcd   : > { %v3171_v0 = vunpack.i.h.bf16 %v3169_v23  ;;  %v3170_v29 = vunpack.i.l.bf16 %v3169_v23  ;;  %3463 = vrot.lane.b32.xlu1 %v4201_v15, %s3716_s18  ;;  %v4323_v23 = vld [vmem:[%s4012_s23 + $0xb0] sm:$0xff] }
  0xce   : > { %3458 = vrot.lane.b32.xlu0 %v4165_v7, %s3716_s18  ;;  %v1917_v7 = vsel %vm1113_vm8, %v1901_v16, %v3155_v45  ;;  %v4320_v45 = vld [vmem:[%s4012_s23 + $0xa8] sm:$0xff]  ;;  %v1839_v16 = vsel %vm1028_vm3, %v3902_v38, %v3175_v28  ;;  %v1840_v44 = vsel %vm1028_vm3, %v3905_v39, %v3176_v24 }
  0xcf   : > { %v1947_v35 = vsel %vm1147_vm10, %v1931_v33, %v3170_v29  ;;  %v1948_v18 = vsel %vm1147_vm10, %v1932_v36, %v3171_v0  ;;  %v4259_v43 = vpop.permute.xlu1 %3183  ;;  %v1933_v53 = vsel %vm1130_vm9, %v1917_v7, %v3165_v32  ;;  %v4331_v32 = vpack.i.bf16 %v2670_v17, %v2669_v40 }
  0xd0   : > { %v3179_v58 = vpop.permute.xlu0 %3178  ;;  %v1961_v49 = vpack.c.bf16 %v1948_v18, %v1947_v35  ;;  %v3186_v52 = vunpack.i.h.bf16 %v4259_v43  ;;  %v3185_v46 = vunpack.i.l.bf16 %v4259_v43  ;;  %v4337_v35 = vpack.i.bf16 %v4323_v23, %v4320_v45 }
  0xd1   : > { %v3181_v25 = vunpack.i.h.bf16 %v3179_v58  ;;  %v3180_v26 = vunpack.i.l.bf16 %v3179_v58  ;;  %3473 = vrot.lane.b32.xlu1 %v4203_v41, %s3717_s25 }
  0xd2   : > { %2930 = vmatprep.mubr.msk.bf16.mxu1 %vm1994_vm11, %v1961_v49  ;;  %3468 = vrot.lane.b32.xlu0 %v4188_v22, %s3717_s25  ;;  %v2731_v22 = vld [vmem:[%s4012_s23 + $0x7a] sm:$0xff]  ;;  %v1841_v20 = vsel %vm1028_vm3, %v3920_v47, %v3185_v46 }
  0xd3   : > { %v1949_v59 = vsel %vm1147_vm10, %v1933_v53, %v3180_v26  ;;  %v1950_v13 = vsel %vm1147_vm10, %v1934_v54, %v3181_v25  ;;  %v3194_v14 = vpop.permute.xlu1 %3193  ;;  %v4287_v5 = vpack.i.bf16 %v2732_v42, %v2731_v22 }
  0xd4   : > { %v3189_v60 = vpop.permute.xlu0 %3188  ;;  %v1962_v61 = vpack.c.bf16 %v1950_v13, %v1949_v59  ;;  %v3196_v0 = vunpack.i.h.bf16 %v3194_v14  ;;  %v3195_v29 = vunpack.i.l.bf16 %v3194_v14 }
  0xd5   : > { %3483 = vrot.lane.b32.xlu1 %v4263_v50, %s3718_s20  ;;  %v3191_v12 = vunpack.i.h.bf16 %v3189_v60  ;;  %v3190_v30 = vunpack.i.l.bf16 %v3189_v60 }
  0xd6   : > { %2931 = vmatmul.mubr.msk.bf16.gmra.mrb[4].mxu1 %vm1994_vm11, %v1962_v61  ;;  %3478 = vrot.lane.b32.xlu0 %v4199_v34, %s3718_s20  ;;  %v1857_v58 = vsel %vm1045_vm4, %v1841_v20, %v3195_v29 }
  0xd7   : > { %v3204_v62 = vpop.permute.xlu1 %3203  ;;  %v1855_v47 = vsel %vm1045_vm4, %v1839_v16, %v3190_v30 }
  0xd8   : > { %v3199_v63 = vpop.permute.xlu0 %3198  ;;  %v3206_v33 = vunpack.i.h.bf16 %v3204_v62  ;;  %v3205_v36 = vunpack.i.l.bf16 %v3204_v62 }
  0xd9   : > { %3493 = vrot.lane.b32.xlu1 %v4199_v34, %s3713_s13  ;;  %v4301_v34 = vld [vmem:[%s4012_s23 + $0x98] sm:$0xff]  ;;  %v3201_v18 = vunpack.i.h.bf16 %v3199_v63  ;;  %v3200_v43 = vunpack.i.l.bf16 %v3199_v63 }
  0xda   : > { %3488 = vrot.lane.b32.xlu0 %v4201_v15, %s3719_s12  ;;  %v4316_v8 = vpack.i.bf16 %v4301_v34, %v4298_v6  ;;  %v1873_v38 = vsel %vm1062_vm5, %v1857_v58, %v3205_v36 }
  0xdb   : > { %v4289_v10 = vpop.permute.xlu1 %3213 }
  0xdc   : > { %v4291_v55 = vpop.permute.xlu0 %3208  ;;  %v3216_v60 = vunpack.i.h.bf16 %v4289_v10  ;;  %v3215_v61 = vunpack.i.l.bf16 %v4289_v10 }
  0xdd   : > { %3503 = vrot.lane.b32.xlu1 %v4263_v50, %s3713_s13  ;;  %v3211_v7 = vunpack.i.h.bf16 %v4291_v55  ;;  %v3210_v51 = vunpack.i.l.bf16 %v4291_v55 }
  0xde   : > { %3498 = vrot.lane.b32.xlu0 %v4287_v5, %s3719_s12 }
  0xdf   : > { %v4303_v9 = vpop.permute.xlu1 %3223 }
  0xe0   : > { %v4305_v11 = vpop.permute.xlu0 %3218  ;;  %v3226_v55 = vunpack.i.h.bf16 %v4303_v9 }
  0xe1   : > { %3513 = vrot.lane.b32.xlu1 %v4287_v5, %s3712_s28  ;;  %v3221_v26 = vunpack.i.h.bf16 %v4305_v11  ;;  %v3220_v53 = vunpack.i.l.bf16 %v4305_v11  ;;  %v3225_v11 = vunpack.i.l.bf16 %v4303_v9  ;;  %v2719_v9 = vld [vmem:[%s4012_s23 + $0xa9] sm:$0xff] }
  0xe2   : > { %3508 = vrot.lane.b32.xlu0 %v4201_v15, %s3712_s28  ;;  %v1842_v15 = vsel %vm1028_vm3, %v3923_v48, %v3186_v52  ;;  %v1856_v48 = vsel %vm1045_vm4, %v1840_v44, %v3191_v12 }
  0xe3   : > { %v4329_v31 = vpop.permute.xlu1 %3233  ;;  %v1858_v49 = vsel %vm1045_vm4, %v1842_v15, %v3196_v0  ;;  %v1872_v59 = vsel %vm1062_vm5, %v1856_v48, %v3201_v18  ;;  %v2720_v0 = vld [vmem:[%s4012_s23 + $0xb1] sm:$0xff] }
  0xe4   : > { %v3229_v27 = vpop.permute.xlu0 %3228  ;;  %v1874_v39 = vsel %vm1062_vm5, %v1858_v49, %v3206_v33  ;;  %v1888_v63 = vsel %vm1079_vm6, %v1872_v59, %v3211_v7  ;;  %v3236_v19 = vunpack.i.h.bf16 %v4329_v31  ;;  %v4395_v58 = vpack.i.bf16 %v2720_v0, %v2719_v9 }
  0xe5   : > { %3523 = vrot.lane.b32.xlu1 %v4316_v8, %s3714_s15  ;;  %v3231_v13 = vunpack.i.h.bf16 %v3229_v27  ;;  %v3230_v14 = vunpack.i.l.bf16 %v3229_v27  ;;  %v1904_v10 = vsel %vm1096_vm7, %v1888_v63, %v3221_v26  ;;  %v1890_v36 = vsel %vm1079_vm6, %v1874_v39, %v3216_v60  ;;  %v2689_v63 = vld [vmem:[%s4012_s23 + $0xc2] sm:$0xff] }
  0xe6   : > { %3518 = vrot.lane.b32.xlu0 %v4203_v41, %s3714_s15  ;;  %v1871_v41 = vsel %vm1062_vm5, %v1855_v47, %v3200_v43  ;;  %v1906_v43 = vsel %vm1096_vm7, %v1890_v36, %v3226_v55 }
  0xe7   : > { %v3244_v25 = vpop.permute.xlu1 %3243  ;;  %v1887_v42 = vsel %vm1079_vm6, %v1871_v41, %v3210_v51  ;;  %v1920_v21 = vsel %vm1113_vm8, %v1904_v10, %v3231_v13  ;;  %v2736_v41 = vld [vmem:[%s4012_s23 + $0xb2] sm:$0xff]  ;;  %v4437_v10 = vld [vmem:[%s4012_s23 + $0xe0] sm:$0xff] }
  0xe8   : > { %v3239_v54 = vpop.permute.xlu0 %3238  ;;  %v1903_v17 = vsel %vm1096_vm7, %v1887_v42, %v3220_v53  ;;  %v3246_v29 = vunpack.i.h.bf16 %v3244_v25  ;;  %v3245_v12 = vunpack.i.l.bf16 %v3244_v25  ;;  %v2674_v42 = vld [vmem:[%s4012_s23 + $0xc9] sm:$0xff] }
  0xe9   : > { %3533 = vrot.lane.b32.xlu1 %v4331_v32, %s3715_s17  ;;  %v3241_v62 = vunpack.i.h.bf16 %v3239_v54  ;;  %v3240_v22 = vunpack.i.l.bf16 %v3239_v54  ;;  %v1919_v46 = vsel %vm1113_vm8, %v1903_v17, %v3230_v14  ;;  %v2735_v54 = vld [vmem:[%s4012_s23 + $0xaa] sm:$0xff]  ;;  %v4434_v17 = vld [vmem:[%s4012_s23 + $0xd8] sm:$0xff] }
  0xea   : > { %3528 = vrot.lane.b32.xlu0 %v4263_v50, %s3715_s17  ;;  %v3235_v50 = vunpack.i.l.bf16 %v4329_v31  ;;  %v1889_v31 = vsel %vm1079_vm6, %v1873_v38, %v3215_v61  ;;  %v4419_v13 = vpack.i.bf16 %v2736_v41, %v2735_v54  ;;  %v2657_v61 = vld [vmem:[%s4012_s23 + $0xc0] sm:$0xff] }
  0xeb   : > { %v4373_v40 = vpop.permute.xlu1 %3253  ;;  %v1935_v30 = vsel %vm1130_vm9, %v1919_v46, %v3240_v22  ;;  %v1936_v33 = vsel %vm1130_vm9, %v1920_v21, %v3241_v62  ;;  %v1905_v18 = vsel %vm1096_vm7, %v1889_v31, %v3225_v11  ;;  %v2658_v62 = vld [vmem:[%s4012_s23 + $0xc8] sm:$0xff] }
  0xec   : > { %v3249_v52 = vpop.permute.xlu0 %3248  ;;  %v1921_v49 = vsel %vm1113_vm8, %v1905_v18, %v3235_v50  ;;  %v2673_v22 = vld [vmem:[%s4012_s23 + $0xc1] sm:$0xff]  ;;  %v3255_v50 = vunpack.i.l.bf16 %v4373_v40  ;;  %v4441_v0 = vpack.i.bf16 %v2658_v62, %v2657_v61 }
  0xed   : > { %v3251_v24 = vunpack.i.h.bf16 %v3249_v52  ;;  %v3250_v28 = vunpack.i.l.bf16 %v3249_v52  ;;  %3543 = vrot.lane.b32.xlu1 %v4333_v37, %s3716_s18  ;;  %v1937_v7 = vsel %vm1130_vm9, %v1921_v49, %v3245_v12 }
  0xee   : > { %3538 = vrot.lane.b32.xlu0 %v4287_v5, %s3716_s18  ;;  %v1922_v5 = vsel %vm1113_vm8, %v1906_v43, %v3236_v19  ;;  %v3256_v19 = vunpack.i.h.bf16 %v4373_v40  ;;  %v3632_v40 = vpack.i.bf16 %v4437_v10, %v4434_v17  ;;  %v2739_v17 = vld [vmem:[%s4012_s23 + $0xda] sm:$0xff]  ;;  %v2740_v10 = vld [vmem:[%s4012_s23 + $0xe2] sm:$0xff] }
  0xef   : > { %v1951_v27 = vsel %vm1147_vm10, %v1935_v30, %v3250_v28  ;;  %v1952_v20 = vsel %vm1147_vm10, %v1936_v33, %v3251_v24  ;;  %v3264_v15 = vpop.permute.xlu1 %3263  ;;  %v1938_v51 = vsel %vm1130_vm9, %v1922_v5, %v3246_v29  ;;  %v4443_v29 = vpack.i.bf16 %v2674_v42, %v2673_v22 }
  0xf0   : > { %v1963_v16 = vpack.c.bf16 %v1952_v20, %v1951_v27  ;;  %v3259_v44 = vpop.permute.xlu0 %3258  ;;  %v3266_v55 = vunpack.i.h.bf16 %v3264_v15  ;;  %v3265_v11 = vunpack.i.l.bf16 %v3264_v15  ;;  %v1843_v15 = vsel %vm1028_vm3, %v3942_v56, %v3255_v50 }
  0xf1   : > { %v3261_v47 = vunpack.i.h.bf16 %v3259_v44  ;;  %v3260_v48 = vunpack.i.l.bf16 %v3259_v44  ;;  %3553 = vrot.lane.b32.xlu1 %v4337_v35, %s3717_s25  ;;  %v1844_v18 = vsel %vm1028_vm3, %v3945_v57, %v3256_v19 }
  0xf2   : > { %2934 = vmatprep.mubr.msk.bf16.mxu1 %vm1994_vm11, %v1963_v16  ;;  %3548 = vrot.lane.b32.xlu0 %v4316_v8, %s3717_s25  ;;  %v1845_v31 = vsel %vm1028_vm3, %v3960_v1, %v3265_v11  ;;  %v1846_v36 = vsel %vm1028_vm3, %v3963_v2, %v3266_v55 }
  0xf3   : > { %v1953_v25 = vsel %vm1147_vm10, %v1937_v7, %v3260_v48  ;;  %v1954_v38 = vsel %vm1147_vm10, %v1938_v51, %v3261_v47  ;;  %v3274_v39 = vpop.permute.xlu1 %3273 }
  0xf4   : > { %v1964_v26 = vpack.c.bf16 %v1954_v38, %v1953_v25  ;;  %v3269_v53 = vpop.permute.xlu0 %3268  ;;  %v3276_v52 = vunpack.i.h.bf16 %v3274_v39  ;;  %v3275_v46 = vunpack.i.l.bf16 %v3274_v39 }
  0xf5   : > { %3563 = vrot.lane.b32.xlu1 %v4395_v58, %s3718_s20  ;;  %v3271_v24 = vunpack.i.h.bf16 %v3269_v53  ;;  %v3270_v28 = vunpack.i.l.bf16 %v3269_v53 }
  0xf6   : > { %2935 = vmatmul.mubr.msk.bf16.gmra.mrb[8].mxu1 %vm1994_vm11, %v1964_v26  ;;  %3558 = vrot.lane.b32.xlu0 %v4331_v32, %s3718_s20  ;;  %v1861_v43 = vsel %vm1045_vm4, %v1845_v31, %v3275_v46  ;;  %v1862_v16 = vsel %vm1045_vm4, %v1846_v36, %v3276_v52 }
  0xf7   : > { %v3284_v8 = vpop.permute.xlu1 %3283  ;;  %v1859_v1 = vsel %vm1045_vm4, %v1843_v15, %v3270_v28  ;;  %v1860_v2 = vsel %vm1045_vm4, %v1844_v18, %v3271_v24 }
  0xf8   : > { %v3279_v59 = vpop.permute.xlu0 %3278  ;;  %v3286_v12 = vunpack.i.h.bf16 %v3284_v8  ;;  %v3285_v30 = vunpack.i.l.bf16 %v3284_v8 }
  0xf9   : > { %3573 = vrot.lane.b32.xlu1 %v4331_v32, %s3713_s13  ;;  %v2690_v32 = vld [vmem:[%s4012_s23 + $0xca] sm:$0xff]  ;;  %v3281_v27 = vunpack.i.h.bf16 %v3279_v59  ;;  %v3280_v20 = vunpack.i.l.bf16 %v3279_v59 }
  0xfa   : > { %3568 = vrot.lane.b32.xlu0 %v4333_v37, %s3719_s12  ;;  %v4447_v33 = vpack.i.bf16 %v2690_v32, %v2689_v63  ;;  %v1878_v48 = vsel %vm1062_vm5, %v1862_v16, %v3286_v12 }
  0xfb   : > { %v3294_v14 = vpop.permute.xlu1 %3293  ;;  %v1875_v7 = vsel %vm1062_vm5, %v1859_v1, %v3280_v20  ;;  %v1876_v51 = vsel %vm1062_vm5, %v1860_v2, %v3281_v27 }
  0xfc   : > { %v4421_v60 = vpop.permute.xlu0 %3288  ;;  %v3296_v49 = vunpack.i.h.bf16 %v3294_v14  ;;  %v3295_v5 = vunpack.i.l.bf16 %v3294_v14 }
  0xfd   : > { %3583 = vrot.lane.b32.xlu1 %v4395_v58, %s3713_s13  ;;  %v3291_v56 = vunpack.i.h.bf16 %v4421_v60  ;;  %v3290_v57 = vunpack.i.l.bf16 %v4421_v60 }
  0xfe   : > { %3578 = vrot.lane.b32.xlu0 %v4419_v13, %s3719_s12  ;;  %v1894_v59 = vsel %vm1079_vm6, %v1878_v48, %v3296_v49 }
  0xff   : > { %v3304_v21 = vpop.permute.xlu1 %3303  ;;  %v1891_v62 = vsel %vm1079_vm6, %v1875_v7, %v3290_v57  ;;  %v1892_v22 = vsel %vm1079_vm6, %v1876_v51, %v3291_v56 }
 0x100   : > { %v3299_v9 = vpop.permute.xlu0 %3298  ;;  %v3306_v25 = vunpack.i.h.bf16 %v3304_v21  ;;  %v3305_v38 = vunpack.i.l.bf16 %v3304_v21 }
 0x101   : > { %3593 = vrot.lane.b32.xlu1 %v4419_v13, %s3712_s28  ;;  %v3301_v39 = vunpack.i.h.bf16 %v3299_v9  ;;  %v3300_v26 = vunpack.i.l.bf16 %v3299_v9 }
 0x102   : > { %3588 = vrot.lane.b32.xlu0 %v4333_v37, %s3712_s28  ;;  %v1877_v37 = vsel %vm1062_vm5, %v1861_v43, %v3285_v30  ;;  %v1910_v55 = vsel %vm1096_vm7, %v1894_v59, %v3306_v25 }
 0x103   : > { %v3314_v44 = vpop.permute.xlu1 %3313  ;;  %v1893_v41 = vsel %vm1079_vm6, %v1877_v37, %v3295_v5  ;;  %v1907_v19 = vsel %vm1096_vm7, %v1891_v62, %v3300_v26  ;;  %v1908_v50 = vsel %vm1096_vm7, %v1892_v22, %v3301_v39  ;;  %v366_v62 = vld [vmem:[%s4012_s23] sm:$0xff]  ;;  %v367_v22 = vld [vmem:[%s4012_s23 + $0x8] sm:$0xff] }
 0x104   : > { %v3309_v47 = vpop.permute.xlu0 %3308  ;;  %v3316_v53 = vunpack.i.h.bf16 %v3314_v44  ;;  %v3315_v8 = vunpack.i.l.bf16 %v3314_v44 }
 0x105   : > { %3603 = vrot.lane.b32.xlu1 %v4441_v0, %s3714_s15  ;;  %v3311_v14 = vunpack.i.h.bf16 %v3309_v47  ;;  %v3310_v60 = vunpack.i.l.bf16 %v3309_v47  ;;  %v2724_v47 = vld [vmem:[%s4012_s23 + $0xe1] sm:$0xff] }
 0x106   : > { %3598 = vrot.lane.b32.xlu0 %v4337_v35, %s3714_s15  ;;  %v1909_v35 = vsel %vm1096_vm7, %v1893_v41, %v3305_v38  ;;  %v1926_v46 = vsel %vm1113_vm8, %v1910_v55, %v3316_v53 }
 0x107   : > { %v3324_v54 = vpop.permute.xlu1 %3323  ;;  %v1925_v52 = vsel %vm1113_vm8, %v1909_v35, %v3315_v8  ;;  %v1923_v24 = vsel %vm1113_vm8, %v1907_v19, %v3310_v60  ;;  %v1924_v28 = vsel %vm1113_vm8, %v1908_v50, %v3311_v14 }
 0x108   : > { %v3319_v61 = vpop.permute.xlu0 %3318  ;;  %v3326_v42 = vunpack.i.h.bf16 %v3324_v54  ;;  %v3325_v63 = vunpack.i.l.bf16 %v3324_v54 }
 0x109   : > { %3613 = vrot.lane.b32.xlu1 %v4443_v29, %s3715_s17  ;;  %v3321_v11 = vunpack.i.h.bf16 %v3319_v61  ;;  %v3320_v32 = vunpack.i.l.bf16 %v3319_v61 }
 0x10a   : > { %3608 = vrot.lane.b32.xlu0 %v4395_v58, %s3715_s17  ;;  %v1941_v31 = vsel %vm1130_vm9, %v1925_v52, %v3325_v63  ;;  %v1942_v58 = vsel %vm1130_vm9, %v1926_v46, %v3326_v42 }
 0x10b   : > { %v3334_v21 = vpop.permute.xlu1 %3333  ;;  %v1939_v20 = vsel %vm1130_vm9, %v1923_v24, %v3320_v32  ;;  %v1940_v15 = vsel %vm1130_vm9, %v1924_v28, %v3321_v11 }
 0x10c   : > { %v3336_v9 = vunpack.i.h.bf16 %v3334_v21  ;;  %v3335_v12 = vunpack.i.l.bf16 %v3334_v21  ;;  %v3329_v30 = vpop.permute.xlu0 %3328 }
 0x10d   : > { %v3331_v36 = vunpack.i.h.bf16 %v3329_v30  ;;  %v3330_v27 = vunpack.i.l.bf16 %v3329_v30  ;;  %3623 = vrot.lane.b32.xlu1 %v4447_v33, %s3716_s18 }
 0x10e   : > { %v1957_v18 = vsel %vm1147_vm10, %v1941_v31, %v3335_v12  ;;  %v1958_v43 = vsel %vm1147_vm10, %v1942_v58, %v3336_v9  ;;  %3618 = vrot.lane.b32.xlu0 %v4419_v13, %s3716_s18  ;;  %v2723_v13 = vld [vmem:[%s4012_s23 + $0xd9] sm:$0xff] }
 0x10f   : > { %v1966_v16 = vpack.c.bf16 %v1958_v43, %v1957_v18  ;;  %v1955_v44 = vsel %vm1147_vm10, %v1939_v20, %v3330_v27  ;;  %v1956_v1 = vsel %vm1147_vm10, %v1940_v15, %v3331_v36  ;;  %v3344_v2 = vpop.permute.xlu1 %3343  ;;  %v3642_v56 = vpack.i.bf16 %v2724_v47, %v2723_v13 }
 0x110   : > { %v1965_v49 = vpack.c.bf16 %v1956_v1, %v1955_v44  ;;  %v3339_v5 = vpop.permute.xlu0 %3338  ;;  %v3346_v59 = vunpack.i.h.bf16 %v3344_v2  ;;  %v3345_v14 = vunpack.i.l.bf16 %v3344_v2 }
 0x111   : > { %3633 = vrot.lane.b32.xlu1 %v3632_v40, %s3717_s25  ;;  %v3341_v60 = vunpack.i.h.bf16 %v3339_v5  ;;  %v3340_v61 = vunpack.i.l.bf16 %v3339_v5 }
 0x112   : > { %2938 = vmatprep.mubr.msk.bf16.mxu1 %vm1994_vm11, %v1965_v49  ;;  %3628 = vrot.lane.b32.xlu0 %v4441_v0, %s3717_s25  ;;  %v3652_v0 = vpack.i.bf16 %v2740_v10, %v2739_v17  ;;  %v1031_v19 = vsel %vm1028_vm3, %v4046_v3, %v3345_v14  ;;  %v1032_v50 = vsel %vm1028_vm3, %v4049_v4, %v3346_v59  ;;  %v3664_v10 = vld [vmem:[%s4012_s23 + $0x38] sm:$0xff] }
 0x113   : > { %2939 = vmatmul.mubr.msk.bf16.gmra.mrb[12].mxu1 %vm1994_vm11, %v1966_v16  ;;  %v3354_v37 = vpop.permute.xlu1 %3353  ;;  %v1029_v52 = vsel %vm1028_vm3, %v366_v62, %v3340_v61  ;;  %v1030_v46 = vsel %vm1028_vm3, %v367_v22, %v3341_v60 }
 0x114   : > { %v3349_v48 = vpop.permute.xlu0 %3348  ;;  %v3356_v63 = vunpack.i.h.bf16 %v3354_v37  ;;  %v3355_v35 = vunpack.i.l.bf16 %v3354_v37 }
 0x115   : > { %3648 = vrot.lane.b32.xlu1 %v4447_v33, %s3719_s12  ;;  %v3351_v11 = vunpack.i.h.bf16 %v3349_v48  ;;  %v3350_v32 = vunpack.i.l.bf16 %v3349_v48 }
 0x116   : > { %3638 = vrot.lane.b32.xlu0 %v4443_v29, %s3718_s20  ;;  %v1048_v30 = vsel %vm1045_vm4, %v1031_v19, %v3355_v35  ;;  %v1049_v31 = vsel %vm1045_vm4, %v1032_v50, %v3356_v63 }
 0x117   : > { %v3364_v40 = vpop.permute.xlu1 %3363  ;;  %v1046_v3 = vsel %vm1045_vm4, %v1029_v52, %v3350_v32  ;;  %v1047_v36 = vsel %vm1045_vm4, %v1030_v46, %v3351_v11 }
 0x118   : > { %v3359_v57 = vpop.permute.xlu0 %3358  ;;  %v3366_v21 = vunpack.i.h.bf16 %v3364_v40  ;;  %v3365_v24 = vunpack.i.l.bf16 %v3364_v40 }
 0x119   : > { %v3361_v9 = vunpack.i.h.bf16 %v3359_v57  ;;  %v3360_v12 = vunpack.i.l.bf16 %v3359_v57 }
 0x11a   : > { %3643 = vrot.lane.b32.xlu0 %v3642_v56, %s3718_s20  ;;  %v1065_v16 = vsel %vm1062_vm5, %v1048_v30, %v3365_v24  ;;  %v1066_v44 = vsel %vm1062_vm5, %v1049_v31, %v3366_v21  ;;  %v3663_v56 = vld [vmem:[%s4012_s23 + $0x30] sm:$0xff]  ;;  %v3665_v31 = vld [vmem:[%s4012_s23 + $0x48] sm:$0xff] }
 0x11b   : > { %v4520_v7 = vpop.permute.xlu1 %3373  ;;  %v1063_v2 = vsel %vm1062_vm5, %v1046_v3, %v3360_v12  ;;  %v1064_v49 = vsel %vm1062_vm5, %v1047_v36, %v3361_v9 }
 0x11c   : > { %v4522_v51 = vpop.permute.xlu0 %3368  ;;  %v3376_v20 = vunpack.i.h.bf16 %v4520_v7  ;;  %v3375_v15 = vunpack.i.l.bf16 %v4520_v7 }
 0x11d   : > { %v3371_v18 = vunpack.i.h.bf16 %v4522_v51  ;;  %v3370_v43 = vunpack.i.l.bf16 %v4522_v51 }
 0x11e   : > { %3653 = vrot.lane.b32.xlu0 %v3652_v0, %s3719_s12  ;;  %v1082_v0 = vsel %vm1079_vm6, %v1065_v16, %v3375_v15  ;;  %v1083_v7 = vsel %vm1079_vm6, %v1066_v44, %v3376_v20 }
 0x11f   : > { %v4525_v33 = vpop.permute.xlu1 %3383  ;;  %v1080_v51 = vsel %vm1079_vm6, %v1063_v2, %v3370_v43 }
 0x120   : > { %v4527_v25 = vpop.permute.xlu0 %3378  ;;  %v3386_v37 = vunpack.i.h.bf16 %v4525_v33  ;;  %v3385_v48 = vunpack.i.l.bf16 %v4525_v33 }
 0x121   : > { %v3380_v57 = vunpack.i.l.bf16 %v4527_v25  ;;  %v3381_v35 = vunpack.i.h.bf16 %v4527_v25 }
 0x122   : > { %v1100_v11 = vsel %vm1096_vm7, %v1083_v7, %v3386_v37 }
 0x123   : > { %v4529_v29 = vpop.permute.xlu1 %3393  ;;  %v1097_v19 = vsel %vm1096_vm7, %v1080_v51, %v3380_v57  ;;  %v3660_v57 = vld [vmem:[%s4892_s2] sm:$0xff]  }
 0x124   : > { %v4531_v38 = vpop.permute.xlu0 %3388  ;;  %v3395_v32 = vunpack.i.l.bf16 %v4529_v29  ;;  %v3396_v50 = vunpack.i.h.bf16 %v4529_v29  ;;  %v3666_v29 = vld [vmem:[%s4012_s23 + $0x50] sm:$0xff]  ;;  %2898 = vmatprep.subr.bf16.mxu0 %v3660_v57 }
 0x125   : > { %v3391_v12 = vunpack.i.h.bf16 %v4531_v38  ;;  %v3390_v30 = vunpack.i.l.bf16 %v4531_v38  ;;  %2899 = vmatpush3.bf16.msra.mxu0 %v3660_v57 }
 0x126   : > { %v1117_v16 = vsel %vm1113_vm8, %v1100_v11, %v3396_v50 }
 0x127   : > { %v4533_v39 = vpop.permute.xlu1 %3403 }
 0x128   : > { %v4535_v26 = vpop.permute.xlu0 %3398  ;;  %v3405_v44 = vunpack.i.l.bf16 %v4533_v39  ;;  %v3406_v7 = vunpack.i.h.bf16 %v4533_v39 }
 0x12b   : > { %v3414_v53 = vpop.permute.xlu1 %3413 }
 0x12c   : > { %v4537_v8 = vpop.permute.xlu0 %3408  ;;  %v3416_v4 = vunpack.i.h.bf16 %v3414_v53  ;;  %v3415_v27 = vunpack.i.l.bf16 %v3414_v53  ;;  %v1081_v53 = vsel %vm1079_vm6, %v1064_v49, %v3371_v18 }
 0x12d   : > { %v3410_v50 = vunpack.i.l.bf16 %v4537_v8 }
 0x12e   : > { %v1033_v17 = vsel %vm1028_vm3, %v3663_v56, %v3415_v27  ;;  %v1034_v40 = vsel %vm1028_vm3, %v3664_v10, %v3416_v4  ;;  %v1098_v4 = vsel %vm1096_vm7, %v1081_v53, %v3381_v35 }
 0x12f   : > { %v4539_v54 = vpop.permute.xlu1 %3423 }
 0x130   : > { %v4541_v41 = vpop.permute.xlu0 %3418  ;;  %v3426_v62 = vunpack.i.h.bf16 %v4539_v54  ;;  %v3425_v22 = vunpack.i.l.bf16 %v4539_v54 }
 0x132   : > { %v1036_v3 = vsel %vm1028_vm3, %v3666_v29, %v3426_v62 }
 0x133   : > { %v4545_v42 = vpop.permute.xlu1 %3433 }
 0x134   : > { %v3429_v55 = vpop.permute.xlu0 %3428  ;;  %v3436_v24 = vunpack.i.h.bf16 %v4545_v42  ;;  %v3435_v25 = vunpack.i.l.bf16 %v4545_v42 }
 0x135   : > { %v3431_v5 = vunpack.i.h.bf16 %v3429_v55  ;;  %v3430_v13 = vunpack.i.l.bf16 %v3429_v55  ;;  %v1099_v55 = vsel %vm1096_vm7, %v1082_v0, %v3385_v48  ;;  %v3401_v0 = vunpack.i.h.bf16 %v4535_v26 }
 0x136   : > { %v1116_v27 = vsel %vm1113_vm8, %v1099_v55, %v3395_v32  ;;  %v1053_v49 = vsel %vm1045_vm4, %v1036_v3, %v3436_v24  ;;  %v3421_v55 = vunpack.i.h.bf16 %v4541_v41 }
 0x137   : > { %v4553_v28 = vpop.permute.xlu1 %3443  ;;  %v1050_v33 = vsel %vm1045_vm4, %v1033_v17, %v3430_v13  ;;  %v1051_v61 = vsel %vm1045_vm4, %v1034_v40, %v3431_v5  ;;  %v1114_v13 = vsel %vm1113_vm8, %v1097_v19, %v3390_v30  ;;  %v3661_v19 = vld [vmem:[%s4892_s2 + $0x8] sm:$0xff]  }
 0x138   : > { %v3439_v58 = vpop.permute.xlu0 %3438  ;;  %v3446_v43 = vunpack.i.h.bf16 %v4553_v28  ;;  %v3445_v38 = vunpack.i.l.bf16 %v4553_v28  ;;  %2900 = vmatprep.subr.bf16.mxu0 %v3661_v19 }
 0x139   : > { %v3441_v59 = vunpack.i.h.bf16 %v3439_v58  ;;  %v3440_v14 = vunpack.i.l.bf16 %v3439_v58  ;;  %v1035_v58 = vsel %vm1028_vm3, %v3665_v31, %v3425_v22  ;;  %2901 = vmatpush3.bf16.msra.mxu0 %v3661_v19  ;;  %v3669_v19 = vld [vmem:[%s4012_s23 + $0x78] sm:$0xff] }
 0x13a   : > { %v1052_v2 = vsel %vm1045_vm4, %v1035_v58, %v3435_v25  ;;  %v1070_v53 = vsel %vm1062_vm5, %v1053_v49, %v3446_v43 }
 0x13b   : > { %v4565_v1 = vpop.permute.xlu1 %3453  ;;  %v1067_v21 = vsel %vm1062_vm5, %v1050_v33, %v3440_v14  ;;  %v1068_v54 = vsel %vm1062_vm5, %v1051_v61, %v3441_v59  ;;  %v1069_v51 = vsel %vm1062_vm5, %v1052_v2, %v3445_v38  ;;  %v3400_v59 = vunpack.i.l.bf16 %v4535_v26 }
 0x13c   : > { %v3449_v47 = vpop.permute.xlu0 %3448  ;;  %v3456_v10 = vunpack.i.h.bf16 %v4565_v1  ;;  %v3455_v40 = vunpack.i.l.bf16 %v4565_v1  ;;  %v1133_v14 = vsel %vm1130_vm9, %v1116_v27, %v3405_v44  ;;  %v3420_v26 = vunpack.i.l.bf16 %v4541_v41 }
 0x13d   : > { %v3451_v52 = vunpack.i.h.bf16 %v3449_v47  ;;  %v3450_v46 = vunpack.i.l.bf16 %v3449_v47  ;;  %v1115_v47 = vsel %vm1113_vm8, %v1098_v4, %v3391_v12  ;;  %v3411_v12 = vunpack.i.h.bf16 %v4537_v8 }
 0x13e   : > { %v1086_v11 = vsel %vm1079_vm6, %v1069_v51, %v3455_v40  ;;  %v1087_v32 = vsel %vm1079_vm6, %v1070_v53, %v3456_v10  ;;  %v1150_v29 = vsel %vm1147_vm10, %v1133_v14, %v3420_v26  ;;  %v3667_v53 = vld [vmem:[%s4012_s23 + $0x60] sm:$0xff]  ;;  %v3668_v14 = vld [vmem:[%s4012_s23 + $0x68] sm:$0xff] }
 0x13f   : > { %v4580_v60 = vpop.permute.xlu1 %3463  ;;  %v1084_v42 = vsel %vm1079_vm6, %v1067_v21, %v3450_v46  ;;  %v1085_v18 = vsel %vm1079_vm6, %v1068_v54, %v3451_v52  ;;  %v1134_v52 = vsel %vm1130_vm9, %v1117_v16, %v3406_v7 }
 0x140   : > { %v3459_v63 = vpop.permute.xlu0 %3458  ;;  %v3465_v39 = vunpack.i.l.bf16 %v4580_v60  ;;  %v1151_v3 = vsel %vm1147_vm10, %v1134_v52, %v3421_v55  ;;  %v3670_v52 = vld [vmem:[%s4012_s23 + $0x80] sm:$0xff] }
 0x141   : > { %v3461_v20 = vunpack.i.h.bf16 %v3459_v63  ;;  %v3460_v15 = vunpack.i.l.bf16 %v3459_v63  ;;  %v3466_v63 = vunpack.i.h.bf16 %v4580_v60  ;;  %v1165_v44 = vpack.c.bf16 %v1151_v3, %v1150_v29 }
 0x142   : > { %v1103_v30 = vsel %vm1096_vm7, %v1086_v11, %v3465_v39 }
 0x143   : > { %v4596_v9 = vpop.permute.xlu1 %3473  ;;  %v1101_v17 = vsel %vm1096_vm7, %v1084_v42, %v3460_v15  ;;  %v1102_v28 = vsel %vm1096_vm7, %v1085_v18, %v3461_v20  ;;  %v1104_v31 = vsel %vm1096_vm7, %v1087_v32, %v3466_v63  ;;  %v1131_v20 = vsel %vm1130_vm9, %v1114_v13, %v3400_v59 }
 0x144   : > { %v3469_v36 = vpop.permute.xlu0 %3468  ;;  %v3476_v41 = vunpack.i.h.bf16 %v4596_v9  ;;  %v3475_v24 = vunpack.i.l.bf16 %v4596_v9  ;;  %v3662_v9 = vld [vmem:[%s4892_s2 + $0x10] ss:$0 sps:$4 sm:$0x33]   ;;  %v1132_v15 = vsel %vm1130_vm9, %v1115_v47, %v3401_v0  ;;  %v1148_v16 = vsel %vm1147_vm10, %v1131_v20, %v3410_v50 }
 0x145   : > { %v3471_v37 = vunpack.i.h.bf16 %v3469_v36  ;;  %v3470_v48 = vunpack.i.l.bf16 %v3469_v36  ;;  %2962 = vmatprep.subr.msk.bf16.mxu0 %vm2019_vm2, %v3662_v9  ;;  %v2021_v38 = vsel %vm2019_vm2, %v3662_v9, 0  ;;  %v1149_v49 = vsel %vm1147_vm10, %v1132_v15, %v3411_v12 }
 0x146   : > { %v1120_v42 = vsel %vm1113_vm8, %v1103_v30, %v3475_v24  ;;  %v1121_v18 = vsel %vm1113_vm8, %v1104_v31, %v3476_v41  ;;  %2903 = vmatpush3.bf16.msra.mxu0 %v2021_v38 }
 0x147   : > { %v4614_v5 = vpop.permute.xlu1 %3483  ;;  %v1118_v1 = vsel %vm1113_vm8, %v1101_v17, %v3470_v48  ;;  %v1119_v22 = vsel %vm1113_vm8, %v1102_v28, %v3471_v37  ;;  %v1164_v37 = vpack.c.bf16 %v1149_v49, %v1148_v16 }
 0x148   : > { %v3479_v56 = vpop.permute.xlu0 %3478  ;;  %v3486_v36 = vunpack.i.h.bf16 %v4614_v5  ;;  %v3485_v4 = vunpack.i.l.bf16 %v4614_v5 }
 0x149   : > { %v3481_v33 = vunpack.i.h.bf16 %v3479_v56  ;;  %v3480_v61 = vunpack.i.l.bf16 %v3479_v56  ;;  %2904 = vmatprep.mubr.msk.bf16.mxu0 %vm1994_vm11, %v1164_v37 }
 0x14a   : > { %v1137_v48 = vsel %vm1130_vm9, %v1120_v42, %v3485_v4  ;;  %v1138_v56 = vsel %vm1130_vm9, %v1121_v18, %v3486_v36  ;;  %2905 = vmatmul.mubr.msk.bf16.vlgmr.msra.gmra.mrb[0].mxu0 %vm1994_vm11, %v1165_v44 }
 0x14b   : > { %v4631_v62 = vpop.permute.xlu1 %3493  ;;  %v1135_v21 = vsel %vm1130_vm9, %v1118_v1, %v3480_v61  ;;  %v1136_v54 = vsel %vm1130_vm9, %v1119_v22, %v3481_v33 }
 0x14c   : > { %v3489_v35 = vpop.permute.xlu0 %3488  ;;  %v3496_v17 = vunpack.i.h.bf16 %v4631_v62  ;;  %v3495_v28 = vunpack.i.l.bf16 %v4631_v62 }
 0x14d   : > { %v3491_v46 = vunpack.i.h.bf16 %v3489_v35  ;;  %v3490_v60 = vunpack.i.l.bf16 %v3489_v35 }
 0x14e   : > { %v1037_v59 = vsel %vm1028_vm3, %v3667_v53, %v3495_v28  ;;  %v1038_v33 = vsel %vm1028_vm3, %v3668_v14, %v3496_v17 }
 0x14f   : > { %v4650_v25 = vpop.permute.xlu1 %3503  ;;  %v1152_v8 = vsel %vm1147_vm10, %v1135_v21, %v3490_v60  ;;  %v1153_v27 = vsel %vm1147_vm10, %v1136_v54, %v3491_v46 }
 0x150   : > { %v3499_v58 = vpop.permute.xlu0 %3498  ;;  %v1166_v5 = vpack.c.bf16 %v1153_v27, %v1152_v8  ;;  %v3506_v61 = vunpack.i.h.bf16 %v4650_v25  ;;  %v3505_v62 = vunpack.i.l.bf16 %v4650_v25 }
 0x151   : > { %v3501_v13 = vunpack.i.h.bf16 %v3499_v58  ;;  %v3500_v47 = vunpack.i.l.bf16 %v3499_v58 }
 0x152   : > { %2908 = vmatprep.mubr.msk.bf16.mxu0 %vm1994_vm11, %v1166_v5  ;;  %v1039_v50 = vsel %vm1028_vm3, %v3669_v19, %v3505_v62  ;;  %v1040_v46 = vsel %vm1028_vm3, %v3670_v52, %v3506_v61 }
 0x153   : > { %v3514_v43 = vpop.permute.xlu1 %3513  ;;  %v1154_v57 = vsel %vm1147_vm10, %v1137_v48, %v3500_v47  ;;  %v1155_v0 = vsel %vm1147_vm10, %v1138_v56, %v3501_v13 }
 0x154   : > { %v3509_v2 = vpop.permute.xlu0 %3508  ;;  %v1167_v22 = vpack.c.bf16 %v1155_v0, %v1154_v57  ;;  %v3516_v11 = vunpack.i.h.bf16 %v3514_v43  ;;  %v3515_v32 = vunpack.i.l.bf16 %v3514_v43 }
 0x155   : > { %v3511_v7 = vunpack.i.h.bf16 %v3509_v2  ;;  %v3510_v51 = vunpack.i.l.bf16 %v3509_v2 }
 0x156   : > { %2909 = vmatmul.mubr.msk.bf16.gmra.mrb[4].mxu0 %vm1994_vm11, %v1167_v22  ;;  %v1056_v31 = vsel %vm1045_vm4, %v1039_v50, %v3515_v32  ;;  %v1057_v58 = vsel %vm1045_vm4, %v1040_v46, %v3516_v11 }
 0x157   : > { %v3524_v10 = vpop.permute.xlu1 %3523  ;;  %v1054_v55 = vsel %vm1045_vm4, %v1037_v59, %v3510_v51  ;;  %v1055_v26 = vsel %vm1045_vm4, %v1038_v33, %v3511_v7 }
 0x158   : > { %v3519_v40 = vpop.permute.xlu0 %3518  ;;  %v3526_v25 = vunpack.i.h.bf16 %v3524_v10  ;;  %v3525_v12 = vunpack.i.l.bf16 %v3524_v10 }
 0x159   : > { %v3521_v63 = vunpack.i.h.bf16 %v3519_v40  ;;  %v3520_v39 = vunpack.i.l.bf16 %v3519_v40 }
 0x15a   : > { %v1073_v20 = vsel %vm1062_vm5, %v1056_v31, %v3525_v12  ;;  %v1074_v15 = vsel %vm1062_vm5, %v1057_v58, %v3526_v25 }
 0x15b   : > { %v3534_v1 = vpop.permute.xlu1 %3533  ;;  %v1071_v41 = vsel %vm1062_vm5, %v1054_v55, %v3520_v39  ;;  %v1072_v24 = vsel %vm1062_vm5, %v1055_v26, %v3521_v63 }
 0x15c   : > { %v3529_v35 = vpop.permute.xlu0 %3528  ;;  %v3536_v9 = vunpack.i.h.bf16 %v3534_v1  ;;  %v3535_v8 = vunpack.i.l.bf16 %v3534_v1 }
 0x15d   : > { %v3531_v60 = vunpack.i.h.bf16 %v3529_v35  ;;  %v3530_v21 = vunpack.i.l.bf16 %v3529_v35 }
 0x15e   : > { %v1090_v49 = vsel %vm1079_vm6, %v1073_v20, %v3535_v8  ;;  %v1091_v5 = vsel %vm1079_vm6, %v1074_v15, %v3536_v9 }
 0x15f   : > { %v3544_v54 = vpop.permute.xlu1 %3543  ;;  %v1088_v36 = vsel %vm1079_vm6, %v1071_v41, %v3530_v21  ;;  %v1089_v4 = vsel %vm1079_vm6, %v1072_v24, %v3531_v60 }
 0x160   : > { %v3539_v30 = vpop.permute.xlu0 %3538  ;;  %v3546_v44 = vunpack.i.h.bf16 %v3544_v54  ;;  %v3545_v2 = vunpack.i.l.bf16 %v3544_v54 }
 0x161   : > { %v3541_v29 = vunpack.i.h.bf16 %v3539_v30  ;;  %v3540_v3 = vunpack.i.l.bf16 %v3539_v30 }
 0x162   : > { %v1107_v40 = vsel %vm1096_vm7, %v1090_v49, %v3545_v2  ;;  %v1108_v57 = vsel %vm1096_vm7, %v1091_v5, %v3546_v44 }
 0x163   : > { %v3554_v27 = vpop.permute.xlu1 %3553  ;;  %v1105_v38 = vsel %vm1096_vm7, %v1088_v36, %v3540_v3  ;;  %v1106_v16 = vsel %vm1096_vm7, %v1089_v4, %v3541_v29 }
 0x164   : > { %v3549_v42 = vpop.permute.xlu0 %3548  ;;  %v3556_v37 = vunpack.i.h.bf16 %v3554_v27  ;;  %v3555_v48 = vunpack.i.l.bf16 %v3554_v27 }
 0x165   : > { %v3551_v18 = vunpack.i.h.bf16 %v3549_v42  ;;  %v3550_v43 = vunpack.i.l.bf16 %v3549_v42 }
 0x166   : > { %v1124_v33 = vsel %vm1113_vm8, %v1107_v40, %v3555_v48  ;;  %v1125_v61 = vsel %vm1113_vm8, %v1108_v57, %v3556_v37 }
 0x167   : > { %v3564_v13 = vpop.permute.xlu1 %3563  ;;  %v1122_v56 = vsel %vm1113_vm8, %v1105_v38, %v3550_v43  ;;  %v1123_v17 = vsel %vm1113_vm8, %v1106_v16, %v3551_v18 }
 0x168   : > { %v3559_v47 = vpop.permute.xlu0 %3558  ;;  %v3566_v59 = vunpack.i.h.bf16 %v3564_v13  ;;  %v3565_v14 = vunpack.i.l.bf16 %v3564_v13 }
 0x169   : > { %v3561_v28 = vunpack.i.h.bf16 %v3559_v47  ;;  %v3560_v10 = vunpack.i.l.bf16 %v3559_v47 }
 0x16a   : > { %v1141_v55 = vsel %vm1130_vm9, %v1124_v33, %v3565_v14  ;;  %v1142_v26 = vsel %vm1130_vm9, %v1125_v61, %v3566_v59 }
 0x16b   : > { %v3574_v0 = vpop.permute.xlu1 %3573  ;;  %v1139_v7 = vsel %vm1130_vm9, %v1122_v56, %v3560_v10  ;;  %v1140_v51 = vsel %vm1130_vm9, %v1123_v17, %v3561_v28 }
 0x16c   : > { %v3569_v53 = vpop.permute.xlu0 %3568  ;;  %v3576_v54 = vunpack.i.h.bf16 %v3574_v0  ;;  %v3575_v41 = vunpack.i.l.bf16 %v3574_v0  ;;  %v3720_v0 = vmov 0.0  }
 0x16d   : > { %v3571_v62 = vunpack.i.h.bf16 %v3569_v53  ;;  %v3570_v1 = vunpack.i.l.bf16 %v3569_v53  ;;  %2942 = vmatprep.subr.bf16.mxu0 %v3720_v0 }
 0x16e   : > { %v1041_v58 = vsel %vm1028_vm3, %v4298_v6, %v3575_v41  ;;  %v1042_v29 = vsel %vm1028_vm3, %v4301_v34, %v3576_v54 }
 0x16f   : > { %v1156_v22 = vsel %vm1147_vm10, %v1139_v7, %v3570_v1  ;;  %v1157_v63 = vsel %vm1147_vm10, %v1140_v51, %v3571_v62  ;;  %v3584_v39 = vpop.permute.xlu1 %3583 }
 0x170   : > { %v1168_v35 = vpack.c.bf16 %v1157_v63, %v1156_v22  ;;  %v3579_v11 = vpop.permute.xlu0 %3578  ;;  %v3585_v24 = vunpack.i.l.bf16 %v3584_v39  ;;  %v3586_v3 = vunpack.i.h.bf16 %v3584_v39 }
 0x171   : > { %v3581_v32 = vunpack.i.h.bf16 %v3579_v11  ;;  %v3580_v19 = vunpack.i.l.bf16 %v3579_v11 }
 0x172   : > { %2912 = vmatprep.mubr.msk.bf16.mxu0 %vm1994_vm11, %v1168_v35  ;;  %v1043_v4 = vsel %vm1028_vm3, %v4320_v45, %v3585_v24  ;;  %v1044_v6 = vsel %vm1028_vm3, %v4323_v23, %v3586_v3  ;;  %v4749_v35 = vld [vmem:[%s4895_s5] ss:$0 sm:$0xff] }
 0x173   : > { %v1158_v50 = vsel %vm1147_vm10, %v1141_v55, %v3580_v19  ;;  %v1159_v52 = vsel %vm1147_vm10, %v1142_v26, %v3581_v32  ;;  %v3594_v46 = vpop.permute.xlu1 %3593 }
 0x174   : > { %v1169_v60 = vpack.c.bf16 %v1159_v52, %v1158_v50  ;;  %v3589_v21 = vpop.permute.xlu0 %3588  ;;  %v3595_v36 = vunpack.i.l.bf16 %v3594_v46  ;;  %v3596_v42 = vunpack.i.h.bf16 %v3594_v46 }
 0x175   : > { %v3591_v12 = vunpack.i.h.bf16 %v3589_v21  ;;  %v3590_v30 = vunpack.i.l.bf16 %v3589_v21 }
 0x176   : > { %2913 = vmatmul.mubr.msk.bf16.gmra.mrb[8].mxu0 %vm1994_vm11, %v1169_v60  ;;  %v1060_v34 = vsel %vm1045_vm4, %v1043_v4, %v3595_v36  ;;  %v1061_v5 = vsel %vm1045_vm4, %v1044_v6, %v3596_v42 }
 0x177   : > { %v3604_v25 = vpop.permute.xlu1 %3603  ;;  %v1058_v20 = vsel %vm1045_vm4, %v1041_v58, %v3590_v30  ;;  %v1059_v15 = vsel %vm1045_vm4, %v1042_v29, %v3591_v12 }
 0x178   : > { %v3599_v31 = vpop.permute.xlu0 %3598  ;;  %v3605_v43 = vunpack.i.l.bf16 %v3604_v25  ;;  %v3606_v2 = vunpack.i.h.bf16 %v3604_v25 }
 0x179   : > { %v3601_v9 = vunpack.i.h.bf16 %v3599_v31  ;;  %v3600_v8 = vunpack.i.l.bf16 %v3599_v31 }
 0x17a   : > { %v1077_v37 = vsel %vm1062_vm5, %v1060_v34, %v3605_v43  ;;  %v1078_v10 = vsel %vm1062_vm5, %v1061_v5, %v3606_v2 }
 0x17b   : > { %v3614_v27 = vpop.permute.xlu1 %3613  ;;  %v1075_v44 = vsel %vm1062_vm5, %v1058_v20, %v3600_v8  ;;  %v1076_v45 = vsel %vm1062_vm5, %v1059_v15, %v3601_v9 }
 0x17c   : > { %v3609_v18 = vpop.permute.xlu0 %3608  ;;  %v3615_v47 = vunpack.i.l.bf16 %v3614_v27  ;;  %v3616_v28 = vunpack.i.h.bf16 %v3614_v27 }
 0x17d   : > { %v3611_v38 = vunpack.i.h.bf16 %v3609_v18  ;;  %v3610_v16 = vunpack.i.l.bf16 %v3609_v18 }
 0x17e   : > { %v1094_v7 = vsel %vm1079_vm6, %v1077_v37, %v3615_v47  ;;  %v1095_v62 = vsel %vm1079_vm6, %v1078_v10, %v3616_v28 }
 0x17f   : > { %v3624_v49 = vpop.permute.xlu1 %3623  ;;  %v1092_v23 = vsel %vm1079_vm6, %v1075_v44, %v3610_v16  ;;  %v1093_v17 = vsel %vm1079_vm6, %v1076_v45, %v3611_v38 }
 0x180   : > { %v3619_v13 = vpop.permute.xlu0 %3618  ;;  %v3625_v40 = vunpack.i.l.bf16 %v3624_v49  ;;  %v3626_v53 = vunpack.i.h.bf16 %v3624_v49 }
 0x181   : > { %v3621_v48 = vunpack.i.h.bf16 %v3619_v13  ;;  %v3620_v56 = vunpack.i.l.bf16 %v3619_v13 }
 0x182   : > { %v1111_v22 = vsel %vm1096_vm7, %v1094_v7, %v3625_v40  ;;  %v1112_v52 = vsel %vm1096_vm7, %v1095_v62, %v3626_v53 }
 0x183   : > { %v3634_v57 = vpop.permute.xlu1 %3633  ;;  %v1109_v59 = vsel %vm1096_vm7, %v1092_v23, %v3620_v56  ;;  %v1110_v14 = vsel %vm1096_vm7, %v1093_v17, %v3621_v48 }
 0x184   : > { %v3629_v51 = vpop.permute.xlu0 %3628  ;;  %v3635_v1 = vunpack.i.l.bf16 %v3634_v57  ;;  %v3636_v63 = vunpack.i.h.bf16 %v3634_v57 }
 0x185   : > { %v3631_v33 = vunpack.i.h.bf16 %v3629_v51  ;;  %v3630_v61 = vunpack.i.l.bf16 %v3629_v51 }
 0x186   : > { %v1128_v54 = vsel %vm1113_vm8, %v1111_v22, %v3635_v1  ;;  %v1129_v29 = vsel %vm1113_vm8, %v1112_v52, %v3636_v63 }
 0x187   : > { %v3649_v39 = vpop.permute.xlu1 %3648  ;;  %v1126_v55 = vsel %vm1113_vm8, %v1109_v59, %v3630_v61  ;;  %v1127_v26 = vsel %vm1113_vm8, %v1110_v14, %v3631_v33 }
 0x188   : > { %v3639_v11 = vpop.permute.xlu0 %3638  ;;  %v3651_v32 = vunpack.i.h.bf16 %v3649_v39  ;;  %v3650_v19 = vunpack.i.l.bf16 %v3649_v39 }
 0x189   : > { %v2928_v50 = vpop.f32.mrb[0].mxu1  ;;  %v3641_v46 = vunpack.i.h.bf16 %v3639_v11  ;;  %v3640_v60 = vunpack.i.l.bf16 %v3639_v11 }
 0x18a   : > { %v2208_v21 = vpop.f32.mrb[1].mxu1  ;;  %v2217_v41 = vadd.f32 %v2928_v50, %v4749_v35 }
 0x18b   : > { %v2209_v24 = vadd.f32 %v4749_v35, %v2208_v21  ;;  %v2929_v25 = vpop.f32.mrb[2].mxu1  ;;  %v1143_v12 = vsel %vm1130_vm9, %v1126_v55, %v3640_v60  ;;  %v1144_v30 = vsel %vm1130_vm9, %v1127_v26, %v3641_v46 }
 0x18c   : > { %v2220_v31 = vadd.f32 %v2929_v25, %v4749_v35  ;;  %v2211_v58 = vpop.f32.mrb[3].mxu1  ;;  %v3644_v3 = vpop.permute.xlu0 %3643  ;;  %v1160_v36 = vsel %vm1147_vm10, %v1143_v12, %v3650_v19  ;;  %v1161_v4 = vsel %vm1147_vm10, %v1144_v30, %v3651_v32  ;;  %v2331_v18 = vmul.f32 %v2217_v41, %v2217_v41 }
 0x18d   : > { %v2329_v9 = vmul.f32 %v2209_v24, %v2209_v24  ;;  %v2212_v8 = vadd.f32 %v4749_v35, %v2211_v58  ;;  %v3646_v27 = vunpack.i.h.bf16 %v3644_v3  ;;  %v3645_v20 = vunpack.i.l.bf16 %v3644_v3 }
 0x18e   : > { %v4764_v15 = vpack.c.bf16 %v2220_v31, %v2217_v41  ;;  %v1170_v42 = vpack.c.bf16 %v1161_v4, %v1160_v36  ;;  %v2332_v34 = vmul.f32 %v2220_v31, %v2220_v31  ;;  %v2348_v47 = vsel %vm1028_vm3, %v2331_v18, 0.0 }
 0x18f   : > { %v2330_v6 = vmul.f32 %v2212_v8, %v2212_v8  ;;  %v4766_v43 = vpack.c.bf16 %v2212_v8, %v2209_v24  ;;  %v1145_v38 = vsel %vm1130_vm9, %v1128_v54, %v3645_v20  ;;  %v1146_v16 = vsel %vm1130_vm9, %v1129_v29, %v3646_v27 }
 0x190   : > { %v3654_v44 = vpop.permute.xlu0 %3653  ;;  %2916 = vmatprep.mubr.msk.bf16.mxu0 %vm1994_vm11, %v1170_v42  ;;  %v2345_v45 = vsel %vm1028_vm3, %v2329_v9, 0.0  ;;  %v2350_v17 = vsel %vm1028_vm3, %v2332_v34, 0.0 }
 0x191   : > { %v2346_v2 = vsel %vm1028_vm3, %v2330_v6, 0.0  ;;  %2417 = vrot.lane.b32.xlu1 %v4766_v43, %s3721_s24  ;;  %v3656_v49 = vunpack.i.h.bf16 %v3654_v44  ;;  %v3655_v5 = vunpack.i.l.bf16 %v3654_v44 }
 0x192   : > { %v2347_v13 = vadd.f32 %v2346_v2, %v2345_v45 }
 0x193   : > { %v1162_v37 = vsel %vm1147_vm10, %v1145_v38, %v3655_v5  ;;  %v1163_v48 = vsel %vm1147_vm10, %v1146_v16, %v3656_v49 }
 0x194   : > { %v2349_v56 = vadd.f32 %v2348_v47, %v2347_v13  ;;  %v1171_v23 = vpack.c.bf16 %v1163_v48, %v1162_v37 }
 0x195   : > { %2419 = vrot.lane.b32.xlu1 %v4764_v15, %s3721_s24 }
 0x196   : > { %v2351_v28 = vadd.f32 %v2350_v17, %v2349_v56  ;;  %2917 = vmatmul.mubr.msk.bf16.gmra.mrb[12].mxu0 %vm1994_vm11, %v1171_v23 }
 0x197   : > { %2958 = vmatprep.mubr.msk.bf16.mxu0 %vm3722_vm12, %v3720_v0 }
 0x1a9   : > { %v2932_v10 = vpop.f32.mrb[4].mxu1 }
 0x1aa   : > { %v2224_v40 = vpop.f32.mrb[5].mxu1  ;;  %v2233_v57 = vadd.f32 %v2932_v10, %v4749_v35 }
 0x1ab   : > { %v2225_v7 = vadd.f32 %v4749_v35, %v2224_v40  ;;  %v2933_v51 = vpop.f32.mrb[6].mxu1 }
 0x1ac   : > { %v2236_v53 = vadd.f32 %v2933_v51, %v4749_v35  ;;  %v2227_v59 = vpop.f32.mrb[7].mxu1  ;;  %v2335_v62 = vmul.f32 %v2233_v57, %v2233_v57 }
 0x1ad   : > { %v2333_v14 = vmul.f32 %v2225_v7, %v2225_v7  ;;  %v2228_v33 = vadd.f32 %v4749_v35, %v2227_v59 }
 0x1ae   : > { %v4786_v61 = vpack.c.bf16 %v2236_v53, %v2233_v57  ;;  %v2336_v55 = vmul.f32 %v2236_v53, %v2236_v53  ;;  %v2356_v32 = vsel %vm1028_vm3, %v2335_v62, 0.0 }
 0x1af   : > { %v2352_v1 = vsel %vm1028_vm3, %v2333_v14, 0.0  ;;  %v2334_v22 = vmul.f32 %v2228_v33, %v2228_v33  ;;  %v4789_v63 = vpack.c.bf16 %v2228_v33, %v2225_v7 }
 0x1b0   : > { %v2353_v39 = vadd.f32 %v2352_v1, %v2351_v28  ;;  %2423 = vrot.lane.b32.xlu1 %v4786_v61, %s3721_s24  ;;  %v2358_v50 = vsel %vm1028_vm3, %v2336_v55, 0.0  ;;  %v2328_v1 = vld [vmem:[%s3821_s14] sm:$0x1] }
 0x1b1   : > { %v2354_v26 = vsel %vm1028_vm3, %v2334_v22, 0.0  ;;  %2421 = vrot.lane.b32.xlu0 %v4789_v63, %s3721_s24 }
 0x1b2   : > { %v2355_v11 = vadd.f32 %v2354_v26, %v2353_v39 }
 0x1b4   : > { %v2357_v19 = vadd.f32 %v2356_v32, %v2355_v11 }
 0x1b6   : > { %v2359_v52 = vadd.f32 %v2358_v50, %v2357_v19 }
 0x1c9   : > { %v2936_v46 = vpop.f32.mrb[8].mxu1 }
 0x1ca   : > { %v2240_v60 = vpop.f32.mrb[9].mxu1  ;;  %v2249_v21 = vadd.f32 %v2936_v46, %v4749_v35 }
 0x1cb   : > { %v2241_v54 = vadd.f32 %v4749_v35, %v2240_v60  ;;  %v2937_v41 = vpop.f32.mrb[10].mxu1 }
 0x1cc   : > { %v2252_v24 = vadd.f32 %v2937_v41, %v4749_v35  ;;  %v2243_v25 = vpop.f32.mrb[11].mxu1  ;;  %v2339_v58 = vmul.f32 %v2249_v21, %v2249_v21 }
 0x1cd   : > { %v2337_v12 = vmul.f32 %v2241_v54, %v2241_v54  ;;  %v2244_v30 = vadd.f32 %v4749_v35, %v2243_v25 }
 0x1ce   : > { %v2390_v31 = vpack.c.bf16 %v2252_v24, %v2249_v21  ;;  %v2340_v9 = vmul.f32 %v2252_v24, %v2252_v24  ;;  %v2364_v20 = vsel %vm1028_vm3, %v2339_v58, 0.0 }
 0x1cf   : > { %v2360_v29 = vsel %vm1028_vm3, %v2337_v12, 0.0  ;;  %v2338_v3 = vmul.f32 %v2244_v30, %v2244_v30  ;;  %v2389_v36 = vpack.c.bf16 %v2244_v30, %v2241_v54 }
 0x1d0   : > { %v2361_v4 = vadd.f32 %v2360_v29, %v2359_v52  ;;  %2427 = vrot.lane.b32.xlu1 %v2390_v31, %s3721_s24  ;;  %v2366_v18 = vsel %vm1028_vm3, %v2340_v9, 0.0 }
 0x1d1   : > { %v2362_v8 = vsel %vm1028_vm3, %v2338_v3, 0.0  ;;  %2425 = vrot.lane.b32.xlu0 %v2389_v36, %s3721_s24 }
 0x1d2   : > { %v2363_v27 = vadd.f32 %v2362_v8, %v2361_v4 }
 0x1d4   : > { %v2365_v42 = vadd.f32 %v2364_v20, %v2363_v27 }
 0x1d6   : > { %v2367_v6 = vadd.f32 %v2366_v18, %v2365_v42 }
 0x1e6   : > { %v2940_v34 = vpop.f32.mrb[12].mxu1 }
 0x1e7   : > { %v2256_v38 = vpop.f32.mrb[13].mxu1  ;;  %v2265_v16 = vadd.f32 %v2940_v34, %v4749_v35 }
 0x1e8   : > { %v2257_v44 = vadd.f32 %v4749_v35, %v2256_v38  ;;  %v2941_v45 = vpop.f32.mrb[14].mxu1 }
 0x1e9   : > { %v2268_v2 = vadd.f32 %v2941_v45, %v4749_v35  ;;  %v2259_v49 = vpop.f32.mrb[15].mxu1  ;;  %v2343_v37 = vmul.f32 %v2265_v16, %v2265_v16 }
 0x1ea   : > { %v2341_v5 = vmul.f32 %v2257_v44, %v2257_v44  ;;  %v2260_v13 = vadd.f32 %v4749_v35, %v2259_v49 }
 0x1eb   : > { %v2392_v47 = vpack.c.bf16 %v2268_v2, %v2265_v16  ;;  %v2344_v28 = vmul.f32 %v2268_v2, %v2268_v2  ;;  %v2372_v57 = vsel %vm1028_vm3, %v2343_v37, 0.0 }
 0x1ec   : > { %v2368_v48 = vsel %vm1028_vm3, %v2341_v5, 0.0  ;;  %v2342_v56 = vmul.f32 %v2260_v13, %v2260_v13  ;;  %v2391_v23 = vpack.c.bf16 %v2260_v13, %v2257_v44 }
 0x1ed   : > { %v2369_v17 = vadd.f32 %v2368_v48, %v2367_v6  ;;  %2431 = vrot.lane.b32.xlu1 %v2392_v47, %s3721_s24  ;;  %v2374_v7 = vsel %vm1028_vm3, %v2344_v28, 0.0 }
 0x1ee   : > { %v2370_v10 = vsel %vm1028_vm3, %v2342_v56, 0.0  ;;  %2429 = vrot.lane.b32.xlu0 %v2391_v23, %s3721_s24 }
 0x1ef   : > { %v2371_v40 = vadd.f32 %v2370_v10, %v2369_v17 }
 0x1f1   : > { %v2373_v35 = vadd.f32 %v2372_v57, %v2371_v40 }
 0x1f3   : > { %v2375_v51 = vadd.f32 %v2374_v7, %v2373_v35 }
 0x1f5   : > { %v2376_v53 = vrot.slane %v2375_v51, 4 }
 0x1f7   : > { %v2377_v59 = vadd.f32 %v2376_v53, %v2375_v51 }
 0x1f9   : > { %v2378_v14 = vrot.slane %v2377_v59, 2 }
 0x1fb   : > { %v2379_v33 = vadd.f32 %v2378_v14, %v2377_v59 }
 0x1fd   : > { %v2380_v62 = vrot.slane %v2379_v33, 1 }
 0x1ff   : > { %v2381_v22 = vadd.f32 %v2380_v62, %v2379_v33 }
 0x201   : > { %v2382_v39 = vadd.f32 %v2381_v22, %v2328_v1 }
 0x203   : > { %2383 = vst.msk [vmem:[%s3821_s14] sm:$0x1] %vm2326_vm13, %v2382_v39  ;;  %v2418_v55 = vpop.permute.xlu1 %2417 }
 0x204   : > { %2943 = vmatpush3.bf16.msra.mxu0 %v2418_v55 }
 0x205   : > { %2944 = vmatprep.subr.bf16.mxu0 %v3720_v0 }
 0x207   : > { %v2420_v26 = vpop.permute.xlu1 %2419 }
 0x208   : > { %2945 = vmatpush3.bf16.msra.mxu0 %v2420_v26 }
 0x209   : > { %2946 = vmatprep.subr.bf16.mxu0 %v3720_v0 }
 0x20c   : > { %2393 = vxpose.xlu0.c.b16.start [1/8] (narrow) %v4766_v43, 16 }
 0x210   : > { %2394 = vxpose.xlu0.c.b16.cont [2/8] (narrow) %v4764_v15, 16  ;;  %v4833_v15 = vld [vmem:[%s4893_s3] ss:$0 sm:$0xff] }
 0x214   : > { %2395 = vxpose.xlu0.c.b16.cont [3/8] (narrow) %v4789_v63, 16 }
 0x218   : > { %2396 = vxpose.xlu0.c.b16.cont [4/8] (narrow) %v4786_v61, 16 }
 0x21c   : > { %2397 = vxpose.xlu0.c.b16.cont [5/8] (narrow) %v2389_v36, 16 }
 0x21d   : > { %v2906_v43 = vpop.f32.mrb[0].mxu0 }
 0x21e   : > { %v2066_v61 = vadd.f32 %v2906_v43, %v4833_v15  ;;  %v2057_v63 = vpop.f32.mrb[1].mxu0 }
 0x21f   : > { %v2058_v19 = vadd.f32 %v4833_v15, %v2057_v63  ;;  %v2907_v50 = vpop.f32.mrb[2].mxu0 }
 0x220   : > { %2398 = vxpose.xlu0.c.b16.cont [6/8] (narrow) %v2390_v31, 16  ;;  %v2069_v52 = vadd.f32 %v2907_v50, %v4833_v15  ;;  %v2060_v46 = vpop.f32.mrb[3].mxu0  ;;  %v2274_v60 = vmul.f32 %v2066_v61, %v2066_v61 }
 0x221   : > { %v2272_v21 = vmul.f32 %v2058_v19, %v2058_v19  ;;  %v2061_v54 = vadd.f32 %v4833_v15, %v2060_v46 }
 0x222   : > { %v2424_v32 = vpop.permute.xlu1 %2423  ;;  %v2275_v24 = vmul.f32 %v2069_v52, %v2069_v52  ;;  %v2291_v12 = vsel %vm1028_vm3, %v2274_v60, 0.0 }
 0x223   : > { %v2422_v11 = vpop.permute.xlu0 %2421  ;;  %v2288_v41 = vsel %vm1028_vm3, %v2272_v21, 0.0  ;;  %v2273_v25 = vmul.f32 %v2061_v54, %v2061_v54 }
 0x224   : > { %2399 = vxpose.xlu0.c.b16.cont [7/8] (narrow) %v2391_v23, 16  ;;  %2947 = vmatpush3.bf16.msra.mxu0 %v2422_v11  ;;  %v2293_v36 = vsel %vm1028_vm3, %v2275_v24, 0.0 }
 0x225   : > { %2948 = vmatprep.subr.bf16.mxu0 %v3720_v0  ;;  %v2289_v30 = vsel %vm1028_vm3, %v2273_v25, 0.0 }
 0x226   : > { %v2290_v58 = vadd.f32 %v2289_v30, %v2288_v41 }
 0x228   : > { %2400 = vxpose.xlu0.c.b16.end [8/8] (narrow) %v2392_v47, 16  ;;  %2949 = vmatpush3.bf16.msra.mxu0 %v2424_v32  ;;  %v2292_v8 = vadd.f32 %v2291_v12, %v2290_v58 }
 0x229   : > { %2950 = vmatprep.subr.bf16.mxu0 %v3720_v0  ;;  %v2910_v31 = vpop.f32.mrb[4].mxu0 }
 0x22a   : > { %v2082_v29 = vadd.f32 %v2910_v31, %v4833_v15  ;;  %v2073_v3 = vpop.f32.mrb[5].mxu0  ;;  %v2294_v34 = vadd.f32 %v2293_v36, %v2292_v8 }
 0x22b   : > { %v2074_v4 = vadd.f32 %v4833_v15, %v2073_v3  ;;  %v2911_v9 = vpop.f32.mrb[6].mxu0 }
 0x22c   : > { %v2085_v27 = vadd.f32 %v2911_v9, %v4833_v15  ;;  %v2076_v20 = vpop.f32.mrb[7].mxu0  ;;  %v2278_v42 = vmul.f32 %v2082_v29, %v2082_v29 }
 0x22d   : > { %v2276_v18 = vmul.f32 %v2074_v4, %v2074_v4  ;;  %v2077_v6 = vadd.f32 %v4833_v15, %v2076_v20 }
 0x22e   : > { %v2279_v16 = vmul.f32 %v2085_v27, %v2085_v27  ;;  %v2299_v2 = vsel %vm1028_vm3, %v2278_v42, 0.0  ;;  %v2271_v42 = vld [vmem:[%s3808_s19] sm:$0x1] }
 0x22f   : > { %v2295_v38 = vsel %vm1028_vm3, %v2276_v18, 0.0  ;;  %v2277_v44 = vmul.f32 %v2077_v6, %v2077_v6 }
 0x230   : > { %v2296_v45 = vadd.f32 %v2295_v38, %v2294_v34  ;;  %v2301_v13 = vsel %vm1028_vm3, %v2279_v16, 0.0  ;;  %v2384_v34 = vld [vmem:[%s3803_s16] sm:$0xf] }
 0x231   : > { %v2297_v49 = vsel %vm1028_vm3, %v2277_v44, 0.0 }
 0x232   : > { %v2298_v5 = vadd.f32 %v2297_v49, %v2296_v45 }
 0x234   : > { %v2300_v47 = vadd.f32 %v2299_v2, %v2298_v5 }
 0x236   : > { %v2302_v37 = vadd.f32 %v2301_v13, %v2300_v47 }
 0x242   : > { %v2428_v56 = vpop.permute.xlu1 %2427 }
 0x243   : > { %v2426_v48 = vpop.permute.xlu0 %2425 }
 0x244   : > { %2951 = vmatpush3.bf16.msra.mxu0 %v2426_v48 }
 0x245   : > { %2952 = vmatprep.subr.bf16.mxu0 %v3720_v0 }
 0x248   : > { %2953 = vmatpush3.bf16.msra.mxu0 %v2428_v56 }
 0x249   : > { %2954 = vmatprep.subr.bf16.mxu0 %v3720_v0  ;;  %v2914_v23 = vpop.f32.mrb[8].mxu0 }
 0x24a   : > { %v2098_v17 = vadd.f32 %v2914_v23, %v4833_v15  ;;  %v2089_v28 = vpop.f32.mrb[9].mxu0 }
 0x24b   : > { %v2090_v10 = vadd.f32 %v4833_v15, %v2089_v28  ;;  %v2915_v40 = vpop.f32.mrb[10].mxu0 }
 0x24c   : > { %v2101_v57 = vadd.f32 %v2915_v40, %v4833_v15  ;;  %v2092_v35 = vpop.f32.mrb[11].mxu0  ;;  %v2282_v7 = vmul.f32 %v2098_v17, %v2098_v17 }
 0x24d   : > { %v2280_v51 = vmul.f32 %v2090_v10, %v2090_v10  ;;  %v2093_v53 = vadd.f32 %v4833_v15, %v2092_v35 }
 0x24e   : > { %v2283_v14 = vmul.f32 %v2101_v57, %v2101_v57  ;;  %v2307_v1 = vsel %vm1028_vm3, %v2282_v7, 0.0 }
 0x24f   : > { %v2303_v59 = vsel %vm1028_vm3, %v2280_v51, 0.0  ;;  %v2281_v33 = vmul.f32 %v2093_v53, %v2093_v53 }
 0x250   : > { %v2304_v62 = vadd.f32 %v2303_v59, %v2302_v37  ;;  %v2309_v55 = vsel %vm1028_vm3, %v2283_v14, 0.0 }
 0x251   : > { %v2305_v22 = vsel %vm1028_vm3, %v2281_v33, 0.0 }
 0x252   : > { %v2306_v39 = vadd.f32 %v2305_v22, %v2304_v62 }
 0x254   : > { %v2308_v26 = vadd.f32 %v2307_v1, %v2306_v39 }
 0x256   : > { %v2310_v11 = vadd.f32 %v2309_v55, %v2308_v26 }
 0x25f   : > { %v2432_v43 = vpop.permute.xlu1 %2431 }
 0x260   : > { %v2430_v32 = vpop.permute.xlu0 %2429 }
 0x261   : > { %2955 = vmatpush3.bf16.msra.mxu0 %v2430_v32 }
 0x262   : > { %2956 = vmatprep.subr.bf16.mxu0 %v3720_v0 }
 0x265   : > { %2957 = vmatpush3.bf16.msra.mxu0 %v2432_v43 }
 0x269   : > { %v2918_v61 = vpop.f32.mrb[12].mxu0 }
 0x26a   : > { %v2114_v63 = vadd.f32 %v2918_v61, %v4833_v15  ;;  %v2105_v19 = vpop.f32.mrb[13].mxu0 }
 0x26b   : > { %v2106_v50 = vadd.f32 %v4833_v15, %v2105_v19  ;;  %v2919_v52 = vpop.f32.mrb[14].mxu0 }
 0x26c   : > { %v2117_v46 = vadd.f32 %v2919_v52, %v4833_v15  ;;  %v2108_v60 = vpop.f32.mrb[15].mxu0  ;;  %v2286_v21 = vmul.f32 %v2114_v63, %v2114_v63 }
 0x26d   : > { %v2284_v54 = vmul.f32 %v2106_v50, %v2106_v50  ;;  %v2109_v41 = vadd.f32 %v4833_v15, %v2108_v60 }
 0x26e   : > { %v2287_v25 = vmul.f32 %v2117_v46, %v2117_v46  ;;  %v2315_v30 = vsel %vm1028_vm3, %v2286_v21, 0.0 }
 0x26f   : > { %v2311_v24 = vsel %vm1028_vm3, %v2284_v54, 0.0  ;;  %v2285_v0 = vmul.f32 %v2109_v41, %v2109_v41 }
 0x270   : > { %v2312_v12 = vadd.f32 %v2311_v24, %v2310_v11  ;;  %v2317_v3 = vsel %vm1028_vm3, %v2287_v25, 0.0 }
 0x271   : > { %v2313_v31 = vsel %vm1028_vm3, %v2285_v0, 0.0 }
 0x272   : > { %v2401_v58 = vpop.trf.xlu0  ;;  %v2314_v29 = vadd.f32 %v2313_v31, %v2312_v12 }
 0x273   : > { %2959 = vmatmul.mubr.bf16.vlgmr.msra.gmra.mrb[16].mxu0 %v2401_v58 }
 0x274   : > { %v2316_v36 = vadd.f32 %v2315_v30, %v2314_v29 }
 0x276   : > { %v2318_v4 = vadd.f32 %v2317_v3, %v2316_v36 }
 0x278   : > { %v2319_v15 = vrot.slane %v2318_v4, 4 }
 0x27a   : > { %v2320_v9 = vadd.f32 %v2319_v15, %v2318_v4 }
 0x27c   : > { %v2321_v8 = vrot.slane %v2320_v9, 2 }
 0x27e   : > { %v2322_v27 = vadd.f32 %v2321_v8, %v2320_v9 }
 0x280   : > { %v2323_v20 = vrot.slane %v2322_v27, 1 }
 0x282   : > { %v2324_v18 = vadd.f32 %v2323_v20, %v2322_v27 }
 0x284   : > { %v2325_v6 = vadd.f32 %v2324_v18, %v2271_v42 }
 0x286   : > { %2327 = vst.msk [vmem:[%s3808_s19] sm:$0x1] %vm2326_vm13, %v2325_v6 }
 0x346   : > { %v2475_v38 = vpop.f32.mrb[16].mxu0 }
 0x347   : > { %v2481_v16 = vadd.f32 %v2475_v38, %v2384_v34  ;;  %v2960_v44 = vpop.f32.mrb[17].mxu0 }
 0x348   : > { %v2478_v45 = vpop.f32.mrb[18].mxu0 }
 0x349   : > { %2483 = vst.msk [vmem:[%s3803_s16] sm:$0xf] %vm2482_vm14, %v2481_v16  ;;  %v2961_v2 = vpop.f32.mrb[19].mxu0 }
 0x34a PF: > { %s19_s9 = sadd.s32 1, %s3709_s9   ;;  %s4902_s26 = sld [smem:[#allocation2_spill]] }
 0x34b   : > { %p16_p7 = scmp.ge.s32.totalorder %s19_s9, 6   ;;  %s4903_s27 = smov %s3701_s29 }
 0x34c   : > { %s4904_s28 = smov %s3705_s30  ;;  %s4905_s29 = smov %s4908_s10 }
 0x34d   :  { %18 = sbr.rel (!%p16_p7) target bundleno = 3 (0x3), region = 111 }
 0x350   : > { %s4906_s30 = smov %s4902_s26 }

</bundles_post_ra>
